<compile_context>
chip_gen: v7x
topology: tpu7x:2x2x1
jax: 0.10.0
libtpu: 0.0.40
codegen_flags: <defaults>
</compile_context>

<pallas_src>
import functools

import jax
import jax.numpy as jnp
from jax import lax
from jax.experimental import pallas as pl
from jax.experimental.pallas import tpu as pltpu


def _round_up(x, m):
    return (x + m - 1) // m * m


def _vmem_limit_bytes():
    """~3/4 of physical VMEM (96 MiB on v5e/v6e, 48 MiB on v7x), safe fallback."""
    cap = 64 * 1024 * 1024
    try:
        info = pltpu.get_tpu_info()
        cap = int(getattr(info, "vmem_capacity_bytes", cap))
    except Exception:
        pass
    return max(32 * 1024 * 1024, min((cap * 3) // 4, 100 * 1024 * 1024))


# ---------------------------------------------------------------------------
# Fused whole-model kernel
# ---------------------------------------------------------------------------
def _gru_model_kernel(x_ref, wih0_ref, wih_rest_ref, whh_all_ref, bx_all_ref,
                      bhn_all_ref, wfc_ref, bfc_ref, out_ref, xp_ref, *seq_refs):
    """All GRU layers + Linear head, fully VMEM-resident.

    x_ref       : (T, Bp, D0)      time-major, batch padded to 8
    wih0_ref    : (D0, 3Hp)        layer-0 input weights (gate order r,z,n, padded)
    wih_rest_ref: (max(L-1,1), Hp, 3Hp)
    whh_all_ref : (L, Hp, 3Hp)
    bx_all_ref  : (L, 1, 3Hp)      (b_ir+b_hr | b_iz+b_hz | b_in), padded
    bhn_all_ref : (L, 1, Hp)
    wfc_ref     : (Hp, Op), bfc_ref: (1, Op)
    out_ref     : (Bp, Op)
    xp_ref      : VMEM scratch (T, Bp, 3Hp)     — per-layer input projections
    seq_refs    : VMEM scratch (T, Bp, Hp) x k  — ping-pong inter-layer sequences
    """
    n_layers = whh_all_ref.shape[0]
    T, Bp, D0 = x_ref.shape
    Hp = whh_all_ref.shape[1]
    G = 3 * Hp
    n_bufs = len(seq_refs)
    unroll = bool(T <= 16)  # short fixed trip-count: give the scheduler visibility

    h_last = None
    for li in range(n_layers):
        is_last = li == n_layers - 1

        # ---- Input projection for ALL timesteps: one MXU GEMM (out of the
        #      serial chain), accumulated into VMEM scratch. Never touches HBM.
        if li == 0:
            xin = x_ref[...].reshape(T * Bp, D0)
            wih = wih0_ref[...]
        else:
            xin = seq_refs[(li - 1) % n_bufs][...].reshape(T * Bp, Hp)
            wih = wih_rest_ref[li - 1]
        xp2d = jnp.dot(xin, wih, preferred_element_type=jnp.float32) + bx_all_ref[li]
        xp_ref[...] = xp2d.reshape(T, Bp, G)

        # ---- Serial recurrence.  Weight load / bias broadcast hoisted out of
        #      the fori_loop (JAX does not CSE broadcasts; avoid T-1 reloads).
        whh = whh_all_ref[li]                                    # (Hp, 3Hp)
        bhn = jnp.broadcast_to(bhn_all_ref[li], (Bp, Hp))        # (Bp, Hp)
        out_seq = None if is_last else seq_refs[li % n_bufs]

        def step(t, h, whh=whh, bhn=bhn, out_seq=out_seq):
            gx = xp_ref[t]                                       # (Bp, 3Hp) precomputed
            gh = jnp.dot(h, whh, preferred_element_type=jnp.float32)
            r = jax.nn.sigmoid(gx[:, 0:Hp] + gh[:, 0:Hp])
            z = jax.nn.sigmoid(gx[:, Hp:2 * Hp] + gh[:, Hp:2 * Hp])
            n = jnp.tanh(gx[:, 2 * Hp:] + r * (gh[:, 2 * Hp:] + bhn))
            h_new = n + z * (h - n)          # == (1-z)*n + z*h, one fewer VPU op
            if out_seq is not None:
                out_seq[t] = h_new           # lane-aligned full-vreg store (Hp%128==0)
            return h_new

        h_last = lax.fori_loop(0, T, step, jnp.zeros((Bp, Hp), jnp.float32),
                               unroll=unroll)

    # ---- Fused Linear head on the last timestep's hidden state.
    out_ref[...] = (
        jnp.dot(h_last, wfc_ref[...], preferred_element_type=jnp.float32)
        + bfc_ref[...]
    )


def _gru_forward_call(x_tm, wih0, wih_rest, whh_all, bx_all, bhn_all, wfc, bfc):
    T, Bp, D0 = x_tm.shape
    L, Hp, G = whh_all.shape
    Op = wfc.shape[1]
    n_seq_bufs = min(2, L - 1)               # ping-pong inter-layer buffers
    scratch = [pltpu.VMEM((T, Bp, G), jnp.float32)]
    scratch += [pltpu.VMEM((T, Bp, Hp), jnp.float32)] * n_seq_bufs

    return pl.pallas_call(
        _gru_model_kernel,
        out_shape=jax.ShapeDtypeStruct((Bp, Op), jnp.float32),
        grid_spec=pltpu.PrefetchScalarGridSpec(
            num_scalar_prefetch=0,
            grid=(1,),
            in_specs=[
                pl.BlockSpec((T, Bp, D0), lambda i: (0, 0, 0)),
                pl.BlockSpec((D0, G), lambda i: (0, 0)),
                pl.BlockSpec(wih_rest.shape, lambda i: (0, 0, 0)),
                pl.BlockSpec((L, Hp, G), lambda i: (0, 0, 0)),
                pl.BlockSpec((L, 1, G), lambda i: (0, 0, 0)),
                pl.BlockSpec((L, 1, Hp), lambda i: (0, 0, 0)),
                pl.BlockSpec((Hp, Op), lambda i: (0, 0)),
                pl.BlockSpec((1, Op), lambda i: (0, 0)),
            ],
            out_specs=pl.BlockSpec((Bp, Op), lambda i: (0, 0)),
            scratch_shapes=scratch,
        ),
        compiler_params=pltpu.CompilerParams(
            # time recurrence is inherently sequential
            dimension_semantics=("arbitrary",),
            vmem_limit_bytes=_vmem_limit_bytes(),
        ),
    )(x_tm, wih0, wih_rest, whh_all, bx_all, bhn_all, wfc, bfc)


# ---------------------------------------------------------------------------
# Parameters
# ---------------------------------------------------------------------------
def init_params(key, input_dim, hidden_dim, layer_dim, output_dim):
    """Raw torch-layout params: weight_ih (3H,in), weight_hh (3H,H), biases (3H,)."""
    k = 1.0 / jnp.sqrt(hidden_dim)
    raw_gru = []
    for layer in range(layer_dim):
        in_dim = input_dim if layer == 0 else hidden_dim
        key, k1, k2, k3, k4 = jax.random.split(key, 5)
        w_ih = jax.random.uniform(k1, (3 * hidden_dim, in_dim), jnp.float32, -k, k)
        w_hh = jax.random.uniform(k2, (3 * hidden_dim, hidden_dim), jnp.float32, -k, k)
        b_ih = jax.random.uniform(k3, (3 * hidden_dim,), jnp.float32, -k, k)
        b_hh = jax.random.uniform(k4, (3 * hidden_dim,), jnp.float32, -k, k)
        raw_gru.append((w_ih, w_hh, b_ih, b_hh))
    key, k1, k2 = jax.random.split(key, 3)
    w_fc = jax.random.uniform(k1, (output_dim, hidden_dim), jnp.float32, -k, k)
    b_fc = jax.random.uniform(k2, (output_dim,), jnp.float32, -k, k)
    return raw_gru, (w_fc, b_fc)


def prepare_kernel_params(raw_gru, raw_fc, hidden_dim, output_dim):
    """Convert torch-layout params to the fused, lane-padded kernel layout.

    Per-gate width H is padded to Hp = round_up(H, 128); the padding is all zeros,
    which keeps padded hidden lanes identically 0 through the recurrence.
    """
    H = hidden_dim
    Hp = _round_up(H, 128)
    Op = _round_up(output_dim, 128)
    L = len(raw_gru)

    def pad_gate_cols(w):                      # (3H, in) -> (in, 3Hp), gate-blocked
        gates = [w[:H], w[H:2 * H], w[2 * H:]]
        gates = [jnp.pad(g, ((0, Hp - H), (0, 0))) for g in gates]
        return jnp.concatenate(gates, axis=0).T

    def pad_gate_vec(b):                       # (3H,) -> (3Hp,)
        gates = [b[:H], b[H:2 * H], b[2 * H:]]
        return jnp.concatenate([jnp.pad(g, (0, Hp - H)) for g in gates])

    wih0 = None
    wih_list, whh_list, bx_list, bhn_list = [], [], [], []
    for li, (w_ih, w_hh, b_ih, b_hh) in enumerate(raw_gru):
        whh = pad_gate_cols(w_hh)                              # (H, 3Hp)
        whh = jnp.pad(whh, ((0, Hp - H), (0, 0)))              # (Hp, 3Hp)
        whh_list.append(whh)
        bx = pad_gate_vec(jnp.concatenate([b_ih[:2 * H] + b_hh[:2 * H], b_ih[2 * H:]]))
        bx_list.append(bx[None, :])                            # (1, 3Hp)
        bhn_list.append(jnp.pad(b_hh[2 * H:], (0, Hp - H))[None, :])   # (1, Hp)
        wih = pad_gate_cols(w_ih)                              # (in, 3Hp)
        if li == 0:
            wih0 = wih                                         # (input_dim, 3Hp)
        else:
            wih_list.append(jnp.pad(wih, ((0, Hp - H), (0, 0))))  # (Hp, 3Hp)

    wih_rest = (jnp.stack(wih_list) if wih_list
                else jnp.zeros((1, Hp, 3 * Hp), jnp.float32))   # dummy when L == 1
    whh_all = jnp.stack(whh_list)                               # (L, Hp, 3Hp)
    bx_all = jnp.stack(bx_list)                                 # (L, 1, 3Hp)
    bhn_all = jnp.stack(bhn_list)                               # (L, 1, Hp)

    w_fc, b_fc = raw_fc                                         # (O, H), (O,)
    wfc = jnp.zeros((Hp, Op), jnp.float32).at[:H, :output_dim].set(w_fc.T)
    bfc = jnp.zeros((1, Op), jnp.float32).at[0, :output_dim].set(b_fc)

    return (wih0, wih_rest, whh_all, bx_all, bhn_all, wfc, bfc)


# ---------------------------------------------------------------------------
# Forward
# ---------------------------------------------------------------------------
@functools.partial(jax.jit, static_argnums=(2,))
def gru_model_forward(x, kernel_params, output_dim):
    """Equivalent of GRUModel.forward (eval mode).

    x: (B, T, input_dim) float32 (batch_first, like torch) -> (B, output_dim)
    """
    wih0, wih_rest, whh_all, bx_all, bhn_all, wfc, bfc = kernel_params
    B = x.shape[0]
    Bp = _round_up(B, 8)
    x_tm = jnp.transpose(x, (1, 0, 2)).astype(jnp.float32)      # (T, B, D) time-major
    if Bp != B:
        x_tm = jnp.pad(x_tm, ((0, 0), (0, Bp - B), (0, 0)))     # sublane-pad batch
    out_p = _gru_forward_call(x_tm, wih0, wih_rest, whh_all, bx_all,
                              bhn_all, wfc, bfc)                # (Bp, Op)
    return out_p[:B, :output_dim]


# ---------------------------------------------------------------------------
# Pure-JAX reference using raw torch-layout params (torch.nn.GRU math)
# ---------------------------------------------------------------------------
def gru_model_reference(x, raw_gru, raw_fc, hidden_dim):
    H = hidden_dim
    h_seq = jnp.transpose(x, (1, 0, 2))  # (T, B, D)
    for (w_ih, w_hh, b_ih, b_hh) in raw_gru:
        T, B, _ = h_seq.shape
        h = jnp.zeros((B, H), jnp.float32)
        outs = []
        for t in range(T):
            xt = h_seq[t]
            gi = xt @ w_ih.T + b_ih
            gh = h @ w_hh.T + b_hh
            r = jax.nn.sigmoid(gi[:, :H] + gh[:, :H])
            z = jax.nn.sigmoid(gi[:, H:2 * H] + gh[:, H:2 * H])
            n = jnp.tanh(gi[:, 2 * H:] + r * gh[:, 2 * H:])
            h = (1.0 - z) * n + z * h
            outs.append(h)
        h_seq = jnp.stack(outs, axis=0)
    w_fc, b_fc = raw_fc
    return h_seq[-1] @ w_fc.T + b_fc


# ---------------------------------------------------------------------------
if __name__ == "__main__":
    B, T = 2, 8
    INPUT_DIM, HIDDEN_DIM, LAYER_DIM, OUTPUT_DIM = 16, 32, 2, 4
    DROPOUT_PROB = 0.0  # eval-mode forward; dropout not applied

    key = jax.random.PRNGKey(0)
    key, kx = jax.random.split(key)
    x = jax.random.normal(kx, (B, T, INPUT_DIM), jnp.float32)

    raw_gru, raw_fc = init_params(key, INPUT_DIM, HIDDEN_DIM, LAYER_DIM, OUTPUT_DIM)
    kparams = prepare_kernel_params(raw_gru, raw_fc, HIDDEN_DIM, OUTPUT_DIM)

    out = gru_model_forward(x, kparams, OUTPUT_DIM)
    out = jax.block_until_ready(out)
    assert out.shape == (B, OUTPUT_DIM), out.shape

    ref = gru_model_reference(x, raw_gru, raw_fc, HIDDEN_DIM)
    ref = jax.block_until_ready(ref)
    max_err = float(jnp.max(jnp.abs(out - ref)))
    assert max_err < 1e-4, max_err

    print("KERNEL_OK")
</pallas_src>

<mosaic_0001>
module attributes {stable_mosaic.version = 11 : i64} {
  func.func @_gru_model_kernel(%arg0: i32, %arg1: memref<8x8x16xf32, #tpu.memory_space<vmem>>, %arg2: memref<16x384xf32, #tpu.memory_space<vmem>>, %arg3: memref<1x128x384xf32, #tpu.memory_space<vmem>>, %arg4: memref<2x128x384xf32, #tpu.memory_space<vmem>>, %arg5: memref<2x1x384xf32, #tpu.memory_space<vmem>>, %arg6: memref<2x1x128xf32, #tpu.memory_space<vmem>>, %arg7: memref<128x128xf32, #tpu.memory_space<vmem>>, %arg8: memref<1x128xf32, #tpu.memory_space<vmem>>, %arg9: memref<8x128xf32, #tpu.memory_space<vmem>>, %arg10: memref<8x8x384xf32, #tpu.memory_space<vmem>>, %arg11: memref<8x8x128xf32, #tpu.memory_space<vmem>>) attributes {dimension_semantics = [#tpu.dimension_semantics<arbitrary>], iteration_bounds = array<i64: 1>, scalar_prefetch = 0 : i64, scratch_operands = 2 : i64, tpu.core_type = #tpu.core_type<tc>, window_params = [{pipeline_mode = #tpu.pipeline_mode<synchronous>, transform_indices = @transform_0, window_bounds = array<i64: 8, 8, 16>}, {pipeline_mode = #tpu.pipeline_mode<synchronous>, transform_indices = @transform_1, window_bounds = array<i64: 16, 384>}, {pipeline_mode = #tpu.pipeline_mode<synchronous>, transform_indices = @transform_2, window_bounds = array<i64: 1, 128, 384>}, {pipeline_mode = #tpu.pipeline_mode<synchronous>, transform_indices = @transform_3, window_bounds = array<i64: 2, 128, 384>}, {pipeline_mode = #tpu.pipeline_mode<synchronous>, transform_indices = @transform_4, window_bounds = array<i64: 2, 1, 384>}, {pipeline_mode = #tpu.pipeline_mode<synchronous>, transform_indices = @transform_5, window_bounds = array<i64: 2, 1, 128>}, {pipeline_mode = #tpu.pipeline_mode<synchronous>, transform_indices = @transform_6, window_bounds = array<i64: 128, 128>}, {pipeline_mode = #tpu.pipeline_mode<synchronous>, transform_indices = @transform_7, window_bounds = array<i64: 1, 128>}, {pipeline_mode = #tpu.pipeline_mode<synchronous>, transform_indices = @transform_8, window_bounds = array<i64: 8, 128>}]} {
    %c0 = arith.constant 0 : index
    %c0_0 = arith.constant 0 : index
    %c0_1 = arith.constant 0 : index
    %0 = vector.load %arg1[%c0, %c0_0, %c0_1] : memref<8x8x16xf32, #tpu.memory_space<vmem>>, vector<8x8x16xf32>
    %1 = vector.shape_cast %0 : vector<8x8x16xf32> to vector<64x16xf32>
    %c0_2 = arith.constant 0 : index
    %c0_3 = arith.constant 0 : index
    %2 = vector.load %arg2[%c0_2, %c0_3] : memref<16x384xf32, #tpu.memory_space<vmem>>, vector<16x384xf32>
    %cst = arith.constant dense<0.000000e+00> : vector<64x384xf32>
    %3 = tpu.matmul %1, %2, %cst {dimension_numbers = #tpu.dot_dimension_numbers<[1], [0], [0], [1], [0, 0, 1, 1], [], []>} : vector<64x16xf32>, vector<16x384xf32>, vector<64x384xf32> -> vector<64x384xf32>
    %c0_4 = arith.constant 0 : index
    %c0_5 = arith.constant 0 : index
    %c0_6 = arith.constant 0 : index
    %4 = vector.load %arg5[%c0_4, %c0_5, %c0_6] : memref<2x1x384xf32, #tpu.memory_space<vmem>>, vector<1x1x384xf32>
    %5 = vector.shape_cast %4 : vector<1x1x384xf32> to vector<1x384xf32>
    %6 = vector.broadcast %5 : vector<1x384xf32> to vector<64x384xf32>
    %7 = arith.addf %3, %6 : vector<64x384xf32>
    %8 = vector.shape_cast %7 : vector<64x384xf32> to vector<8x8x384xf32>
    %c0_7 = arith.constant 0 : index
    %c0_8 = arith.constant 0 : index
    %c0_9 = arith.constant 0 : index
    %9 = vector.load %arg10[%c0_7, %c0_8, %c0_9] : memref<8x8x384xf32, #tpu.memory_space<vmem>>, vector<8x8x384xf32>
    tpu.vector_store %arg10[%c0_7, %c0_8, %c0_9], %8 {strides = array<i32>} : memref<8x8x384xf32, #tpu.memory_space<vmem>>, vector<8x8x384xf32>,
    %c0_10 = arith.constant 0 : index
    %c0_11 = arith.constant 0 : index
    %c0_12 = arith.constant 0 : index
    %10 = vector.load %arg4[%c0_10, %c0_11, %c0_12] : memref<2x128x384xf32, #tpu.memory_space<vmem>>, vector<1x128x384xf32>
    %11 = vector.shape_cast %10 : vector<1x128x384xf32> to vector<128x384xf32>
    %c0_13 = arith.constant 0 : index
    %c0_14 = arith.constant 0 : index
    %c0_15 = arith.constant 0 : index
    %12 = vector.load %arg6[%c0_13, %c0_14, %c0_15] : memref<2x1x128xf32, #tpu.memory_space<vmem>>, vector<1x1x128xf32>
    %13 = vector.shape_cast %12 : vector<1x1x128xf32> to vector<1x128xf32>
    %14 = vector.shape_cast %13 : vector<1x128xf32> to vector<1x128xf32>
    %15 = vector.broadcast %14 : vector<1x128xf32> to vector<8x128xf32>
    %cst_16 = arith.constant 0.000000e+00 : f32
    %16 = vector.broadcast %cst_16 : f32 to vector<8x128xf32>
    %c0_i32 = arith.constant 0 : i32
    %17 = arith.index_cast %c0_i32 : i32 to index
    %c0_17 = arith.constant 0 : index
    %c0_18 = arith.constant 0 : index
    %18 = vector.load %arg10[%17, %c0_17, %c0_18] : memref<8x8x384xf32, #tpu.memory_space<vmem>>, vector<1x8x384xf32>
    %19 = vector.shape_cast %18 : vector<1x8x384xf32> to vector<8x384xf32>
    %cst_19 = arith.constant dense<0.000000e+00> : vector<8x384xf32>
    %20 = tpu.matmul %16, %11, %cst_19 {dimension_numbers = #tpu.dot_dimension_numbers<[1], [0], [0], [1], [0, 0, 1, 1], [], []>} : vector<8x128xf32>, vector<128x384xf32>, vector<8x384xf32> -> vector<8x384xf32>
    %21 = vector.extract_strided_slice %19 {offsets = [0, 0], sizes = [8, 128], strides = [1, 1]} : vector<8x384xf32> to vector<8x128xf32>
    %22 = vector.extract_strided_slice %20 {offsets = [0, 0], sizes = [8, 128], strides = [1, 1]} : vector<8x384xf32> to vector<8x128xf32>
    %23 = arith.addf %21, %22 : vector<8x128xf32>
    %24 = arith.negf %23 : vector<8x128xf32>
    %25 = math.exp %24 : vector<8x128xf32>
    %cst_20 = arith.constant 1.000000e+00 : f32
    %26 = vector.broadcast %cst_20 : f32 to vector<8x128xf32>
    %27 = arith.addf %26, %25 : vector<8x128xf32>
    %28 = arith.divf %26, %27 : vector<8x128xf32>
    %29 = vector.extract_strided_slice %19 {offsets = [0, 128], sizes = [8, 128], strides = [1, 1]} : vector<8x384xf32> to vector<8x128xf32>
    %30 = vector.extract_strided_slice %20 {offsets = [0, 128], sizes = [8, 128], strides = [1, 1]} : vector<8x384xf32> to vector<8x128xf32>
    %31 = arith.addf %29, %30 : vector<8x128xf32>
    %32 = arith.negf %31 : vector<8x128xf32>
    %33 = math.exp %32 : vector<8x128xf32>
    %cst_21 = arith.constant 1.000000e+00 : f32
    %34 = vector.broadcast %cst_21 : f32 to vector<8x128xf32>
    %35 = arith.addf %34, %33 : vector<8x128xf32>
    %36 = arith.divf %34, %35 : vector<8x128xf32>
    %37 = vector.extract_strided_slice %19 {offsets = [0, 256], sizes = [8, 128], strides = [1, 1]} : vector<8x384xf32> to vector<8x128xf32>
    %38 = vector.extract_strided_slice %20 {offsets = [0, 256], sizes = [8, 128], strides = [1, 1]} : vector<8x384xf32> to vector<8x128xf32>
    %39 = arith.addf %38, %15 : vector<8x128xf32>
    %40 = arith.mulf %28, %39 : vector<8x128xf32>
    %41 = arith.addf %37, %40 : vector<8x128xf32>
    %42 = math.tanh %41 : vector<8x128xf32>
    %43 = arith.subf %16, %42 : vector<8x128xf32>
    %44 = arith.mulf %36, %43 : vector<8x128xf32>
    %45 = arith.addf %42, %44 : vector<8x128xf32>
    %46 = arith.index_cast %c0_i32 : i32 to index
    %c0_22 = arith.constant 0 : index
    %c0_23 = arith.constant 0 : index
    %47 = vector.load %arg11[%46, %c0_22, %c0_23] : memref<8x8x128xf32, #tpu.memory_space<vmem>>, vector<1x8x128xf32>
    %48 = vector.shape_cast %47 : vector<1x8x128xf32> to vector<8x128xf32>
    %49 = vector.shape_cast %45 : vector<8x128xf32> to vector<1x8x128xf32>
    tpu.vector_store %arg11[%46, %c0_22, %c0_23], %49 {strides = array<i32>} : memref<8x8x128xf32, #tpu.memory_space<vmem>>, vector<1x8x128xf32>,
    %c1_i32 = arith.constant 1 : i32
    %50 = arith.index_cast %c1_i32 : i32 to index
    %c0_24 = arith.constant 0 : index
    %c0_25 = arith.constant 0 : index
    %51 = vector.load %arg10[%50, %c0_24, %c0_25] : memref<8x8x384xf32, #tpu.memory_space<vmem>>, vector<1x8x384xf32>
    %52 = vector.shape_cast %51 : vector<1x8x384xf32> to vector<8x384xf32>
    %cst_26 = arith.constant dense<0.000000e+00> : vector<8x384xf32>
    %53 = tpu.matmul %45, %11, %cst_26 {dimension_numbers = #tpu.dot_dimension_numbers<[1], [0], [0], [1], [0, 0, 1, 1], [], []>} : vector<8x128xf32>, vector<128x384xf32>, vector<8x384xf32> -> vector<8x384xf32>
    %54 = vector.extract_strided_slice %52 {offsets = [0, 0], sizes = [8, 128], strides = [1, 1]} : vector<8x384xf32> to vector<8x128xf32>
    %55 = vector.extract_strided_slice %53 {offsets = [0, 0], sizes = [8, 128], strides = [1, 1]} : vector<8x384xf32> to vector<8x128xf32>
    %56 = arith.addf %54, %55 : vector<8x128xf32>
    %57 = arith.negf %56 : vector<8x128xf32>
    %58 = math.exp %57 : vector<8x128xf32>
    %cst_27 = arith.constant 1.000000e+00 : f32
    %59 = vector.broadcast %cst_27 : f32 to vector<8x128xf32>
    %60 = arith.addf %59, %58 : vector<8x128xf32>
    %61 = arith.divf %59, %60 : vector<8x128xf32>
    %62 = vector.extract_strided_slice %52 {offsets = [0, 128], sizes = [8, 128], strides = [1, 1]} : vector<8x384xf32> to vector<8x128xf32>
    %63 = vector.extract_strided_slice %53 {offsets = [0, 128], sizes = [8, 128], strides = [1, 1]} : vector<8x384xf32> to vector<8x128xf32>
    %64 = arith.addf %62, %63 : vector<8x128xf32>
    %65 = arith.negf %64 : vector<8x128xf32>
    %66 = math.exp %65 : vector<8x128xf32>
    %cst_28 = arith.constant 1.000000e+00 : f32
    %67 = vector.broadcast %cst_28 : f32 to vector<8x128xf32>
    %68 = arith.addf %67, %66 : vector<8x128xf32>
    %69 = arith.divf %67, %68 : vector<8x128xf32>
    %70 = vector.extract_strided_slice %52 {offsets = [0, 256], sizes = [8, 128], strides = [1, 1]} : vector<8x384xf32> to vector<8x128xf32>
    %71 = vector.extract_strided_slice %53 {offsets = [0, 256], sizes = [8, 128], strides = [1, 1]} : vector<8x384xf32> to vector<8x128xf32>
    %72 = arith.addf %71, %15 : vector<8x128xf32>
    %73 = arith.mulf %61, %72 : vector<8x128xf32>
    %74 = arith.addf %70, %73 : vector<8x128xf32>
    %75 = math.tanh %74 : vector<8x128xf32>
    %76 = arith.subf %45, %75 : vector<8x128xf32>
    %77 = arith.mulf %69, %76 : vector<8x128xf32>
    %78 = arith.addf %75, %77 : vector<8x128xf32>
    %79 = arith.index_cast %c1_i32 : i32 to index
    %c0_29 = arith.constant 0 : index
    %c0_30 = arith.constant 0 : index
    %80 = vector.load %arg11[%79, %c0_29, %c0_30] : memref<8x8x128xf32, #tpu.memory_space<vmem>>, vector<1x8x128xf32>
    %81 = vector.shape_cast %80 : vector<1x8x128xf32> to vector<8x128xf32>
    %82 = vector.shape_cast %78 : vector<8x128xf32> to vector<1x8x128xf32>
    tpu.vector_store %arg11[%79, %c0_29, %c0_30], %82 {strides = array<i32>} : memref<8x8x128xf32, #tpu.memory_space<vmem>>, vector<1x8x128xf32>,
    %c2_i32 = arith.constant 2 : i32
    %83 = arith.index_cast %c2_i32 : i32 to index
    %c0_31 = arith.constant 0 : index
    %c0_32 = arith.constant 0 : index
    %84 = vector.load %arg10[%83, %c0_31, %c0_32] : memref<8x8x384xf32, #tpu.memory_space<vmem>>, vector<1x8x384xf32>
    %85 = vector.shape_cast %84 : vector<1x8x384xf32> to vector<8x384xf32>
    %cst_33 = arith.constant dense<0.000000e+00> : vector<8x384xf32>
    %86 = tpu.matmul %78, %11, %cst_33 {dimension_numbers = #tpu.dot_dimension_numbers<[1], [0], [0], [1], [0, 0, 1, 1], [], []>} : vector<8x128xf32>, vector<128x384xf32>, vector<8x384xf32> -> vector<8x384xf32>
    %87 = vector.extract_strided_slice %85 {offsets = [0, 0], sizes = [8, 128], strides = [1, 1]} : vector<8x384xf32> to vector<8x128xf32>
    %88 = vector.extract_strided_slice %86 {offsets = [0, 0], sizes = [8, 128], strides = [1, 1]} : vector<8x384xf32> to vector<8x128xf32>
    %89 = arith.addf %87, %88 : vector<8x128xf32>
    %90 = arith.negf %89 : vector<8x128xf32>
    %91 = math.exp %90 : vector<8x128xf32>
    %cst_34 = arith.constant 1.000000e+00 : f32
    %92 = vector.broadcast %cst_34 : f32 to vector<8x128xf32>
    %93 = arith.addf %92, %91 : vector<8x128xf32>
    %94 = arith.divf %92, %93 : vector<8x128xf32>
    %95 = vector.extract_strided_slice %85 {offsets = [0, 128], sizes = [8, 128], strides = [1, 1]} : vector<8x384xf32> to vector<8x128xf32>
    %96 = vector.extract_strided_slice %86 {offsets = [0, 128], sizes = [8, 128], strides = [1, 1]} : vector<8x384xf32> to vector<8x128xf32>
    %97 = arith.addf %95, %96 : vector<8x128xf32>
    %98 = arith.negf %97 : vector<8x128xf32>
    %99 = math.exp %98 : vector<8x128xf32>
    %cst_35 = arith.constant 1.000000e+00 : f32
    %100 = vector.broadcast %cst_35 : f32 to vector<8x128xf32>
    %101 = arith.addf %100, %99 : vector<8x128xf32>
    %102 = arith.divf %100, %101 : vector<8x128xf32>
    %103 = vector.extract_strided_slice %85 {offsets = [0, 256], sizes = [8, 128], strides = [1, 1]} : vector<8x384xf32> to vector<8x128xf32>
    %104 = vector.extract_strided_slice %86 {offsets = [0, 256], sizes = [8, 128], strides = [1, 1]} : vector<8x384xf32> to vector<8x128xf32>
    %105 = arith.addf %104, %15 : vector<8x128xf32>
    %106 = arith.mulf %94, %105 : vector<8x128xf32>
    %107 = arith.addf %103, %106 : vector<8x128xf32>
    %108 = math.tanh %107 : vector<8x128xf32>
    %109 = arith.subf %78, %108 : vector<8x128xf32>
    %110 = arith.mulf %102, %109 : vector<8x128xf32>
    %111 = arith.addf %108, %110 : vector<8x128xf32>
    %112 = arith.index_cast %c2_i32 : i32 to index
    %c0_36 = arith.constant 0 : index
    %c0_37 = arith.constant 0 : index
    %113 = vector.load %arg11[%112, %c0_36, %c0_37] : memref<8x8x128xf32, #tpu.memory_space<vmem>>, vector<1x8x128xf32>
    %114 = vector.shape_cast %113 : vector<1x8x128xf32> to vector<8x128xf32>
    %115 = vector.shape_cast %111 : vector<8x128xf32> to vector<1x8x128xf32>
    tpu.vector_store %arg11[%112, %c0_36, %c0_37], %115 {strides = array<i32>} : memref<8x8x128xf32, #tpu.memory_space<vmem>>, vector<1x8x128xf32>,
    %c3_i32 = arith.constant 3 : i32
    %116 = arith.index_cast %c3_i32 : i32 to index
    %c0_38 = arith.constant 0 : index
    %c0_39 = arith.constant 0 : index
    %117 = vector.load %arg10[%116, %c0_38, %c0_39] : memref<8x8x384xf32, #tpu.memory_space<vmem>>, vector<1x8x384xf32>
    %118 = vector.shape_cast %117 : vector<1x8x384xf32> to vector<8x384xf32>
    %cst_40 = arith.constant dense<0.000000e+00> : vector<8x384xf32>
    %119 = tpu.matmul %111, %11, %cst_40 {dimension_numbers = #tpu.dot_dimension_numbers<[1], [0], [0], [1], [0, 0, 1, 1], [], []>} : vector<8x128xf32>, vector<128x384xf32>, vector<8x384xf32> -> vector<8x384xf32>
    %120 = vector.extract_strided_slice %118 {offsets = [0, 0], sizes = [8, 128], strides = [1, 1]} : vector<8x384xf32> to vector<8x128xf32>
    %121 = vector.extract_strided_slice %119 {offsets = [0, 0], sizes = [8, 128], strides = [1, 1]} : vector<8x384xf32> to vector<8x128xf32>
    %122 = arith.addf %120, %121 : vector<8x128xf32>
    %123 = arith.negf %122 : vector<8x128xf32>
    %124 = math.exp %123 : vector<8x128xf32>
    %cst_41 = arith.constant 1.000000e+00 : f32
    %125 = vector.broadcast %cst_41 : f32 to vector<8x128xf32>
    %126 = arith.addf %125, %124 : vector<8x128xf32>
    %127 = arith.divf %125, %126 : vector<8x128xf32>
    %128 = vector.extract_strided_slice %118 {offsets = [0, 128], sizes = [8, 128], strides = [1, 1]} : vector<8x384xf32> to vector<8x128xf32>
    %129 = vector.extract_strided_slice %119 {offsets = [0, 128], sizes = [8, 128], strides = [1, 1]} : vector<8x384xf32> to vector<8x128xf32>
    %130 = arith.addf %128, %129 : vector<8x128xf32>
    %131 = arith.negf %130 : vector<8x128xf32>
    %132 = math.exp %131 : vector<8x128xf32>
    %cst_42 = arith.constant 1.000000e+00 : f32
    %133 = vector.broadcast %cst_42 : f32 to vector<8x128xf32>
    %134 = arith.addf %133, %132 : vector<8x128xf32>
    %135 = arith.divf %133, %134 : vector<8x128xf32>
    %136 = vector.extract_strided_slice %118 {offsets = [0, 256], sizes = [8, 128], strides = [1, 1]} : vector<8x384xf32> to vector<8x128xf32>
    %137 = vector.extract_strided_slice %119 {offsets = [0, 256], sizes = [8, 128], strides = [1, 1]} : vector<8x384xf32> to vector<8x128xf32>
    %138 = arith.addf %137, %15 : vector<8x128xf32>
    %139 = arith.mulf %127, %138 : vector<8x128xf32>
    %140 = arith.addf %136, %139 : vector<8x128xf32>
    %141 = math.tanh %140 : vector<8x128xf32>
    %142 = arith.subf %111, %141 : vector<8x128xf32>
    %143 = arith.mulf %135, %142 : vector<8x128xf32>
    %144 = arith.addf %141, %143 : vector<8x128xf32>
    %145 = arith.index_cast %c3_i32 : i32 to index
    %c0_43 = arith.constant 0 : index
    %c0_44 = arith.constant 0 : index
    %146 = vector.load %arg11[%145, %c0_43, %c0_44] : memref<8x8x128xf32, #tpu.memory_space<vmem>>, vector<1x8x128xf32>
    %147 = vector.shape_cast %146 : vector<1x8x128xf32> to vector<8x128xf32>
    %148 = vector.shape_cast %144 : vector<8x128xf32> to vector<1x8x128xf32>
    tpu.vector_store %arg11[%145, %c0_43, %c0_44], %148 {strides = array<i32>} : memref<8x8x128xf32, #tpu.memory_space<vmem>>, vector<1x8x128xf32>,
    %c4_i32 = arith.constant 4 : i32
    %149 = arith.index_cast %c4_i32 : i32 to index
    %c0_45 = arith.constant 0 : index
    %c0_46 = arith.constant 0 : index
    %150 = vector.load %arg10[%149, %c0_45, %c0_46] : memref<8x8x384xf32, #tpu.memory_space<vmem>>, vector<1x8x384xf32>
    %151 = vector.shape_cast %150 : vector<1x8x384xf32> to vector<8x384xf32>
    %cst_47 = arith.constant dense<0.000000e+00> : vector<8x384xf32>
    %152 = tpu.matmul %144, %11, %cst_47 {dimension_numbers = #tpu.dot_dimension_numbers<[1], [0], [0], [1], [0, 0, 1, 1], [], []>} : vector<8x128xf32>, vector<128x384xf32>, vector<8x384xf32> -> vector<8x384xf32>
    %153 = vector.extract_strided_slice %151 {offsets = [0, 0], sizes = [8, 128], strides = [1, 1]} : vector<8x384xf32> to vector<8x128xf32>
    %154 = vector.extract_strided_slice %152 {offsets = [0, 0], sizes = [8, 128], strides = [1, 1]} : vector<8x384xf32> to vector<8x128xf32>
    %155 = arith.addf %153, %154 : vector<8x128xf32>
    %156 = arith.negf %155 : vector<8x128xf32>
    %157 = math.exp %156 : vector<8x128xf32>
    %cst_48 = arith.constant 1.000000e+00 : f32
    %158 = vector.broadcast %cst_48 : f32 to vector<8x128xf32>
    %159 = arith.addf %158, %157 : vector<8x128xf32>
    %160 = arith.divf %158, %159 : vector<8x128xf32>
    %161 = vector.extract_strided_slice %151 {offsets = [0, 128], sizes = [8, 128], strides = [1, 1]} : vector<8x384xf32> to vector<8x128xf32>
    %162 = vector.extract_strided_slice %152 {offsets = [0, 128], sizes = [8, 128], strides = [1, 1]} : vector<8x384xf32> to vector<8x128xf32>
    %163 = arith.addf %161, %162 : vector<8x128xf32>
    %164 = arith.negf %163 : vector<8x128xf32>
    %165 = math.exp %164 : vector<8x128xf32>
    %cst_49 = arith.constant 1.000000e+00 : f32
    %166 = vector.broadcast %cst_49 : f32 to vector<8x128xf32>
    %167 = arith.addf %166, %165 : vector<8x128xf32>
    %168 = arith.divf %166, %167 : vector<8x128xf32>
    %169 = vector.extract_strided_slice %151 {offsets = [0, 256], sizes = [8, 128], strides = [1, 1]} : vector<8x384xf32> to vector<8x128xf32>
    %170 = vector.extract_strided_slice %152 {offsets = [0, 256], sizes = [8, 128], strides = [1, 1]} : vector<8x384xf32> to vector<8x128xf32>
    %171 = arith.addf %170, %15 : vector<8x128xf32>
    %172 = arith.mulf %160, %171 : vector<8x128xf32>
    %173 = arith.addf %169, %172 : vector<8x128xf32>
    %174 = math.tanh %173 : vector<8x128xf32>
    %175 = arith.subf %144, %174 : vector<8x128xf32>
    %176 = arith.mulf %168, %175 : vector<8x128xf32>
    %177 = arith.addf %174, %176 : vector<8x128xf32>
    %178 = arith.index_cast %c4_i32 : i32 to index
    %c0_50 = arith.constant 0 : index
    %c0_51 = arith.constant 0 : index
    %179 = vector.load %arg11[%178, %c0_50, %c0_51] : memref<8x8x128xf32, #tpu.memory_space<vmem>>, vector<1x8x128xf32>
    %180 = vector.shape_cast %179 : vector<1x8x128xf32> to vector<8x128xf32>
    %181 = vector.shape_cast %177 : vector<8x128xf32> to vector<1x8x128xf32>
    tpu.vector_store %arg11[%178, %c0_50, %c0_51], %181 {strides = array<i32>} : memref<8x8x128xf32, #tpu.memory_space<vmem>>, vector<1x8x128xf32>,
    %c5_i32 = arith.constant 5 : i32
    %182 = arith.index_cast %c5_i32 : i32 to index
    %c0_52 = arith.constant 0 : index
    %c0_53 = arith.constant 0 : index
    %183 = vector.load %arg10[%182, %c0_52, %c0_53] : memref<8x8x384xf32, #tpu.memory_space<vmem>>, vector<1x8x384xf32>
    %184 = vector.shape_cast %183 : vector<1x8x384xf32> to vector<8x384xf32>
    %cst_54 = arith.constant dense<0.000000e+00> : vector<8x384xf32>
    %185 = tpu.matmul %177, %11, %cst_54 {dimension_numbers = #tpu.dot_dimension_numbers<[1], [0], [0], [1], [0, 0, 1, 1], [], []>} : vector<8x128xf32>, vector<128x384xf32>, vector<8x384xf32> -> vector<8x384xf32>
    %186 = vector.extract_strided_slice %184 {offsets = [0, 0], sizes = [8, 128], strides = [1, 1]} : vector<8x384xf32> to vector<8x128xf32>
    %187 = vector.extract_strided_slice %185 {offsets = [0, 0], sizes = [8, 128], strides = [1, 1]} : vector<8x384xf32> to vector<8x128xf32>
    %188 = arith.addf %186, %187 : vector<8x128xf32>
    %189 = arith.negf %188 : vector<8x128xf32>
    %190 = math.exp %189 : vector<8x128xf32>
    %cst_55 = arith.constant 1.000000e+00 : f32
    %191 = vector.broadcast %cst_55 : f32 to vector<8x128xf32>
    %192 = arith.addf %191, %190 : vector<8x128xf32>
    %193 = arith.divf %191, %192 : vector<8x128xf32>
    %194 = vector.extract_strided_slice %184 {offsets = [0, 128], sizes = [8, 128], strides = [1, 1]} : vector<8x384xf32> to vector<8x128xf32>
    %195 = vector.extract_strided_slice %185 {offsets = [0, 128], sizes = [8, 128], strides = [1, 1]} : vector<8x384xf32> to vector<8x128xf32>
    %196 = arith.addf %194, %195 : vector<8x128xf32>
    %197 = arith.negf %196 : vector<8x128xf32>
    %198 = math.exp %197 : vector<8x128xf32>
    %cst_56 = arith.constant 1.000000e+00 : f32
    %199 = vector.broadcast %cst_56 : f32 to vector<8x128xf32>
    %200 = arith.addf %199, %198 : vector<8x128xf32>
    %201 = arith.divf %199, %200 : vector<8x128xf32>
    %202 = vector.extract_strided_slice %184 {offsets = [0, 256], sizes = [8, 128], strides = [1, 1]} : vector<8x384xf32> to vector<8x128xf32>
    %203 = vector.extract_strided_slice %185 {offsets = [0, 256], sizes = [8, 128], strides = [1, 1]} : vector<8x384xf32> to vector<8x128xf32>
    %204 = arith.addf %203, %15 : vector<8x128xf32>
    %205 = arith.mulf %193, %204 : vector<8x128xf32>
    %206 = arith.addf %202, %205 : vector<8x128xf32>
    %207 = math.tanh %206 : vector<8x128xf32>
    %208 = arith.subf %177, %207 : vector<8x128xf32>
    %209 = arith.mulf %201, %208 : vector<8x128xf32>
    %210 = arith.addf %207, %209 : vector<8x128xf32>
    %211 = arith.index_cast %c5_i32 : i32 to index
    %c0_57 = arith.constant 0 : index
    %c0_58 = arith.constant 0 : index
    %212 = vector.load %arg11[%211, %c0_57, %c0_58] : memref<8x8x128xf32, #tpu.memory_space<vmem>>, vector<1x8x128xf32>
    %213 = vector.shape_cast %212 : vector<1x8x128xf32> to vector<8x128xf32>
    %214 = vector.shape_cast %210 : vector<8x128xf32> to vector<1x8x128xf32>
    tpu.vector_store %arg11[%211, %c0_57, %c0_58], %214 {strides = array<i32>} : memref<8x8x128xf32, #tpu.memory_space<vmem>>, vector<1x8x128xf32>,
    %c6_i32 = arith.constant 6 : i32
    %215 = arith.index_cast %c6_i32 : i32 to index
    %c0_59 = arith.constant 0 : index
    %c0_60 = arith.constant 0 : index
    %216 = vector.load %arg10[%215, %c0_59, %c0_60] : memref<8x8x384xf32, #tpu.memory_space<vmem>>, vector<1x8x384xf32>
    %217 = vector.shape_cast %216 : vector<1x8x384xf32> to vector<8x384xf32>
    %cst_61 = arith.constant dense<0.000000e+00> : vector<8x384xf32>
    %218 = tpu.matmul %210, %11, %cst_61 {dimension_numbers = #tpu.dot_dimension_numbers<[1], [0], [0], [1], [0, 0, 1, 1], [], []>} : vector<8x128xf32>, vector<128x384xf32>, vector<8x384xf32> -> vector<8x384xf32>
    %219 = vector.extract_strided_slice %217 {offsets = [0, 0], sizes = [8, 128], strides = [1, 1]} : vector<8x384xf32> to vector<8x128xf32>
    %220 = vector.extract_strided_slice %218 {offsets = [0, 0], sizes = [8, 128], strides = [1, 1]} : vector<8x384xf32> to vector<8x128xf32>
    %221 = arith.addf %219, %220 : vector<8x128xf32>
    %222 = arith.negf %221 : vector<8x128xf32>
    %223 = math.exp %222 : vector<8x128xf32>
    %cst_62 = arith.constant 1.000000e+00 : f32
    %224 = vector.broadcast %cst_62 : f32 to vector<8x128xf32>
    %225 = arith.addf %224, %223 : vector<8x128xf32>
    %226 = arith.divf %224, %225 : vector<8x128xf32>
    %227 = vector.extract_strided_slice %217 {offsets = [0, 128], sizes = [8, 128], strides = [1, 1]} : vector<8x384xf32> to vector<8x128xf32>
    %228 = vector.extract_strided_slice %218 {offsets = [0, 128], sizes = [8, 128], strides = [1, 1]} : vector<8x384xf32> to vector<8x128xf32>
    %229 = arith.addf %227, %228 : vector<8x128xf32>
    %230 = arith.negf %229 : vector<8x128xf32>
    %231 = math.exp %230 : vector<8x128xf32>
    %cst_63 = arith.constant 1.000000e+00 : f32
    %232 = vector.broadcast %cst_63 : f32 to vector<8x128xf32>
    %233 = arith.addf %232, %231 : vector<8x128xf32>
    %234 = arith.divf %232, %233 : vector<8x128xf32>
    %235 = vector.extract_strided_slice %217 {offsets = [0, 256], sizes = [8, 128], strides = [1, 1]} : vector<8x384xf32> to vector<8x128xf32>
    %236 = vector.extract_strided_slice %218 {offsets = [0, 256], sizes = [8, 128], strides = [1, 1]} : vector<8x384xf32> to vector<8x128xf32>
    %237 = arith.addf %236, %15 : vector<8x128xf32>
    %238 = arith.mulf %226, %237 : vector<8x128xf32>
    %239 = arith.addf %235, %238 : vector<8x128xf32>
    %240 = math.tanh %239 : vector<8x128xf32>
    %241 = arith.subf %210, %240 : vector<8x128xf32>
    %242 = arith.mulf %234, %241 : vector<8x128xf32>
    %243 = arith.addf %240, %242 : vector<8x128xf32>
    %244 = arith.index_cast %c6_i32 : i32 to index
    %c0_64 = arith.constant 0 : index
    %c0_65 = arith.constant 0 : index
    %245 = vector.load %arg11[%244, %c0_64, %c0_65] : memref<8x8x128xf32, #tpu.memory_space<vmem>>, vector<1x8x128xf32>
    %246 = vector.shape_cast %245 : vector<1x8x128xf32> to vector<8x128xf32>
    %247 = vector.shape_cast %243 : vector<8x128xf32> to vector<1x8x128xf32>
    tpu.vector_store %arg11[%244, %c0_64, %c0_65], %247 {strides = array<i32>} : memref<8x8x128xf32, #tpu.memory_space<vmem>>, vector<1x8x128xf32>,
    %c7_i32 = arith.constant 7 : i32
    %248 = arith.index_cast %c7_i32 : i32 to index
    %c0_66 = arith.constant 0 : index
    %c0_67 = arith.constant 0 : index
    %249 = vector.load %arg10[%248, %c0_66, %c0_67] : memref<8x8x384xf32, #tpu.memory_space<vmem>>, vector<1x8x384xf32>
    %250 = vector.shape_cast %249 : vector<1x8x384xf32> to vector<8x384xf32>
    %cst_68 = arith.constant dense<0.000000e+00> : vector<8x384xf32>
    %251 = tpu.matmul %243, %11, %cst_68 {dimension_numbers = #tpu.dot_dimension_numbers<[1], [0], [0], [1], [0, 0, 1, 1], [], []>} : vector<8x128xf32>, vector<128x384xf32>, vector<8x384xf32> -> vector<8x384xf32>
    %252 = vector.extract_strided_slice %250 {offsets = [0, 0], sizes = [8, 128], strides = [1, 1]} : vector<8x384xf32> to vector<8x128xf32>
    %253 = vector.extract_strided_slice %251 {offsets = [0, 0], sizes = [8, 128], strides = [1, 1]} : vector<8x384xf32> to vector<8x128xf32>
    %254 = arith.addf %252, %253 : vector<8x128xf32>
    %255 = arith.negf %254 : vector<8x128xf32>
    %256 = math.exp %255 : vector<8x128xf32>
    %cst_69 = arith.constant 1.000000e+00 : f32
    %257 = vector.broadcast %cst_69 : f32 to vector<8x128xf32>
    %258 = arith.addf %257, %256 : vector<8x128xf32>
    %259 = arith.divf %257, %258 : vector<8x128xf32>
    %260 = vector.extract_strided_slice %250 {offsets = [0, 128], sizes = [8, 128], strides = [1, 1]} : vector<8x384xf32> to vector<8x128xf32>
    %261 = vector.extract_strided_slice %251 {offsets = [0, 128], sizes = [8, 128], strides = [1, 1]} : vector<8x384xf32> to vector<8x128xf32>
    %262 = arith.addf %260, %261 : vector<8x128xf32>
    %263 = arith.negf %262 : vector<8x128xf32>
    %264 = math.exp %263 : vector<8x128xf32>
    %cst_70 = arith.constant 1.000000e+00 : f32
    %265 = vector.broadcast %cst_70 : f32 to vector<8x128xf32>
    %266 = arith.addf %265, %264 : vector<8x128xf32>
    %267 = arith.divf %265, %266 : vector<8x128xf32>
    %268 = vector.extract_strided_slice %250 {offsets = [0, 256], sizes = [8, 128], strides = [1, 1]} : vector<8x384xf32> to vector<8x128xf32>
    %269 = vector.extract_strided_slice %251 {offsets = [0, 256], sizes = [8, 128], strides = [1, 1]} : vector<8x384xf32> to vector<8x128xf32>
    %270 = arith.addf %269, %15 : vector<8x128xf32>
    %271 = arith.mulf %259, %270 : vector<8x128xf32>
    %272 = arith.addf %268, %271 : vector<8x128xf32>
    %273 = math.tanh %272 : vector<8x128xf32>
    %274 = arith.subf %243, %273 : vector<8x128xf32>
    %275 = arith.mulf %267, %274 : vector<8x128xf32>
    %276 = arith.addf %273, %275 : vector<8x128xf32>
    %277 = arith.index_cast %c7_i32 : i32 to index
    %c0_71 = arith.constant 0 : index
    %c0_72 = arith.constant 0 : index
    %278 = vector.load %arg11[%277, %c0_71, %c0_72] : memref<8x8x128xf32, #tpu.memory_space<vmem>>, vector<1x8x128xf32>
    %279 = vector.shape_cast %278 : vector<1x8x128xf32> to vector<8x128xf32>
    %280 = vector.shape_cast %276 : vector<8x128xf32> to vector<1x8x128xf32>
    tpu.vector_store %arg11[%277, %c0_71, %c0_72], %280 {strides = array<i32>} : memref<8x8x128xf32, #tpu.memory_space<vmem>>, vector<1x8x128xf32>,
    %c8_i32 = arith.constant 8 : i32
    %c0_73 = arith.constant 0 : index
    %c0_74 = arith.constant 0 : index
    %c0_75 = arith.constant 0 : index
    %281 = vector.load %arg11[%c0_73, %c0_74, %c0_75] : memref<8x8x128xf32, #tpu.memory_space<vmem>>, vector<8x8x128xf32>
    %282 = vector.shape_cast %281 : vector<8x8x128xf32> to vector<64x128xf32>
    %c0_76 = arith.constant 0 : index
    %c0_77 = arith.constant 0 : index
    %c0_78 = arith.constant 0 : index
    %283 = vector.load %arg3[%c0_76, %c0_77, %c0_78] : memref<1x128x384xf32, #tpu.memory_space<vmem>>, vector<1x128x384xf32>
    %284 = vector.shape_cast %283 : vector<1x128x384xf32> to vector<128x384xf32>
    %cst_79 = arith.constant dense<0.000000e+00> : vector<64x384xf32>
    %285 = tpu.matmul %282, %284, %cst_79 {dimension_numbers = #tpu.dot_dimension_numbers<[1], [0], [0], [1], [0, 0, 1, 1], [], []>} : vector<64x128xf32>, vector<128x384xf32>, vector<64x384xf32> -> vector<64x384xf32>
    %c1 = arith.constant 1 : index
    %c0_80 = arith.constant 0 : index
    %c0_81 = arith.constant 0 : index
    %286 = vector.load %arg5[%c1, %c0_80, %c0_81] : memref<2x1x384xf32, #tpu.memory_space<vmem>>, vector<1x1x384xf32>
    %287 = vector.shape_cast %286 : vector<1x1x384xf32> to vector<1x384xf32>
    %288 = vector.broadcast %287 : vector<1x384xf32> to vector<64x384xf32>
    %289 = arith.addf %285, %288 : vector<64x384xf32>
    %290 = vector.shape_cast %289 : vector<64x384xf32> to vector<8x8x384xf32>
    %c0_82 = arith.constant 0 : index
    %c0_83 = arith.constant 0 : index
    %c0_84 = arith.constant 0 : index
    %291 = vector.load %arg10[%c0_82, %c0_83, %c0_84] : memref<8x8x384xf32, #tpu.memory_space<vmem>>, vector<8x8x384xf32>
    tpu.vector_store %arg10[%c0_82, %c0_83, %c0_84], %290 {strides = array<i32>} : memref<8x8x384xf32, #tpu.memory_space<vmem>>, vector<8x8x384xf32>,
    %c1_85 = arith.constant 1 : index
    %c0_86 = arith.constant 0 : index
    %c0_87 = arith.constant 0 : index
    %292 = vector.load %arg4[%c1_85, %c0_86, %c0_87] : memref<2x128x384xf32, #tpu.memory_space<vmem>>, vector<1x128x384xf32>
    %293 = vector.shape_cast %292 : vector<1x128x384xf32> to vector<128x384xf32>
    %c1_88 = arith.constant 1 : index
    %c0_89 = arith.constant 0 : index
    %c0_90 = arith.constant 0 : index
    %294 = vector.load %arg6[%c1_88, %c0_89, %c0_90] : memref<2x1x128xf32, #tpu.memory_space<vmem>>, vector<1x1x128xf32>
    %295 = vector.shape_cast %294 : vector<1x1x128xf32> to vector<1x128xf32>
    %296 = vector.shape_cast %295 : vector<1x128xf32> to vector<1x128xf32>
    %297 = vector.broadcast %296 : vector<1x128xf32> to vector<8x128xf32>
    %cst_91 = arith.constant 0.000000e+00 : f32
    %298 = vector.broadcast %cst_91 : f32 to vector<8x128xf32>
    %c0_i32_92 = arith.constant 0 : i32
    %299 = arith.index_cast %c0_i32_92 : i32 to index
    %c0_93 = arith.constant 0 : index
    %c0_94 = arith.constant 0 : index
    %300 = vector.load %arg10[%299, %c0_93, %c0_94] : memref<8x8x384xf32, #tpu.memory_space<vmem>>, vector<1x8x384xf32>
    %301 = vector.shape_cast %300 : vector<1x8x384xf32> to vector<8x384xf32>
    %cst_95 = arith.constant dense<0.000000e+00> : vector<8x384xf32>
    %302 = tpu.matmul %298, %293, %cst_95 {dimension_numbers = #tpu.dot_dimension_numbers<[1], [0], [0], [1], [0, 0, 1, 1], [], []>} : vector<8x128xf32>, vector<128x384xf32>, vector<8x384xf32> -> vector<8x384xf32>
    %303 = vector.extract_strided_slice %301 {offsets = [0, 0], sizes = [8, 128], strides = [1, 1]} : vector<8x384xf32> to vector<8x128xf32>
    %304 = vector.extract_strided_slice %302 {offsets = [0, 0], sizes = [8, 128], strides = [1, 1]} : vector<8x384xf32> to vector<8x128xf32>
    %305 = arith.addf %303, %304 : vector<8x128xf32>
    %306 = arith.negf %305 : vector<8x128xf32>
    %307 = math.exp %306 : vector<8x128xf32>
    %cst_96 = arith.constant 1.000000e+00 : f32
    %308 = vector.broadcast %cst_96 : f32 to vector<8x128xf32>
    %309 = arith.addf %308, %307 : vector<8x128xf32>
    %310 = arith.divf %308, %309 : vector<8x128xf32>
    %311 = vector.extract_strided_slice %301 {offsets = [0, 128], sizes = [8, 128], strides = [1, 1]} : vector<8x384xf32> to vector<8x128xf32>
    %312 = vector.extract_strided_slice %302 {offsets = [0, 128], sizes = [8, 128], strides = [1, 1]} : vector<8x384xf32> to vector<8x128xf32>
    %313 = arith.addf %311, %312 : vector<8x128xf32>
    %314 = arith.negf %313 : vector<8x128xf32>
    %315 = math.exp %314 : vector<8x128xf32>
    %cst_97 = arith.constant 1.000000e+00 : f32
    %316 = vector.broadcast %cst_97 : f32 to vector<8x128xf32>
    %317 = arith.addf %316, %315 : vector<8x128xf32>
    %318 = arith.divf %316, %317 : vector<8x128xf32>
    %319 = vector.extract_strided_slice %301 {offsets = [0, 256], sizes = [8, 128], strides = [1, 1]} : vector<8x384xf32> to vector<8x128xf32>
    %320 = vector.extract_strided_slice %302 {offsets = [0, 256], sizes = [8, 128], strides = [1, 1]} : vector<8x384xf32> to vector<8x128xf32>
    %321 = arith.addf %320, %297 : vector<8x128xf32>
    %322 = arith.mulf %310, %321 : vector<8x128xf32>
    %323 = arith.addf %319, %322 : vector<8x128xf32>
    %324 = math.tanh %323 : vector<8x128xf32>
    %325 = arith.subf %298, %324 : vector<8x128xf32>
    %326 = arith.mulf %318, %325 : vector<8x128xf32>
    %327 = arith.addf %324, %326 : vector<8x128xf32>
    %c1_i32_98 = arith.constant 1 : i32
    %328 = arith.index_cast %c1_i32_98 : i32 to index
    %c0_99 = arith.constant 0 : index
    %c0_100 = arith.constant 0 : index
    %329 = vector.load %arg10[%328, %c0_99, %c0_100] : memref<8x8x384xf32, #tpu.memory_space<vmem>>, vector<1x8x384xf32>
    %330 = vector.shape_cast %329 : vector<1x8x384xf32> to vector<8x384xf32>
    %cst_101 = arith.constant dense<0.000000e+00> : vector<8x384xf32>
    %331 = tpu.matmul %327, %293, %cst_101 {dimension_numbers = #tpu.dot_dimension_numbers<[1], [0], [0], [1], [0, 0, 1, 1], [], []>} : vector<8x128xf32>, vector<128x384xf32>, vector<8x384xf32> -> vector<8x384xf32>
    %332 = vector.extract_strided_slice %330 {offsets = [0, 0], sizes = [8, 128], strides = [1, 1]} : vector<8x384xf32> to vector<8x128xf32>
    %333 = vector.extract_strided_slice %331 {offsets = [0, 0], sizes = [8, 128], strides = [1, 1]} : vector<8x384xf32> to vector<8x128xf32>
    %334 = arith.addf %332, %333 : vector<8x128xf32>
    %335 = arith.negf %334 : vector<8x128xf32>
    %336 = math.exp %335 : vector<8x128xf32>
    %cst_102 = arith.constant 1.000000e+00 : f32
    %337 = vector.broadcast %cst_102 : f32 to vector<8x128xf32>
    %338 = arith.addf %337, %336 : vector<8x128xf32>
    %339 = arith.divf %337, %338 : vector<8x128xf32>
    %340 = vector.extract_strided_slice %330 {offsets = [0, 128], sizes = [8, 128], strides = [1, 1]} : vector<8x384xf32> to vector<8x128xf32>
    %341 = vector.extract_strided_slice %331 {offsets = [0, 128], sizes = [8, 128], strides = [1, 1]} : vector<8x384xf32> to vector<8x128xf32>
    %342 = arith.addf %340, %341 : vector<8x128xf32>
    %343 = arith.negf %342 : vector<8x128xf32>
    %344 = math.exp %343 : vector<8x128xf32>
    %cst_103 = arith.constant 1.000000e+00 : f32
    %345 = vector.broadcast %cst_103 : f32 to vector<8x128xf32>
    %346 = arith.addf %345, %344 : vector<8x128xf32>
    %347 = arith.divf %345, %346 : vector<8x128xf32>
    %348 = vector.extract_strided_slice %330 {offsets = [0, 256], sizes = [8, 128], strides = [1, 1]} : vector<8x384xf32> to vector<8x128xf32>
    %349 = vector.extract_strided_slice %331 {offsets = [0, 256], sizes = [8, 128], strides = [1, 1]} : vector<8x384xf32> to vector<8x128xf32>
    %350 = arith.addf %349, %297 : vector<8x128xf32>
    %351 = arith.mulf %339, %350 : vector<8x128xf32>
    %352 = arith.addf %348, %351 : vector<8x128xf32>
    %353 = math.tanh %352 : vector<8x128xf32>
    %354 = arith.subf %327, %353 : vector<8x128xf32>
    %355 = arith.mulf %347, %354 : vector<8x128xf32>
    %356 = arith.addf %353, %355 : vector<8x128xf32>
    %c2_i32_104 = arith.constant 2 : i32
    %357 = arith.index_cast %c2_i32_104 : i32 to index
    %c0_105 = arith.constant 0 : index
    %c0_106 = arith.constant 0 : index
    %358 = vector.load %arg10[%357, %c0_105, %c0_106] : memref<8x8x384xf32, #tpu.memory_space<vmem>>, vector<1x8x384xf32>
    %359 = vector.shape_cast %358 : vector<1x8x384xf32> to vector<8x384xf32>
    %cst_107 = arith.constant dense<0.000000e+00> : vector<8x384xf32>
    %360 = tpu.matmul %356, %293, %cst_107 {dimension_numbers = #tpu.dot_dimension_numbers<[1], [0], [0], [1], [0, 0, 1, 1], [], []>} : vector<8x128xf32>, vector<128x384xf32>, vector<8x384xf32> -> vector<8x384xf32>
    %361 = vector.extract_strided_slice %359 {offsets = [0, 0], sizes = [8, 128], strides = [1, 1]} : vector<8x384xf32> to vector<8x128xf32>
    %362 = vector.extract_strided_slice %360 {offsets = [0, 0], sizes = [8, 128], strides = [1, 1]} : vector<8x384xf32> to vector<8x128xf32>
    %363 = arith.addf %361, %362 : vector<8x128xf32>
    %364 = arith.negf %363 : vector<8x128xf32>
    %365 = math.exp %364 : vector<8x128xf32>
    %cst_108 = arith.constant 1.000000e+00 : f32
    %366 = vector.broadcast %cst_108 : f32 to vector<8x128xf32>
    %367 = arith.addf %366, %365 : vector<8x128xf32>
    %368 = arith.divf %366, %367 : vector<8x128xf32>
    %369 = vector.extract_strided_slice %359 {offsets = [0, 128], sizes = [8, 128], strides = [1, 1]} : vector<8x384xf32> to vector<8x128xf32>
    %370 = vector.extract_strided_slice %360 {offsets = [0, 128], sizes = [8, 128], strides = [1, 1]} : vector<8x384xf32> to vector<8x128xf32>
    %371 = arith.addf %369, %370 : vector<8x128xf32>
    %372 = arith.negf %371 : vector<8x128xf32>
    %373 = math.exp %372 : vector<8x128xf32>
    %cst_109 = arith.constant 1.000000e+00 : f32
    %374 = vector.broadcast %cst_109 : f32 to vector<8x128xf32>
    %375 = arith.addf %374, %373 : vector<8x128xf32>
    %376 = arith.divf %374, %375 : vector<8x128xf32>
    %377 = vector.extract_strided_slice %359 {offsets = [0, 256], sizes = [8, 128], strides = [1, 1]} : vector<8x384xf32> to vector<8x128xf32>
    %378 = vector.extract_strided_slice %360 {offsets = [0, 256], sizes = [8, 128], strides = [1, 1]} : vector<8x384xf32> to vector<8x128xf32>
    %379 = arith.addf %378, %297 : vector<8x128xf32>
    %380 = arith.mulf %368, %379 : vector<8x128xf32>
    %381 = arith.addf %377, %380 : vector<8x128xf32>
    %382 = math.tanh %381 : vector<8x128xf32>
    %383 = arith.subf %356, %382 : vector<8x128xf32>
    %384 = arith.mulf %376, %383 : vector<8x128xf32>
    %385 = arith.addf %382, %384 : vector<8x128xf32>
    %c3_i32_110 = arith.constant 3 : i32
    %386 = arith.index_cast %c3_i32_110 : i32 to index
    %c0_111 = arith.constant 0 : index
    %c0_112 = arith.constant 0 : index
    %387 = vector.load %arg10[%386, %c0_111, %c0_112] : memref<8x8x384xf32, #tpu.memory_space<vmem>>, vector<1x8x384xf32>
    %388 = vector.shape_cast %387 : vector<1x8x384xf32> to vector<8x384xf32>
    %cst_113 = arith.constant dense<0.000000e+00> : vector<8x384xf32>
    %389 = tpu.matmul %385, %293, %cst_113 {dimension_numbers = #tpu.dot_dimension_numbers<[1], [0], [0], [1], [0, 0, 1, 1], [], []>} : vector<8x128xf32>, vector<128x384xf32>, vector<8x384xf32> -> vector<8x384xf32>
    %390 = vector.extract_strided_slice %388 {offsets = [0, 0], sizes = [8, 128], strides = [1, 1]} : vector<8x384xf32> to vector<8x128xf32>
    %391 = vector.extract_strided_slice %389 {offsets = [0, 0], sizes = [8, 128], strides = [1, 1]} : vector<8x384xf32> to vector<8x128xf32>
    %392 = arith.addf %390, %391 : vector<8x128xf32>
    %393 = arith.negf %392 : vector<8x128xf32>
    %394 = math.exp %393 : vector<8x128xf32>
    %cst_114 = arith.constant 1.000000e+00 : f32
    %395 = vector.broadcast %cst_114 : f32 to vector<8x128xf32>
    %396 = arith.addf %395, %394 : vector<8x128xf32>
    %397 = arith.divf %395, %396 : vector<8x128xf32>
    %398 = vector.extract_strided_slice %388 {offsets = [0, 128], sizes = [8, 128], strides = [1, 1]} : vector<8x384xf32> to vector<8x128xf32>
    %399 = vector.extract_strided_slice %389 {offsets = [0, 128], sizes = [8, 128], strides = [1, 1]} : vector<8x384xf32> to vector<8x128xf32>
    %400 = arith.addf %398, %399 : vector<8x128xf32>
    %401 = arith.negf %400 : vector<8x128xf32>
    %402 = math.exp %401 : vector<8x128xf32>
    %cst_115 = arith.constant 1.000000e+00 : f32
    %403 = vector.broadcast %cst_115 : f32 to vector<8x128xf32>
    %404 = arith.addf %403, %402 : vector<8x128xf32>
    %405 = arith.divf %403, %404 : vector<8x128xf32>
    %406 = vector.extract_strided_slice %388 {offsets = [0, 256], sizes = [8, 128], strides = [1, 1]} : vector<8x384xf32> to vector<8x128xf32>
    %407 = vector.extract_strided_slice %389 {offsets = [0, 256], sizes = [8, 128], strides = [1, 1]} : vector<8x384xf32> to vector<8x128xf32>
    %408 = arith.addf %407, %297 : vector<8x128xf32>
    %409 = arith.mulf %397, %408 : vector<8x128xf32>
    %410 = arith.addf %406, %409 : vector<8x128xf32>
    %411 = math.tanh %410 : vector<8x128xf32>
    %412 = arith.subf %385, %411 : vector<8x128xf32>
    %413 = arith.mulf %405, %412 : vector<8x128xf32>
    %414 = arith.addf %411, %413 : vector<8x128xf32>
    %c4_i32_116 = arith.constant 4 : i32
    %415 = arith.index_cast %c4_i32_116 : i32 to index
    %c0_117 = arith.constant 0 : index
    %c0_118 = arith.constant 0 : index
    %416 = vector.load %arg10[%415, %c0_117, %c0_118] : memref<8x8x384xf32, #tpu.memory_space<vmem>>, vector<1x8x384xf32>
    %417 = vector.shape_cast %416 : vector<1x8x384xf32> to vector<8x384xf32>
    %cst_119 = arith.constant dense<0.000000e+00> : vector<8x384xf32>
    %418 = tpu.matmul %414, %293, %cst_119 {dimension_numbers = #tpu.dot_dimension_numbers<[1], [0], [0], [1], [0, 0, 1, 1], [], []>} : vector<8x128xf32>, vector<128x384xf32>, vector<8x384xf32> -> vector<8x384xf32>
    %419 = vector.extract_strided_slice %417 {offsets = [0, 0], sizes = [8, 128], strides = [1, 1]} : vector<8x384xf32> to vector<8x128xf32>
    %420 = vector.extract_strided_slice %418 {offsets = [0, 0], sizes = [8, 128], strides = [1, 1]} : vector<8x384xf32> to vector<8x128xf32>
    %421 = arith.addf %419, %420 : vector<8x128xf32>
    %422 = arith.negf %421 : vector<8x128xf32>
    %423 = math.exp %422 : vector<8x128xf32>
    %cst_120 = arith.constant 1.000000e+00 : f32
    %424 = vector.broadcast %cst_120 : f32 to vector<8x128xf32>
    %425 = arith.addf %424, %423 : vector<8x128xf32>
    %426 = arith.divf %424, %425 : vector<8x128xf32>
    %427 = vector.extract_strided_slice %417 {offsets = [0, 128], sizes = [8, 128], strides = [1, 1]} : vector<8x384xf32> to vector<8x128xf32>
    %428 = vector.extract_strided_slice %418 {offsets = [0, 128], sizes = [8, 128], strides = [1, 1]} : vector<8x384xf32> to vector<8x128xf32>
    %429 = arith.addf %427, %428 : vector<8x128xf32>
    %430 = arith.negf %429 : vector<8x128xf32>
    %431 = math.exp %430 : vector<8x128xf32>
    %cst_121 = arith.constant 1.000000e+00 : f32
    %432 = vector.broadcast %cst_121 : f32 to vector<8x128xf32>
    %433 = arith.addf %432, %431 : vector<8x128xf32>
    %434 = arith.divf %432, %433 : vector<8x128xf32>
    %435 = vector.extract_strided_slice %417 {offsets = [0, 256], sizes = [8, 128], strides = [1, 1]} : vector<8x384xf32> to vector<8x128xf32>
    %436 = vector.extract_strided_slice %418 {offsets = [0, 256], sizes = [8, 128], strides = [1, 1]} : vector<8x384xf32> to vector<8x128xf32>
    %437 = arith.addf %436, %297 : vector<8x128xf32>
    %438 = arith.mulf %426, %437 : vector<8x128xf32>
    %439 = arith.addf %435, %438 : vector<8x128xf32>
    %440 = math.tanh %439 : vector<8x128xf32>
    %441 = arith.subf %414, %440 : vector<8x128xf32>
    %442 = arith.mulf %434, %441 : vector<8x128xf32>
    %443 = arith.addf %440, %442 : vector<8x128xf32>
    %c5_i32_122 = arith.constant 5 : i32
    %444 = arith.index_cast %c5_i32_122 : i32 to index
    %c0_123 = arith.constant 0 : index
    %c0_124 = arith.constant 0 : index
    %445 = vector.load %arg10[%444, %c0_123, %c0_124] : memref<8x8x384xf32, #tpu.memory_space<vmem>>, vector<1x8x384xf32>
    %446 = vector.shape_cast %445 : vector<1x8x384xf32> to vector<8x384xf32>
    %cst_125 = arith.constant dense<0.000000e+00> : vector<8x384xf32>
    %447 = tpu.matmul %443, %293, %cst_125 {dimension_numbers = #tpu.dot_dimension_numbers<[1], [0], [0], [1], [0, 0, 1, 1], [], []>} : vector<8x128xf32>, vector<128x384xf32>, vector<8x384xf32> -> vector<8x384xf32>
    %448 = vector.extract_strided_slice %446 {offsets = [0, 0], sizes = [8, 128], strides = [1, 1]} : vector<8x384xf32> to vector<8x128xf32>
    %449 = vector.extract_strided_slice %447 {offsets = [0, 0], sizes = [8, 128], strides = [1, 1]} : vector<8x384xf32> to vector<8x128xf32>
    %450 = arith.addf %448, %449 : vector<8x128xf32>
    %451 = arith.negf %450 : vector<8x128xf32>
    %452 = math.exp %451 : vector<8x128xf32>
    %cst_126 = arith.constant 1.000000e+00 : f32
    %453 = vector.broadcast %cst_126 : f32 to vector<8x128xf32>
    %454 = arith.addf %453, %452 : vector<8x128xf32>
    %455 = arith.divf %453, %454 : vector<8x128xf32>
    %456 = vector.extract_strided_slice %446 {offsets = [0, 128], sizes = [8, 128], strides = [1, 1]} : vector<8x384xf32> to vector<8x128xf32>
    %457 = vector.extract_strided_slice %447 {offsets = [0, 128], sizes = [8, 128], strides = [1, 1]} : vector<8x384xf32> to vector<8x128xf32>
    %458 = arith.addf %456, %457 : vector<8x128xf32>
    %459 = arith.negf %458 : vector<8x128xf32>
    %460 = math.exp %459 : vector<8x128xf32>
    %cst_127 = arith.constant 1.000000e+00 : f32
    %461 = vector.broadcast %cst_127 : f32 to vector<8x128xf32>
    %462 = arith.addf %461, %460 : vector<8x128xf32>
    %463 = arith.divf %461, %462 : vector<8x128xf32>
    %464 = vector.extract_strided_slice %446 {offsets = [0, 256], sizes = [8, 128], strides = [1, 1]} : vector<8x384xf32> to vector<8x128xf32>
    %465 = vector.extract_strided_slice %447 {offsets = [0, 256], sizes = [8, 128], strides = [1, 1]} : vector<8x384xf32> to vector<8x128xf32>
    %466 = arith.addf %465, %297 : vector<8x128xf32>
    %467 = arith.mulf %455, %466 : vector<8x128xf32>
    %468 = arith.addf %464, %467 : vector<8x128xf32>
    %469 = math.tanh %468 : vector<8x128xf32>
    %470 = arith.subf %443, %469 : vector<8x128xf32>
    %471 = arith.mulf %463, %470 : vector<8x128xf32>
    %472 = arith.addf %469, %471 : vector<8x128xf32>
    %c6_i32_128 = arith.constant 6 : i32
    %473 = arith.index_cast %c6_i32_128 : i32 to index
    %c0_129 = arith.constant 0 : index
    %c0_130 = arith.constant 0 : index
    %474 = vector.load %arg10[%473, %c0_129, %c0_130] : memref<8x8x384xf32, #tpu.memory_space<vmem>>, vector<1x8x384xf32>
    %475 = vector.shape_cast %474 : vector<1x8x384xf32> to vector<8x384xf32>
    %cst_131 = arith.constant dense<0.000000e+00> : vector<8x384xf32>
    %476 = tpu.matmul %472, %293, %cst_131 {dimension_numbers = #tpu.dot_dimension_numbers<[1], [0], [0], [1], [0, 0, 1, 1], [], []>} : vector<8x128xf32>, vector<128x384xf32>, vector<8x384xf32> -> vector<8x384xf32>
    %477 = vector.extract_strided_slice %475 {offsets = [0, 0], sizes = [8, 128], strides = [1, 1]} : vector<8x384xf32> to vector<8x128xf32>
    %478 = vector.extract_strided_slice %476 {offsets = [0, 0], sizes = [8, 128], strides = [1, 1]} : vector<8x384xf32> to vector<8x128xf32>
    %479 = arith.addf %477, %478 : vector<8x128xf32>
    %480 = arith.negf %479 : vector<8x128xf32>
    %481 = math.exp %480 : vector<8x128xf32>
    %cst_132 = arith.constant 1.000000e+00 : f32
    %482 = vector.broadcast %cst_132 : f32 to vector<8x128xf32>
    %483 = arith.addf %482, %481 : vector<8x128xf32>
    %484 = arith.divf %482, %483 : vector<8x128xf32>
    %485 = vector.extract_strided_slice %475 {offsets = [0, 128], sizes = [8, 128], strides = [1, 1]} : vector<8x384xf32> to vector<8x128xf32>
    %486 = vector.extract_strided_slice %476 {offsets = [0, 128], sizes = [8, 128], strides = [1, 1]} : vector<8x384xf32> to vector<8x128xf32>
    %487 = arith.addf %485, %486 : vector<8x128xf32>
    %488 = arith.negf %487 : vector<8x128xf32>
    %489 = math.exp %488 : vector<8x128xf32>
    %cst_133 = arith.constant 1.000000e+00 : f32
    %490 = vector.broadcast %cst_133 : f32 to vector<8x128xf32>
    %491 = arith.addf %490, %489 : vector<8x128xf32>
    %492 = arith.divf %490, %491 : vector<8x128xf32>
    %493 = vector.extract_strided_slice %475 {offsets = [0, 256], sizes = [8, 128], strides = [1, 1]} : vector<8x384xf32> to vector<8x128xf32>
    %494 = vector.extract_strided_slice %476 {offsets = [0, 256], sizes = [8, 128], strides = [1, 1]} : vector<8x384xf32> to vector<8x128xf32>
    %495 = arith.addf %494, %297 : vector<8x128xf32>
    %496 = arith.mulf %484, %495 : vector<8x128xf32>
    %497 = arith.addf %493, %496 : vector<8x128xf32>
    %498 = math.tanh %497 : vector<8x128xf32>
    %499 = arith.subf %472, %498 : vector<8x128xf32>
    %500 = arith.mulf %492, %499 : vector<8x128xf32>
    %501 = arith.addf %498, %500 : vector<8x128xf32>
    %c7_i32_134 = arith.constant 7 : i32
    %502 = arith.index_cast %c7_i32_134 : i32 to index
    %c0_135 = arith.constant 0 : index
    %c0_136 = arith.constant 0 : index
    %503 = vector.load %arg10[%502, %c0_135, %c0_136] : memref<8x8x384xf32, #tpu.memory_space<vmem>>, vector<1x8x384xf32>
    %504 = vector.shape_cast %503 : vector<1x8x384xf32> to vector<8x384xf32>
    %cst_137 = arith.constant dense<0.000000e+00> : vector<8x384xf32>
    %505 = tpu.matmul %501, %293, %cst_137 {dimension_numbers = #tpu.dot_dimension_numbers<[1], [0], [0], [1], [0, 0, 1, 1], [], []>} : vector<8x128xf32>, vector<128x384xf32>, vector<8x384xf32> -> vector<8x384xf32>
    %506 = vector.extract_strided_slice %504 {offsets = [0, 0], sizes = [8, 128], strides = [1, 1]} : vector<8x384xf32> to vector<8x128xf32>
    %507 = vector.extract_strided_slice %505 {offsets = [0, 0], sizes = [8, 128], strides = [1, 1]} : vector<8x384xf32> to vector<8x128xf32>
    %508 = arith.addf %506, %507 : vector<8x128xf32>
    %509 = arith.negf %508 : vector<8x128xf32>
    %510 = math.exp %509 : vector<8x128xf32>
    %cst_138 = arith.constant 1.000000e+00 : f32
    %511 = vector.broadcast %cst_138 : f32 to vector<8x128xf32>
    %512 = arith.addf %511, %510 : vector<8x128xf32>
    %513 = arith.divf %511, %512 : vector<8x128xf32>
    %514 = vector.extract_strided_slice %504 {offsets = [0, 128], sizes = [8, 128], strides = [1, 1]} : vector<8x384xf32> to vector<8x128xf32>
    %515 = vector.extract_strided_slice %505 {offsets = [0, 128], sizes = [8, 128], strides = [1, 1]} : vector<8x384xf32> to vector<8x128xf32>
    %516 = arith.addf %514, %515 : vector<8x128xf32>
    %517 = arith.negf %516 : vector<8x128xf32>
    %518 = math.exp %517 : vector<8x128xf32>
    %cst_139 = arith.constant 1.000000e+00 : f32
    %519 = vector.broadcast %cst_139 : f32 to vector<8x128xf32>
    %520 = arith.addf %519, %518 : vector<8x128xf32>
    %521 = arith.divf %519, %520 : vector<8x128xf32>
    %522 = vector.extract_strided_slice %504 {offsets = [0, 256], sizes = [8, 128], strides = [1, 1]} : vector<8x384xf32> to vector<8x128xf32>
    %523 = vector.extract_strided_slice %505 {offsets = [0, 256], sizes = [8, 128], strides = [1, 1]} : vector<8x384xf32> to vector<8x128xf32>
    %524 = arith.addf %523, %297 : vector<8x128xf32>
    %525 = arith.mulf %513, %524 : vector<8x128xf32>
    %526 = arith.addf %522, %525 : vector<8x128xf32>
    %527 = math.tanh %526 : vector<8x128xf32>
    %528 = arith.subf %501, %527 : vector<8x128xf32>
    %529 = arith.mulf %521, %528 : vector<8x128xf32>
    %530 = arith.addf %527, %529 : vector<8x128xf32>
    %c8_i32_140 = arith.constant 8 : i32
    %c0_141 = arith.constant 0 : index
    %c0_142 = arith.constant 0 : index
    %531 = vector.load %arg7[%c0_141, %c0_142] : memref<128x128xf32, #tpu.memory_space<vmem>>, vector<128x128xf32>
    %cst_143 = arith.constant dense<0.000000e+00> : vector<8x128xf32>
    %532 = tpu.matmul %530, %531, %cst_143 {dimension_numbers = #tpu.dot_dimension_numbers<[1], [0], [0], [1], [0, 0, 1, 1], [], []>} : vector<8x128xf32>, vector<128x128xf32>, vector<8x128xf32> -> vector<8x128xf32>
    %c0_144 = arith.constant 0 : index
    %c0_145 = arith.constant 0 : index
    %533 = vector.load %arg8[%c0_144, %c0_145] : memref<1x128xf32, #tpu.memory_space<vmem>>, vector<1x128xf32>
    %534 = vector.broadcast %533 : vector<1x128xf32> to vector<8x128xf32>
    %535 = arith.addf %532, %534 : vector<8x128xf32>
    %c0_146 = arith.constant 0 : index
    %c0_147 = arith.constant 0 : index
    %536 = vector.load %arg9[%c0_146, %c0_147] : memref<8x128xf32, #tpu.memory_space<vmem>>, vector<8x128xf32>
    tpu.vector_store %arg9[%c0_146, %c0_147], %535 {strides = array<i32>} : memref<8x128xf32, #tpu.memory_space<vmem>>, vector<8x128xf32>,
    return
  }
  func.func @transform_0(%arg0: i32) -> (i32, i32, i32) {
    %c0_i32 = arith.constant 0 : i32
    %c0_i32_0 = arith.constant 0 : i32
    %c0_i32_1 = arith.constant 0 : i32
    %c0_i32_2 = arith.constant 0 : i32
    return %c0_i32, %c0_i32_0, %c0_i32_1 : i32, i32, i32
  }
  func.func @transform_1(%arg0: i32) -> (i32, i32) {
    %c0_i32 = arith.constant 0 : i32
    %c0_i32_0 = arith.constant 0 : i32
    %c0_i32_1 = arith.constant 0 : i32
    return %c0_i32, %c0_i32_0 : i32, i32
  }
  func.func @transform_2(%arg0: i32) -> (i32, i32, i32) {
    %c0_i32 = arith.constant 0 : i32
    %c0_i32_0 = arith.constant 0 : i32
    %c0_i32_1 = arith.constant 0 : i32
    %c0_i32_2 = arith.constant 0 : i32
    return %c0_i32, %c0_i32_0, %c0_i32_1 : i32, i32, i32
  }
  func.func @transform_3(%arg0: i32) -> (i32, i32, i32) {
    %c0_i32 = arith.constant 0 : i32
    %c0_i32_0 = arith.constant 0 : i32
    %c0_i32_1 = arith.constant 0 : i32
    %c0_i32_2 = arith.constant 0 : i32
    return %c0_i32, %c0_i32_0, %c0_i32_1 : i32, i32, i32
  }
  func.func @transform_4(%arg0: i32) -> (i32, i32, i32) {
    %c0_i32 = arith.constant 0 : i32
    %c0_i32_0 = arith.constant 0 : i32
    %c0_i32_1 = arith.constant 0 : i32
    %c0_i32_2 = arith.constant 0 : i32
    return %c0_i32, %c0_i32_0, %c0_i32_1 : i32, i32, i32
  }
  func.func @transform_5(%arg0: i32) -> (i32, i32, i32) {
    %c0_i32 = arith.constant 0 : i32
    %c0_i32_0 = arith.constant 0 : i32
    %c0_i32_1 = arith.constant 0 : i32
    %c0_i32_2 = arith.constant 0 : i32
    return %c0_i32, %c0_i32_0, %c0_i32_1 : i32, i32, i32
  }
  func.func @transform_6(%arg0: i32) -> (i32, i32) {
    %c0_i32 = arith.constant 0 : i32
    %c0_i32_0 = arith.constant 0 : i32
    %c0_i32_1 = arith.constant 0 : i32
    return %c0_i32, %c0_i32_0 : i32, i32
  }
  func.func @transform_7(%arg0: i32) -> (i32, i32) {
    %c0_i32 = arith.constant 0 : i32
    %c0_i32_0 = arith.constant 0 : i32
    %c0_i32_1 = arith.constant 0 : i32
    return %c0_i32, %c0_i32_0 : i32, i32
  }
  func.func @transform_8(%arg0: i32) -> (i32, i32) {
    %c0_i32 = arith.constant 0 : i32
    %c0_i32_0 = arith.constant 0 : i32
    %c0_i32_1 = arith.constant 0 : i32
    return %c0_i32, %c0_i32_0 : i32, i32
  }
}

</mosaic_0001>

<bundles_post_ra>
// kernel: gru_model_forward.1
= control target key start
LH: loop header
LB: loop body
LE: loop exit
PB: predicated region body
PF: predicated region fallthrough
CT: control target
= control target key end

     0   :  { %13 = vsyncpa [#allocation5], 0  ;;  %s7048_s0 = inlined_call_operand.vmem [shape: f32[8,8,16], index: 0, kind: input, shape index: {}]   ;;  %s7049_s1 = inlined_call_operand.hbm [shape: f32[16,384], index: 1, kind: input, shape index: {}]   ;;  %s7050_s2 = inlined_call_operand.hbm [shape: f32[1,128,384], index: 2, kind: input, shape index: {}]   ;;  %s7051_s3 = inlined_call_operand.hbm [shape: f32[2,128,384], index: 3, kind: input, shape index: {}]   ;;  %s7052_s4 = inlined_call_operand.vmem [shape: f32[2,1,384], index: 4, kind: input, shape index: {}]   ;;  %s7053_s5 = inlined_call_operand.hbm [shape: f32[2,1,128], index: 5, kind: input, shape index: {}]   ;;  %s7054_s6 = inlined_call_operand.vmem [shape: f32[128,128], index: 6, kind: input, shape index: {}]   ;;  %s7055_s7 = inlined_call_operand.vmem [shape: f32[1,128], index: 7, kind: input, shape index: {}]   ;;  %s7056_s8 = inlined_call_operand.vmem [shape: f32[8,128], index: 8, kind: output, shape index: {}]  }
   0x1   :  { %14 = vsyncpa [#allocation7], 0 }
   0x2   :  { %15 = vsyncpa [#allocation10], 0  ;;  %s5925_s27 = smov [#allocation6]   ;;  %s5926_s29 = smov [#allocation4]  }
   0x3   :  { %s35_s28 = sshll.u32 %s5925_s27, 4  ;;  %s23_s30 = sshll.u32 %s5926_s29, 4  ;;  %s36_s28 = int_to_ptr.vmem [resolvable:$true] %s35_s28  ;;  %s5981_s30 = int_to_ptr.vmem [resolvable:$true] %s23_s30 }
   0x4   :  { %s5831_s11 = scalar_lea.hbm %s7050_s2, 6144 }
   0x5   :  { %p5832_p0 = scmp.ne.s32.totalorder %s7050_s2, %s5831_s11  ;;  %p5835_p1 = scmp.lt.u32.totalorder %s5831_s11, %s7050_s2 }
   0x7   :  { %p5837_p2 = pnand %p5835_p1, %p5832_p0 }
   0x9   :  { %5840 = shalt.err (!%p5837_p2)
}
   0xa   :  { %s5841_s16 = scalar_lea.vmem %s36_s28, 6144  ;;  %p5846_p4 = scmp.lt.s32.totalorder %s36_s28, %s36_s28 }
   0xb   :  { %p5842_p3 = scmp.ne.s32.totalorder %s36_s28, %s5841_s16  ;;  %p5847_p5 = scmp.lt.s32.totalorder %s5841_s16, %s5841_s16 }
   0xd   :  { %p5848_p6 = por %p5847_p5, %p5846_p4 }
   0xf   :  { %p5849_p7 = pnand %p5848_p6, %p5842_p3 }
  0x11   :  { %5852 = shalt.err (!%p5849_p7)
}
  0x12   :  { %s5927_s17 = smov 384   ;;  %s5928_s18 = smov 24  }
  0x13   :  { %41 = dma.hbm_to_vmem [thread:$0]  %s7050_s2, 6144, %s36_s28, [#allocation7], %s5927_s17, %s5927_s17, %s5928_s18  }
  0x14   :  { %s5853_s23 = scalar_lea.hbm %s7049_s1, 768 }
  0x15   :  { %p5854_p8 = scmp.ne.s32.totalorder %s7049_s1, %s5853_s23  ;;  %p5857_p9 = scmp.lt.u32.totalorder %s5853_s23, %s7049_s1 }
  0x17   :  { %p5859_p10 = pnand %p5857_p9, %p5854_p8 }
  0x19   :  { %5862 = shalt.err (!%p5859_p10)
}
  0x1a   :  { %s5863_s29 = scalar_lea.vmem %s5981_s30, 768  ;;  %p5868_p12 = scmp.lt.s32.totalorder %s5981_s30, %s5981_s30 }
  0x1b   :  { %p5864_p11 = scmp.ne.s32.totalorder %s5981_s30, %s5863_s29  ;;  %p5869_p13 = scmp.lt.s32.totalorder %s5863_s29, %s5863_s29 }
  0x1d   :  { %p5870_p0 = por %p5869_p13, %p5868_p12 }
  0x1f   :  { %p5871_p1 = pnand %p5870_p0, %p5864_p11 }
  0x21   :  { %5874 = shalt.err (!%p5871_p1)
}
  0x22   :  { %29 = dma.hbm_to_vmem [thread:$0]  %s7049_s1, 768, %s5981_s30, [#allocation5], %s5927_s17, %s5927_s17, %s5928_s18  }
  0x23   :  { %s5929_s9 = smov [#allocation8]   ;;  %s5930_s11 = smov [#allocation9]  }
  0x24   :  { %s47_s10 = sshll.u32 %s5929_s9, 4  ;;  %s61_s12 = sshll.u32 %s5930_s11, 4  ;;  %s48_s10 = int_to_ptr.vmem [resolvable:$true] %s47_s10  ;;  %s6018_s12 = int_to_ptr.vmem [resolvable:$true] %s61_s12 }
  0x25   :  { %s5875_s15 = scalar_lea.hbm %s7051_s3, 12288 }
  0x26   :  { %p5876_p2 = scmp.ne.s32.totalorder %s7051_s3, %s5875_s15  ;;  %p5879_p3 = scmp.lt.u32.totalorder %s5875_s15, %s7051_s3 }
  0x28   :  { %p5881_p4 = pnand %p5879_p3, %p5876_p2 }
  0x2a   :  { %5884 = shalt.err (!%p5881_p4)
}
  0x2b   :  { %s5885_s1 = scalar_lea.vmem %s48_s10, 12288  ;;  %p5890_p6 = scmp.lt.s32.totalorder %s48_s10, %s48_s10 }
  0x2c   :  { %p5886_p5 = scmp.ne.s32.totalorder %s48_s10, %s5885_s1  ;;  %p5891_p7 = scmp.lt.s32.totalorder %s5885_s1, %s5885_s1 }
  0x2e   :  { %p5892_p8 = por %p5891_p7, %p5890_p6 }
  0x30   :  { %p5893_p9 = pnand %p5892_p8, %p5886_p5 }
  0x32   :  { %5896 = shalt.err (!%p5893_p9)
}
  0x33   :  { %53 = dma.hbm_to_vmem [thread:$0]  %s7051_s3, 12288, %s48_s10, [#allocation7], %s5927_s17, %s5927_s17, %s5928_s18  }
  0x34   :  { %s5897_s25 = scalar_lea.hbm %s7053_s5, 32 }
  0x35   :  { %p5898_p10 = scmp.ne.s32.totalorder %s7053_s5, %s5897_s25  ;;  %p5901_p11 = scmp.lt.u32.totalorder %s5897_s25, %s7053_s5 }
  0x37   :  { %p5903_p12 = pnand %p5901_p11, %p5898_p10 }
  0x39   :  { %5906 = shalt.err (!%p5903_p12)
}
  0x3a   :  { %s5907_s28 = scalar_lea.vmem %s6018_s12, 32  ;;  %p5912_p0 = scmp.lt.s32.totalorder %s6018_s12, %s6018_s12 }
  0x3b   :  { %p5908_p13 = scmp.ne.s32.totalorder %s6018_s12, %s5907_s28  ;;  %p5913_p1 = scmp.lt.s32.totalorder %s5907_s28, %s5907_s28 }
  0x3d   :  { %p5914_p2 = por %p5913_p1, %p5912_p0 }
  0x3f   :  { %p5915_p3 = pnand %p5914_p2, %p5908_p13 }
  0x41   :  { %5918 = shalt.err (!%p5915_p3)
}
  0x42   :  { %s5931_s3 = smov 16   ;;  %s5932_s17 = smov 1  }
  0x43   :  { %67 = dma.hbm_to_vmem [thread:$0]  %s7053_s5, 32, %s6018_s12, [#allocation10], %s5931_s3, %s5931_s3, %s5932_s17  }
  0x44   :  { %5919 = dma.done.wait [#allocation5], 768  }
  0x45   :  { %5920 = vsyncadd [#allocation5], 4294966528 }
  0x46   :  { %5921 = dma.done.wait [#allocation7], 18432  }
  0x47   :  { %5922 = vsyncadd [#allocation7], 4294948864 }
  0x48   :  { %5923 = dma.done.wait [#allocation10], 32  }
  0x49   :  { %5924 = vsyncadd [#allocation10], 4294967264  ;;  %v5933_v0 = vmov 0.0   ;;  %v93_v1 = vld [vmem:[#allocation4 + $0x8] sm:$0xff]  ;;  %v96_v2 = vld [vmem:[#allocation4 + $0x20] sm:$0xff]  ;;  %vm115_vm0 = vcmask 130048  }
  0x4a   :  { %204 = vmatprep.mubr.f32.mxu0 %v5933_v0  ;;  %v92_v3 = vld [vmem:[#allocation4] sm:$0xff]  ;;  %v4603_v4 = vpack.c.bf16 %v96_v2, %v93_v1  ;;  %v95_v5 = vld [vmem:[#allocation4 + $0x18] sm:$0xff]  ;;  %v386_v9 = vld [vmem:[#allocation8 + $0x20] sm:$0xff]  ;;  %v5934_v48 = vmov 0.0|0.0   ;;  %vm5935_vm1 = vmmov 0  }
  0x4b   :  { %v84_v6 = vld [vmem:[%s7048_s0] sm:$0xff]  ;;  %v383_v7 = vld [vmem:[#allocation8 + $0x8] sm:$0xff]  ;;  %v4605_v8 = vpack.c.bf16 %v95_v5, %v92_v3  ;;  %v382_v10 = vld [vmem:[#allocation8] sm:$0xff] }
  0x4c   :  { %v385_v11 = vld [vmem:[#allocation8 + $0x18] sm:$0xff]  ;;  %3952 = vmatprep.mubr.msk.f32.mxu1 %vm115_vm0, %v84_v6  ;;  %4604 = vmatprep.subr.bf16.mxu0 %v4603_v4  ;;  %v6057_v12 = vpack.c.bf16 %v386_v9, %v383_v7  ;;  %v392_v14 = vld [vmem:[#allocation8 + $0x50] sm:$0xff]  ;;  %v391_v18 = vld [vmem:[#allocation8 + $0x48] sm:$0xff] }
  0x4d   :  { %v389_v13 = vld [vmem:[#allocation8 + $0x38] sm:$0xff]  ;;  %4606 = vmatpush1.bf16.msra.mxu0 %v4605_v8  ;;  %v6059_v15 = vpack.c.bf16 %v385_v11, %v382_v10  ;;  %v388_v17 = vld [vmem:[#allocation8 + $0x30] sm:$0xff]  ;;  %v395_v19 = vld [vmem:[#allocation8 + $0x68] sm:$0xff] }
  0x4e   :  { %4612 = vmatprep.subr.bf16.mxu0 %v6057_v12  ;;  %v6062_v16 = vpack.c.bf16 %v392_v14, %v389_v13  ;;  %v398_v20 = vld [vmem:[#allocation8 + $0x80] sm:$0xff]  ;;  %v85_v21 = vld [vmem:[%s7048_s0 + $0x8] sm:$0xff]  ;;  %v6070_v22 = vpack.c.bf16 %v391_v18, %v388_v17  ;;  %v404_v27 = vld [vmem:[#allocation8 + $0xb0] sm:$0xff] }
  0x4f   :  { %v6073_v23 = vpack.c.bf16 %v398_v20, %v395_v19  ;;  %v394_v24 = vld [vmem:[#allocation8 + $0x60] sm:$0xff]  ;;  %v397_v25 = vld [vmem:[#allocation8 + $0x78] sm:$0xff]  ;;  %v400_v34 = vld [vmem:[#allocation8 + $0x90] sm:$0xff] }
  0x50   :  { %3573 = vmatmul.mubr.msk.f32.vlgmr.msra.gmra.mrb[0].mxu0 %vm115_vm0, %v84_v6  ;;  %v401_v26 = vld [vmem:[#allocation8 + $0x98] sm:$0xff]  ;;  %v94_v28 = vld [vmem:[#allocation4 + $0x10] sm:$0xff]  ;;  %v6081_v31 = vpack.c.bf16 %v397_v25, %v394_v24  ;;  %v403_v35 = vld [vmem:[#allocation8 + $0xa8] sm:$0xff] }
  0x51   :  { %4614 = vmatpush1.bf16.msra.mxu0 %v6059_v15  ;;  %210 = vmatprep.mubr.f32.mxu0 %v5933_v0  ;;  %v97_v29 = vld [vmem:[#allocation4 + $0x28] sm:$0xff]  ;;  %v86_v30 = vld [vmem:[%s7048_s0 + $0x10] sm:$0xff]  ;;  %v6084_v33 = vpack.c.bf16 %v404_v27, %v401_v26  ;;  %v384_v36 = vld [vmem:[#allocation8 + $0x10] sm:$0xff]  ;;  %v6094_v42 = vpack.c.bf16 %v403_v35, %v400_v34  ;;  %v100_v35 = vlaneseq }
  0x52   :  { %4616 = vmatprep.subr.bf16.mxu0 %v6062_v16  ;;  %v4607_v32 = vpack.c.bf16 %v97_v29, %v94_v28  ;;  %v407_v37 = vld [vmem:[#allocation8 + $0xc8] sm:$0xff]  ;;  %v410_v38 = vld [vmem:[#allocation8 + $0xe0] sm:$0xff]  ;;  %v393_v44 = vld [vmem:[#allocation8 + $0x58] sm:$0xff] }
  0x53   :  { %v387_v39 = vld [vmem:[#allocation8 + $0x28] sm:$0xff]  ;;  %v390_v43 = vld [vmem:[#allocation8 + $0x40] sm:$0xff]  ;;  %v6097_v45 = vpack.c.bf16 %v410_v38, %v407_v37  ;;  %v409_v47 = vld [vmem:[#allocation8 + $0xd8] sm:$0xff] }
  0x54   :  { %3574 = vmatmul.mubr.msk.f32.gmra.mrb[2].mxu0 %vm115_vm0, %v85_v21  ;;  %4608 = vmatprep.subr.bf16.mxu1 %v4607_v32  ;;  %v6087_v40 = vpack.c.bf16 %v387_v39, %v384_v36  ;;  %v87_v41 = vld [vmem:[%s7048_s0 + $0x18] sm:$0xff]  ;;  %v406_v46 = vld [vmem:[#allocation8 + $0xc0] sm:$0xff]  ;;  %v413_v49 = vld [vmem:[#allocation8 + $0xf8] sm:$0xff]  ;;  %v6103_v51 = vpack.c.bf16 %v393_v44, %v390_v43  ;;  %v6222_v36 = vshrl.u32 %v100_v35, 7 }
  0x55   :  { %4618 = vmatpush1.bf16.msra.mxu0 %v6070_v22  ;;  %216 = vmatprep.mubr.f32.mxu0 %v5933_v0  ;;  %v416_v50 = vld [vmem:[#allocation8 + $0x110] sm:$0xff]  ;;  %v6110_v53 = vpack.c.bf16 %v409_v47, %v406_v46  ;;  %v399_v55 = vld [vmem:[#allocation8 + $0x88] sm:$0xff]  ;;  %v422_v60 = vld [vmem:[#allocation8 + $0x140] sm:$0xff] }
  0x56   :  { %4620 = vmatprep.subr.bf16.mxu0 %v6073_v23  ;;  %4610 = vmatpush3.bf16.msra.mxu1 %v4607_v32  ;;  %v88_v52 = vld [vmem:[%s7048_s0 + $0x20] sm:$0xff]  ;;  %v6113_v56 = vpack.c.bf16 %v416_v50, %v413_v49  ;;  %v415_v58 = vld [vmem:[#allocation8 + $0x108] sm:$0xff]  ;;  %v89_v62 = vld [vmem:[%s7048_s0 + $0x28] sm:$0xff]  ;;  %v110_v37 = vsub.s32 2, %v6222_v36 }
  0x57   :  { %4643 = vmatprep.subr.bf16.mxu1 %v5934_v48  ;;  %v396_v54 = vld [vmem:[#allocation8 + $0x70] sm:$0xff]  ;;  %v419_v59 = vld [vmem:[#allocation8 + $0x128] sm:$0xff]  ;;  %v402_v1 = vld [vmem:[#allocation8 + $0xa0] sm:$0xff] }
  0x58   :  { %3575 = vmatmul.mubr.msk.f32.gmra.mrb[4].mxu0 %vm115_vm0, %v86_v30  ;;  %v412_v57 = vld [vmem:[#allocation8 + $0xf0] sm:$0xff]  ;;  %v6119_v61 = vpack.c.bf16 %v399_v55, %v396_v54  ;;  %v405_v2 = vld [vmem:[#allocation8 + $0xb8] sm:$0xff]  ;;  %v6129_v3 = vpack.c.bf16 %v422_v60, %v419_v59  ;;  %v418_v4 = vld [vmem:[#allocation8 + $0x120] sm:$0xff] }
  0x59   :  { %4622 = vmatpush1.bf16.msra.mxu0 %v6081_v31  ;;  %222 = vmatprep.mubr.f32.mxu0 %v5933_v0  ;;  %v6126_v63 = vpack.c.bf16 %v415_v58, %v412_v57  ;;  %v421_v5 = vld [vmem:[#allocation8 + $0x138] sm:$0xff]  ;;  %v428_v7 = vld [vmem:[#allocation8 + $0x170] sm:$0xff]  ;;  %v6135_v8 = vpack.c.bf16 %v405_v2, %v402_v1  ;;  %v90_v9 = vld [vmem:[%s7048_s0 + $0x30] sm:$0xff] }
  0x5a   :  { %4624 = vmatprep.subr.bf16.mxu0 %v6084_v33  ;;  %3953 = vmatmul.mubr.msk.f32.vlgmr.msra.gmra.mrb[0].mxu1 %vm115_vm0, %v85_v21  ;;  %v425_v6 = vld [vmem:[#allocation8 + $0x158] sm:$0xff]  ;;  %v6142_v10 = vpack.c.bf16 %v421_v5, %v418_v4  ;;  %v408_v11 = vld [vmem:[#allocation8 + $0xd0] sm:$0xff]  ;;  %v411_v13 = vld [vmem:[#allocation8 + $0xe8] sm:$0xff]  ;;  %v106_v5 = vsub.s32 1, %v6222_v36 }
  0x5b   :  { %4645 = vmatpush3.bf16.msra.mxu1 %v6087_v40  ;;  %3955 = vmatprep.mubr.msk.f32.mxu1 %vm115_vm0, %v86_v30  ;;  %v6145_v14 = vpack.c.bf16 %v428_v7, %v425_v6  ;;  %v424_v17 = vld [vmem:[#allocation8 + $0x150] sm:$0xff]  ;;  %v427_v18 = vld [vmem:[#allocation8 + $0x168] sm:$0xff]  ;;  %v6151_v19 = vpack.c.bf16 %v411_v13, %v408_v11  ;;  %v414_v24 = vld [vmem:[#allocation8 + $0x100] sm:$0xff] }
  0x5c   :  { %3576 = vmatmul.mubr.msk.f32.gmra.mrb[6].mxu0 %vm115_vm0, %v87_v41  ;;  %4646 = vmatprep.subr.bf16.mxu1 %v5934_v48  ;;  %v91_v20 = vld [vmem:[%s7048_s0 + $0x38] sm:$0xff]  ;;  %v6158_v21 = vpack.c.bf16 %v427_v18, %v424_v17  ;;  %v417_v25 = vld [vmem:[#allocation8 + $0x118] sm:$0xff]  ;;  %v420_v27 = vld [vmem:[#allocation8 + $0x130] sm:$0xff] }
  0x5d   :  { %4626 = vmatpush1.bf16.msra.mxu0 %v6094_v42  ;;  %228 = vmatprep.mubr.f32.mxu0 %v5933_v0  ;;  %v6165_v26 = vpack.c.bf16 %v417_v25, %v414_v24  ;;  %v423_v28 = vld [vmem:[#allocation8 + $0x148] sm:$0xff]  ;;  %v426_v30 = vld [vmem:[#allocation8 + $0x160] sm:$0xff]  ;;  %v429_v32 = vld [vmem:[#allocation8 + $0x178] sm:$0xff] }
  0x5e   :  { %4628 = vmatprep.subr.bf16.mxu0 %v6097_v45  ;;  %3956 = vmatmul.mubr.msk.f32.gmra.mrb[2].mxu1 %vm115_vm0, %v87_v41  ;;  %v6175_v29 = vpack.c.bf16 %v423_v28, %v420_v27  ;;  %v6184_v34 = vpack.c.bf16 %v429_v32, %v426_v30  ;;  %v98_v38 = vld [vmem:[%s7052_s4] sm:$0x7]  ;;  %v6256_v27 = vld [vmem:[#allocation9] ss:$0 sm:$0xff] }
  0x5f   :  { %4648 = vmatpush3.bf16.msra.mxu1 %v6103_v51  ;;  %3958 = vmatprep.mubr.msk.f32.mxu1 %vm115_vm0, %v88_v52  ;;  %v111_v39 = vrot.slane %v98_v38, %v110_v37  ;;  %v6253_v11 = vrot.slane %v98_v38, %v106_v5 }
  0x60   :  { %3577 = vmatmul.mubr.msk.f32.gmra.mrb[8].mxu0 %vm115_vm0, %v88_v52  ;;  %4649 = vmatprep.subr.bf16.mxu1 %v5934_v48  ;;  %v102_v52 = vsub.s32 0, %v6222_v36 }
  0x61   :  { %4630 = vmatpush1.bf16.msra.mxu0 %v6110_v53  ;;  %234 = vmatprep.mubr.f32.mxu0 %v5933_v0 }
  0x62   :  { %4632 = vmatprep.subr.bf16.mxu0 %v6113_v56  ;;  %3959 = vmatmul.mubr.msk.f32.gmra.mrb[4].mxu1 %vm115_vm0, %v89_v62  ;;  %v6241_v58 = vrot.slane %v98_v38, %v102_v52 }
  0x63   :  { %4651 = vmatpush3.bf16.msra.mxu1 %v6119_v61  ;;  %3961 = vmatprep.mubr.msk.f32.mxu1 %vm115_vm0, %v90_v9 }
  0x64   :  { %3578 = vmatmul.mubr.msk.f32.gmra.mrb[10].mxu0 %vm115_vm0, %v89_v62  ;;  %4652 = vmatprep.subr.bf16.mxu1 %v5934_v48 }
  0x65   :  { %4634 = vmatpush1.bf16.msra.mxu0 %v6126_v63  ;;  %240 = vmatprep.mubr.f32.mxu0 %v5933_v0 }
  0x66   :  { %4636 = vmatprep.subr.bf16.mxu0 %v6129_v3  ;;  %3962 = vmatmul.mubr.msk.f32.gmra.mrb[6].mxu1 %vm115_vm0, %v91_v20 }
  0x67   :  { %4654 = vmatpush3.bf16.msra.mxu1 %v6135_v8  ;;  %3996 = vmatprep.mubr.msk.f32.mxu1 %vm5935_vm1, %v5933_v0 }
  0x68   :  { %3579 = vmatmul.mubr.msk.f32.gmra.mrb[12].mxu0 %vm115_vm0, %v90_v9  ;;  %4655 = vmatprep.subr.bf16.mxu1 %v5934_v48 }
  0x69   :  { %4638 = vmatpush1.bf16.msra.mxu0 %v6142_v10  ;;  %246 = vmatprep.mubr.f32.mxu0 %v5933_v0 }
  0x6a   :  { %4640 = vmatprep.subr.bf16.mxu0 %v6145_v14 }
  0x6b   :  { %4657 = vmatpush3.bf16.msra.mxu1 %v6151_v19 }
  0x6c   :  { %3580 = vmatmul.mubr.msk.f32.gmra.mrb[14].mxu0 %vm115_vm0, %v91_v20  ;;  %4658 = vmatprep.subr.bf16.mxu1 %v5934_v48 }
  0x6d   :  { %4642 = vmatpush1.bf16.msra.mxu0 %v6158_v21  ;;  %504 = vmatprep.mubr.f32.mxu0 %v5933_v0 }
  0x6e   :  { %4668 = vmatprep.subr.bf16.mxu0 %v6057_v12 }
  0x6f   :  { %4660 = vmatpush3.bf16.msra.mxu1 %v6165_v26 }
  0x70   :  { %505 = vmatmul.mubr.f32.vlgmr.msra.gmra.mrb[0].mxu0 %v5933_v0  ;;  %4661 = vmatprep.subr.bf16.mxu1 %v5934_v48 }
  0x71   :  { %4670 = vmatpush1.bf16.msra.mxu0 %v6059_v15  ;;  %671 = vmatprep.mubr.f32.mxu0 %v5933_v0 }
  0x72   :  { %4672 = vmatprep.subr.bf16.mxu0 %v6062_v16 }
  0x73   :  { %4663 = vmatpush3.bf16.msra.mxu1 %v6175_v29 }
  0x74   :  { %4664 = vmatprep.subr.bf16.mxu1 %v5934_v48 }
  0x75   :  { %4674 = vmatpush1.bf16.msra.mxu0 %v6070_v22 }
  0x76   :  { %4676 = vmatprep.subr.bf16.mxu0 %v6073_v23 }
  0x77   :  { %4666 = vmatpush3.bf16.msra.mxu1 %v6184_v34 }
  0x78   :  { %4699 = vmatprep.subr.bf16.mxu1 %v5934_v48 }
  0x79   :  { %4678 = vmatpush1.bf16.msra.mxu0 %v6081_v31 }
  0x7a   :  { %3997 = vmatmul.mubr.f32.vlgmr.msra.gmra.mrb[8].mxu1 %v5933_v0  ;;  %4680 = vmatprep.subr.bf16.mxu0 %v6084_v33 }
  0x7b   :  { %4701 = vmatpush3.bf16.msra.mxu1 %v6087_v40  ;;  %4031 = vmatprep.mubr.msk.f32.mxu1 %vm5935_vm1, %v5933_v0 }
  0x7c   :  { %4702 = vmatprep.subr.bf16.mxu1 %v5934_v48 }
  0x7d   :  { %4682 = vmatpush1.bf16.msra.mxu0 %v6094_v42 }
  0x7e   :  { %4684 = vmatprep.subr.bf16.mxu0 %v6097_v45 }
  0x7f   :  { %4704 = vmatpush3.bf16.msra.mxu1 %v6103_v51 }
  0x80   :  { %4705 = vmatprep.subr.bf16.mxu1 %v5934_v48 }
  0x81   :  { %4686 = vmatpush1.bf16.msra.mxu0 %v6110_v53 }
  0x82   :  { %4688 = vmatprep.subr.bf16.mxu0 %v6113_v56 }
  0x83   :  { %4707 = vmatpush3.bf16.msra.mxu1 %v6119_v61 }
  0x84   :  { %4708 = vmatprep.subr.bf16.mxu1 %v5934_v48 }
  0x85   :  { %4690 = vmatpush1.bf16.msra.mxu0 %v6126_v63 }
  0x86   :  { %4692 = vmatprep.subr.bf16.mxu0 %v6129_v3 }
  0x87   :  { %4710 = vmatpush3.bf16.msra.mxu1 %v6135_v8 }
  0x88   :  { %4711 = vmatprep.subr.bf16.mxu1 %v5934_v48 }
  0x89   :  { %4694 = vmatpush1.bf16.msra.mxu0 %v6142_v10 }
  0x8a   :  { %4696 = vmatprep.subr.bf16.mxu0 %v6145_v14 }
  0x8b   :  { %4713 = vmatpush3.bf16.msra.mxu1 %v6151_v19 }
  0x8c   :  { %4714 = vmatprep.subr.bf16.mxu1 %v5934_v48 }
  0x8d   :  { %4698 = vmatpush1.bf16.msra.mxu0 %v6158_v21 }
  0x8e   :  { %4724 = vmatprep.subr.bf16.mxu0 %v6057_v12 }
  0x8f   :  { %4716 = vmatpush3.bf16.msra.mxu1 %v6165_v26 }
  0x90   :  { %4717 = vmatprep.subr.bf16.mxu1 %v5934_v48 }
  0x93   :  { %4719 = vmatpush3.bf16.msra.mxu1 %v6175_v29 }
  0x94   :  { %4720 = vmatprep.subr.bf16.mxu1 %v5934_v48 }
  0x97   :  { %4722 = vmatpush3.bf16.msra.mxu1 %v6184_v34 }
  0x98   :  { %4755 = vmatprep.subr.bf16.mxu1 %v5934_v48 }
 0x12d   :  { %v3954_v41 = vpop.f32.mrb[0].mxu1 }
 0x12e   :  { %v6230_v43 = vadd.f32 %v3954_v41, %v111_v39  ;;  %v319_v44 = vpop.f32.mrb[1].mxu1 }
 0x12f   :  { %v320_v35 = vadd.f32 %v319_v44, %v111_v39 }
 0x131   :  { %v3957_v46 = vpop.f32.mrb[2].mxu1 }
 0x132   :  { %v6232_v47 = vadd.f32 %v3957_v46, %v111_v39  ;;  %v329_v49 = vpop.f32.mrb[3].mxu1 }
 0x133   :  { %v6234_v50 = vadd.f32 %v329_v49, %v111_v39 }
 0x135   :  { %v3960_v54 = vpop.f32.mrb[4].mxu1 }
 0x136   :  { %v6237_v55 = vadd.f32 %v3960_v54, %v111_v39  ;;  %v339_v57 = vpop.f32.mrb[5].mxu1 }
 0x137   :  { %v6243_v59 = vadd.f32 %v339_v57, %v111_v39 }
 0x139   :  { %v3963_v60 = vpop.f32.mrb[6].mxu1 }
 0x13a   :  { %v6245_v1 = vadd.f32 %v3963_v60, %v111_v39  ;;  %v349_v2 = vpop.f32.mrb[7].mxu1 }
 0x13b   :  { %v6249_v7 = vadd.f32 %v349_v2, %v111_v39 }
 0x143   :  { %v506_v62 = vpop.f32.mrb[0].mxu0 }
 0x144   :  { %v5595_v4 = vadd.f32 %v506_v62, %v6241_v58  ;;  %v508_v6 = vpop.f32.mrb[1].mxu0 }
 0x145   :  { %v5596_v13 = vadd.f32 %v508_v6, %v6253_v11 }
 0x146   :  { %v3590_v9 = vmul.f32 -1.442695, %v5595_v4 }
 0x147   :  { %v3591_v20 = vmul.f32 -1.442695, %v5596_v13 }
 0x148   :  { %5670 = vpow2.f32 %v3590_v9 }
 0x149   :  { %5672 = vpow2.f32 %v3591_v20 }
 0x14d   :  { %v577_v17 = vpop.f32.mrb[8].mxu1 }
 0x14e   :  { %v3998_v18 = vpop.f32.mrb[9].mxu1  ;;  %v595_v28 = vadd.f32 %v6256_v27, %v577_v17 }
 0x152   :  { %v5671_v24 = vpop.eup %5670 }
 0x153   :  { %v585_v25 = vadd.f32 1.0, %v5671_v24  ;;  %v5673_v30 = vpop.eup %5672 }
 0x154   :  { %v592_v46 = vadd.f32 1.0, %v5673_v30 }
 0x155   :  { %5674 = vrcp.f32 %v585_v25 }
 0x15f   :  { %v5675_v32 = vpop.eup %5674 }
 0x160   :  { %v596_v41 = vmul.f32 %v5675_v32, %v595_v28 }
 0x162   :  { %v597_v38 = vadd.f32 %v596_v41, %v320_v35 }
 0x164   :  { %5676 = vtanh.f32 %v597_v38 }
 0x165   :  { %5678 = vrcp.f32 %v592_v46 }
 0x16e   :  { %v5677_v49 = vpop.eup %5676 }
 0x16f   :  { %v599_v54 = vsub.f32 0.0, %v5677_v49  ;;  %v5679_v57 = vpop.eup %5678 }
 0x171   :  { %v600_v60 = vmul.f32 %v5679_v57, %v599_v54 }
 0x173   :  { %v6259_v62 = vadd.f32 %v5677_v49, %v600_v60 }
 0x175   :  { %672 = vmatmul.mubr.f32.vlgmr.msra.gmra.mrb[2].mxu0 %v6259_v62  ;;  %4032 = vmatmul.mubr.f32.vlgmr.msra.gmra.mrb[10].mxu1 %v6259_v62 }
 0x176   :  { %4726 = vmatpush1.bf16.msra.mxu0 %v6059_v15  ;;  %4757 = vmatpush3.bf16.msra.mxu1 %v6087_v40 }
 0x177   :  { %4728 = vmatprep.subr.bf16.mxu0 %v6062_v16  ;;  %4758 = vmatprep.subr.bf16.mxu1 %v5934_v48 }
 0x178   :  { %839 = vmatprep.mubr.f32.mxu0 %v5933_v0  ;;  %4066 = vmatprep.mubr.msk.f32.mxu1 %vm5935_vm1, %v5933_v0 }
 0x17a   :  { %4730 = vmatpush1.bf16.msra.mxu0 %v6070_v22  ;;  %4760 = vmatpush3.bf16.msra.mxu1 %v6103_v51 }
 0x17b   :  { %4732 = vmatprep.subr.bf16.mxu0 %v6073_v23  ;;  %4761 = vmatprep.subr.bf16.mxu1 %v5934_v48 }
 0x17e   :  { %4734 = vmatpush1.bf16.msra.mxu0 %v6081_v31  ;;  %4763 = vmatpush3.bf16.msra.mxu1 %v6119_v61 }
 0x17f   :  { %4736 = vmatprep.subr.bf16.mxu0 %v6084_v33  ;;  %4764 = vmatprep.subr.bf16.mxu1 %v5934_v48 }
 0x182   :  { %4738 = vmatpush1.bf16.msra.mxu0 %v6094_v42  ;;  %4766 = vmatpush3.bf16.msra.mxu1 %v6135_v8 }
 0x183   :  { %4740 = vmatprep.subr.bf16.mxu0 %v6097_v45  ;;  %4767 = vmatprep.subr.bf16.mxu1 %v5934_v48 }
 0x186   :  { %4742 = vmatpush1.bf16.msra.mxu0 %v6110_v53  ;;  %4769 = vmatpush3.bf16.msra.mxu1 %v6151_v19 }
 0x187   :  { %4744 = vmatprep.subr.bf16.mxu0 %v6113_v56  ;;  %4770 = vmatprep.subr.bf16.mxu1 %v5934_v48 }
 0x18a   :  { %4746 = vmatpush1.bf16.msra.mxu0 %v6126_v63  ;;  %4772 = vmatpush3.bf16.msra.mxu1 %v6165_v26 }
 0x18b   :  { %4748 = vmatprep.subr.bf16.mxu0 %v6129_v3  ;;  %4773 = vmatprep.subr.bf16.mxu1 %v5934_v48 }
 0x18e   :  { %4750 = vmatpush1.bf16.msra.mxu0 %v6142_v10  ;;  %4775 = vmatpush3.bf16.msra.mxu1 %v6175_v29 }
 0x18f   :  { %4752 = vmatprep.subr.bf16.mxu0 %v6145_v14  ;;  %4776 = vmatprep.subr.bf16.mxu1 %v5934_v48 }
 0x192   :  { %4754 = vmatpush1.bf16.msra.mxu0 %v6158_v21  ;;  %4778 = vmatpush3.bf16.msra.mxu1 %v6184_v34 }
 0x193   :  { %4780 = vmatprep.subr.bf16.mxu0 %v6057_v12  ;;  %4811 = vmatprep.subr.bf16.mxu1 %v5934_v48 }
 0x248   :  { %v673_v39 = vpop.f32.mrb[2].mxu0  ;;  %v744_v44 = vpop.f32.mrb[10].mxu1 }
 0x249   :  { %v5597_v2 = vadd.f32 %v673_v39, %v6241_v58  ;;  %v675_v4 = vpop.f32.mrb[3].mxu0  ;;  %v4033_v6 = vpop.f32.mrb[11].mxu1  ;;  %v762_v25 = vadd.f32 %v6256_v27, %v744_v44 }
 0x24a   :  { %v5598_v13 = vadd.f32 %v675_v4, %v6253_v11 }
 0x24b   :  { %v3592_v9 = vmul.f32 -1.442695, %v5597_v2 }
 0x24c   :  { %v3593_v17 = vmul.f32 -1.442695, %v5598_v13 }
 0x24d   :  { %5680 = vpow2.f32 %v3592_v9 }
 0x24e   :  { %5682 = vpow2.f32 %v3593_v17 }
 0x257   :  { %v5681_v18 = vpop.eup %5680 }
 0x258   :  { %v752_v20 = vadd.f32 1.0, %v5681_v18  ;;  %v5683_v24 = vpop.eup %5682 }
 0x259   :  { %v759_v35 = vadd.f32 1.0, %v5683_v24 }
 0x25a   :  { %5684 = vrcp.f32 %v752_v20 }
 0x264   :  { %v5685_v28 = vpop.eup %5684 }
 0x265   :  { %v763_v30 = vmul.f32 %v5685_v28, %v762_v25 }
 0x267   :  { %v764_v32 = vadd.f32 %v763_v30, %v6230_v43 }
 0x269   :  { %5686 = vtanh.f32 %v764_v32 }
 0x26a   :  { %5688 = vrcp.f32 %v759_v35 }
 0x273   :  { %v5687_v41 = vpop.eup %5686 }
 0x274   :  { %v766_v46 = vsub.f32 %v6259_v62, %v5687_v41  ;;  %v5689_v38 = vpop.eup %5688 }
 0x276   :  { %v767_v49 = vmul.f32 %v5689_v38, %v766_v46 }
 0x278   :  { %v6303_v54 = vadd.f32 %v5687_v41, %v767_v49 }
 0x27a   :  { %840 = vmatmul.mubr.f32.vlgmr.msra.gmra.mrb[4].mxu0 %v6303_v54  ;;  %4067 = vmatmul.mubr.f32.vlgmr.msra.gmra.mrb[12].mxu1 %v6303_v54 }
 0x27b   :  { %4782 = vmatpush1.bf16.msra.mxu0 %v6059_v15  ;;  %4813 = vmatpush3.bf16.msra.mxu1 %v6087_v40 }
 0x27c   :  { %4784 = vmatprep.subr.bf16.mxu0 %v6062_v16  ;;  %4814 = vmatprep.subr.bf16.mxu1 %v5934_v48 }
 0x27d   :  { %1007 = vmatprep.mubr.f32.mxu0 %v5933_v0  ;;  %4101 = vmatprep.mubr.msk.f32.mxu1 %vm5935_vm1, %v5933_v0 }
 0x27f   :  { %4786 = vmatpush1.bf16.msra.mxu0 %v6070_v22  ;;  %4816 = vmatpush3.bf16.msra.mxu1 %v6103_v51 }
 0x280   :  { %4788 = vmatprep.subr.bf16.mxu0 %v6073_v23  ;;  %4817 = vmatprep.subr.bf16.mxu1 %v5934_v48 }
 0x283   :  { %4790 = vmatpush1.bf16.msra.mxu0 %v6081_v31  ;;  %4819 = vmatpush3.bf16.msra.mxu1 %v6119_v61 }
 0x284   :  { %4792 = vmatprep.subr.bf16.mxu0 %v6084_v33  ;;  %4820 = vmatprep.subr.bf16.mxu1 %v5934_v48 }
 0x287   :  { %4794 = vmatpush1.bf16.msra.mxu0 %v6094_v42  ;;  %4822 = vmatpush3.bf16.msra.mxu1 %v6135_v8 }
 0x288   :  { %4796 = vmatprep.subr.bf16.mxu0 %v6097_v45  ;;  %4823 = vmatprep.subr.bf16.mxu1 %v5934_v48 }
 0x28b   :  { %4798 = vmatpush1.bf16.msra.mxu0 %v6110_v53  ;;  %4825 = vmatpush3.bf16.msra.mxu1 %v6151_v19 }
 0x28c   :  { %4800 = vmatprep.subr.bf16.mxu0 %v6113_v56  ;;  %4826 = vmatprep.subr.bf16.mxu1 %v5934_v48 }
 0x28f   :  { %4802 = vmatpush1.bf16.msra.mxu0 %v6126_v63  ;;  %4828 = vmatpush3.bf16.msra.mxu1 %v6165_v26 }
 0x290   :  { %4804 = vmatprep.subr.bf16.mxu0 %v6129_v3  ;;  %4829 = vmatprep.subr.bf16.mxu1 %v5934_v48 }
 0x293   :  { %4806 = vmatpush1.bf16.msra.mxu0 %v6142_v10  ;;  %4831 = vmatpush3.bf16.msra.mxu1 %v6175_v29 }
 0x294   :  { %4808 = vmatprep.subr.bf16.mxu0 %v6145_v14  ;;  %4832 = vmatprep.subr.bf16.mxu1 %v5934_v48 }
 0x297   :  { %4810 = vmatpush1.bf16.msra.mxu0 %v6158_v21  ;;  %4834 = vmatpush3.bf16.msra.mxu1 %v6184_v34 }
 0x298   :  { %4836 = vmatprep.subr.bf16.mxu0 %v6057_v12  ;;  %4867 = vmatprep.subr.bf16.mxu1 %v5934_v48 }
 0x34d   :  { %v841_v43 = vpop.f32.mrb[4].mxu0  ;;  %v912_v57 = vpop.f32.mrb[12].mxu1 }
 0x34e   :  { %v5599_v60 = vadd.f32 %v841_v43, %v6241_v58  ;;  %v843_v39 = vpop.f32.mrb[5].mxu0  ;;  %v4068_v44 = vpop.f32.mrb[13].mxu1  ;;  %v930_v18 = vadd.f32 %v6256_v27, %v912_v57 }
 0x34f   :  { %v5600_v4 = vadd.f32 %v843_v39, %v6253_v11 }
 0x350   :  { %v3594_v2 = vmul.f32 -1.442695, %v5599_v60 }
 0x351   :  { %v3595_v6 = vmul.f32 -1.442695, %v5600_v4 }
 0x352   :  { %5690 = vpow2.f32 %v3594_v2 }
 0x353   :  { %5692 = vpow2.f32 %v3595_v6 }
 0x35c   :  { %v5691_v9 = vpop.eup %5690 }
 0x35d   :  { %v920_v13 = vadd.f32 1.0, %v5691_v9  ;;  %v5693_v17 = vpop.eup %5692 }
 0x35e   :  { %v927_v28 = vadd.f32 1.0, %v5693_v17 }
 0x35f   :  { %5694 = vrcp.f32 %v920_v13 }
 0x369   :  { %v5695_v20 = vpop.eup %5694 }
 0x36a   :  { %v931_v24 = vmul.f32 %v5695_v20, %v930_v18 }
 0x36c   :  { %v932_v25 = vadd.f32 %v931_v24, %v6234_v50 }
 0x36e   :  { %5696 = vtanh.f32 %v932_v25 }
 0x36f   :  { %5698 = vrcp.f32 %v927_v28 }
 0x378   :  { %v5697_v30 = vpop.eup %5696 }
 0x379   :  { %v934_v32 = vsub.f32 %v6303_v54, %v5697_v30  ;;  %v5699_v35 = vpop.eup %5698 }
 0x37b   :  { %v935_v41 = vmul.f32 %v5699_v35, %v934_v32 }
 0x37d   :  { %v6347_v46 = vadd.f32 %v5697_v30, %v935_v41 }
 0x37f   :  { %1008 = vmatmul.mubr.f32.vlgmr.msra.gmra.mrb[6].mxu0 %v6347_v46  ;;  %4102 = vmatmul.mubr.f32.vlgmr.msra.gmra.mrb[14].mxu1 %v6347_v46 }
 0x380   :  { %4838 = vmatpush1.bf16.msra.mxu0 %v6059_v15  ;;  %4869 = vmatpush3.bf16.msra.mxu1 %v6087_v40 }
 0x381   :  { %4840 = vmatprep.subr.bf16.mxu0 %v6062_v16  ;;  %4870 = vmatprep.subr.bf16.mxu1 %v5934_v48 }
 0x382   :  { %1175 = vmatprep.mubr.f32.mxu0 %v5933_v0  ;;  %4136 = vmatprep.mubr.msk.f32.mxu1 %vm5935_vm1, %v5933_v0 }
 0x384   :  { %4842 = vmatpush1.bf16.msra.mxu0 %v6070_v22  ;;  %4872 = vmatpush3.bf16.msra.mxu1 %v6103_v51 }
 0x385   :  { %4844 = vmatprep.subr.bf16.mxu0 %v6073_v23  ;;  %4873 = vmatprep.subr.bf16.mxu1 %v5934_v48 }
 0x388   :  { %4846 = vmatpush1.bf16.msra.mxu0 %v6081_v31  ;;  %4875 = vmatpush3.bf16.msra.mxu1 %v6119_v61 }
 0x389   :  { %4848 = vmatprep.subr.bf16.mxu0 %v6084_v33  ;;  %4876 = vmatprep.subr.bf16.mxu1 %v5934_v48 }
 0x38c   :  { %4850 = vmatpush1.bf16.msra.mxu0 %v6094_v42  ;;  %4878 = vmatpush3.bf16.msra.mxu1 %v6135_v8 }
 0x38d   :  { %4852 = vmatprep.subr.bf16.mxu0 %v6097_v45  ;;  %4879 = vmatprep.subr.bf16.mxu1 %v5934_v48 }
 0x390   :  { %4854 = vmatpush1.bf16.msra.mxu0 %v6110_v53  ;;  %4881 = vmatpush3.bf16.msra.mxu1 %v6151_v19 }
 0x391   :  { %4856 = vmatprep.subr.bf16.mxu0 %v6113_v56  ;;  %4882 = vmatprep.subr.bf16.mxu1 %v5934_v48 }
 0x394   :  { %4858 = vmatpush1.bf16.msra.mxu0 %v6126_v63  ;;  %4884 = vmatpush3.bf16.msra.mxu1 %v6165_v26 }
 0x395   :  { %4860 = vmatprep.subr.bf16.mxu0 %v6129_v3  ;;  %4885 = vmatprep.subr.bf16.mxu1 %v5934_v48 }
 0x398   :  { %4862 = vmatpush1.bf16.msra.mxu0 %v6142_v10  ;;  %4887 = vmatpush3.bf16.msra.mxu1 %v6175_v29 }
 0x399   :  { %4864 = vmatprep.subr.bf16.mxu0 %v6145_v14  ;;  %4888 = vmatprep.subr.bf16.mxu1 %v5934_v48 }
 0x39c   :  { %4866 = vmatpush1.bf16.msra.mxu0 %v6158_v21  ;;  %4890 = vmatpush3.bf16.msra.mxu1 %v6184_v34 }
 0x39d   :  { %4892 = vmatprep.subr.bf16.mxu0 %v6057_v12  ;;  %4923 = vmatprep.subr.bf16.mxu1 %v5934_v48 }
 0x452   :  { %v1009_v50 = vpop.f32.mrb[6].mxu0  ;;  %v1080_v38 = vpop.f32.mrb[14].mxu1 }
 0x453   :  { %v5601_v49 = vadd.f32 %v1009_v50, %v6241_v58  ;;  %v1011_v43 = vpop.f32.mrb[7].mxu0  ;;  %v4103_v57 = vpop.f32.mrb[15].mxu1  ;;  %v1098_v9 = vadd.f32 %v6256_v27, %v1080_v38 }
 0x454   :  { %v5602_v39 = vadd.f32 %v1011_v43, %v6253_v11 }
 0x455   :  { %v3596_v60 = vmul.f32 -1.442695, %v5601_v49 }
 0x456   :  { %v3597_v44 = vmul.f32 -1.442695, %v5602_v39 }
 0x457   :  { %5700 = vpow2.f32 %v3596_v60 }
 0x458   :  { %5702 = vpow2.f32 %v3597_v44 }
 0x461   :  { %v5701_v2 = vpop.eup %5700 }
 0x462   :  { %v1088_v4 = vadd.f32 1.0, %v5701_v2  ;;  %v5703_v6 = vpop.eup %5702 }
 0x463   :  { %v1095_v20 = vadd.f32 1.0, %v5703_v6 }
 0x464   :  { %5704 = vrcp.f32 %v1088_v4 }
 0x46e   :  { %v5705_v13 = vpop.eup %5704 }
 0x46f   :  { %v1099_v17 = vmul.f32 %v5705_v13, %v1098_v9 }
 0x471   :  { %v1100_v18 = vadd.f32 %v1099_v17, %v6232_v47 }
 0x473   :  { %5706 = vtanh.f32 %v1100_v18 }
 0x474   :  { %5708 = vrcp.f32 %v1095_v20 }
 0x47d   :  { %v5707_v24 = vpop.eup %5706 }
 0x47e   :  { %v1102_v25 = vsub.f32 %v6347_v46, %v5707_v24  ;;  %v5709_v28 = vpop.eup %5708 }
 0x480   :  { %v1103_v30 = vmul.f32 %v5709_v28, %v1102_v25 }
 0x482   :  { %v6391_v32 = vadd.f32 %v5707_v24, %v1103_v30 }
 0x484   :  { %1176 = vmatmul.mubr.f32.vlgmr.msra.gmra.mrb[8].mxu0 %v6391_v32  ;;  %4137 = vmatmul.mubr.f32.vlgmr.msra.gmra.mrb[16].mxu1 %v6391_v32 }
 0x485   :  { %4894 = vmatpush1.bf16.msra.mxu0 %v6059_v15  ;;  %4925 = vmatpush3.bf16.msra.mxu1 %v6087_v40 }
 0x486   :  { %4896 = vmatprep.subr.bf16.mxu0 %v6062_v16  ;;  %4926 = vmatprep.subr.bf16.mxu1 %v5934_v48 }
 0x487   :  { %1343 = vmatprep.mubr.f32.mxu0 %v5933_v0  ;;  %4171 = vmatprep.mubr.msk.f32.mxu1 %vm5935_vm1, %v5933_v0 }
 0x489   :  { %4898 = vmatpush1.bf16.msra.mxu0 %v6070_v22  ;;  %4928 = vmatpush3.bf16.msra.mxu1 %v6103_v51 }
 0x48a   :  { %4900 = vmatprep.subr.bf16.mxu0 %v6073_v23  ;;  %4929 = vmatprep.subr.bf16.mxu1 %v5934_v48 }
 0x48d   :  { %4902 = vmatpush1.bf16.msra.mxu0 %v6081_v31  ;;  %4931 = vmatpush3.bf16.msra.mxu1 %v6119_v61 }
 0x48e   :  { %4904 = vmatprep.subr.bf16.mxu0 %v6084_v33  ;;  %4932 = vmatprep.subr.bf16.mxu1 %v5934_v48 }
 0x491   :  { %4906 = vmatpush1.bf16.msra.mxu0 %v6094_v42  ;;  %4934 = vmatpush3.bf16.msra.mxu1 %v6135_v8 }
 0x492   :  { %4908 = vmatprep.subr.bf16.mxu0 %v6097_v45  ;;  %4935 = vmatprep.subr.bf16.mxu1 %v5934_v48 }
 0x495   :  { %4910 = vmatpush1.bf16.msra.mxu0 %v6110_v53  ;;  %4937 = vmatpush3.bf16.msra.mxu1 %v6151_v19 }
 0x496   :  { %4912 = vmatprep.subr.bf16.mxu0 %v6113_v56  ;;  %4938 = vmatprep.subr.bf16.mxu1 %v5934_v48 }
 0x499   :  { %4914 = vmatpush1.bf16.msra.mxu0 %v6126_v63  ;;  %4940 = vmatpush3.bf16.msra.mxu1 %v6165_v26 }
 0x49a   :  { %4916 = vmatprep.subr.bf16.mxu0 %v6129_v3  ;;  %4941 = vmatprep.subr.bf16.mxu1 %v5934_v48 }
 0x49d   :  { %4918 = vmatpush1.bf16.msra.mxu0 %v6142_v10  ;;  %4943 = vmatpush3.bf16.msra.mxu1 %v6175_v29 }
 0x49e   :  { %4920 = vmatprep.subr.bf16.mxu0 %v6145_v14  ;;  %4944 = vmatprep.subr.bf16.mxu1 %v5934_v48 }
 0x4a1   :  { %4922 = vmatpush1.bf16.msra.mxu0 %v6158_v21  ;;  %4946 = vmatpush3.bf16.msra.mxu1 %v6184_v34 }
 0x4a2   :  { %4948 = vmatprep.subr.bf16.mxu0 %v6057_v12  ;;  %4979 = vmatprep.subr.bf16.mxu1 %v5934_v48 }
 0x557   :  { %v1177_v47 = vpop.f32.mrb[8].mxu0  ;;  %v1248_v35 = vpop.f32.mrb[16].mxu1 }
 0x558   :  { %v5603_v41 = vadd.f32 %v1177_v47, %v6241_v58  ;;  %v1179_v50 = vpop.f32.mrb[9].mxu0  ;;  %v4138_v38 = vpop.f32.mrb[17].mxu1  ;;  %v1266_v2 = vadd.f32 %v6256_v27, %v1248_v35 }
 0x559   :  { %v5604_v43 = vadd.f32 %v1179_v50, %v6253_v11 }
 0x55a   :  { %v3598_v49 = vmul.f32 -1.442695, %v5603_v41 }
 0x55b   :  { %v3599_v57 = vmul.f32 -1.442695, %v5604_v43 }
 0x55c   :  { %5710 = vpow2.f32 %v3598_v49 }
 0x55d   :  { %5712 = vpow2.f32 %v3599_v57 }
 0x566   :  { %v5711_v60 = vpop.eup %5710 }
 0x567   :  { %v1256_v39 = vadd.f32 1.0, %v5711_v60  ;;  %v5713_v44 = vpop.eup %5712 }
 0x568   :  { %v1263_v13 = vadd.f32 1.0, %v5713_v44 }
 0x569   :  { %5714 = vrcp.f32 %v1256_v39 }
 0x573   :  { %v5715_v4 = vpop.eup %5714 }
 0x574   :  { %v1267_v6 = vmul.f32 %v5715_v4, %v1266_v2 }
 0x576   :  { %v1268_v9 = vadd.f32 %v1267_v6, %v6243_v59 }
 0x578   :  { %5716 = vtanh.f32 %v1268_v9 }
 0x579   :  { %5718 = vrcp.f32 %v1263_v13 }
 0x582   :  { %v5717_v17 = vpop.eup %5716 }
 0x583   :  { %v1270_v18 = vsub.f32 %v6391_v32, %v5717_v17  ;;  %v5719_v20 = vpop.eup %5718 }
 0x585   :  { %v1271_v24 = vmul.f32 %v5719_v20, %v1270_v18  ;;  %v1787_v18 = vld [vmem:[#allocation6] sm:$0xff]  ;;  %v1790_v20 = vld [vmem:[#allocation6 + $0x18] sm:$0xff] }
 0x587   :  { %v6435_v25 = vadd.f32 %v5717_v17, %v1271_v24 }
 0x589   :  { %1344 = vmatmul.mubr.f32.vlgmr.msra.gmra.mrb[10].mxu0 %v6435_v25  ;;  %4172 = vmatmul.mubr.f32.vlgmr.msra.gmra.mrb[18].mxu1 %v6435_v25 }
 0x58a   :  { %4950 = vmatpush1.bf16.msra.mxu0 %v6059_v15  ;;  %4981 = vmatpush3.bf16.msra.mxu1 %v6087_v40 }
 0x58b   :  { %4952 = vmatprep.subr.bf16.mxu0 %v6062_v16  ;;  %4982 = vmatprep.subr.bf16.mxu1 %v5934_v48 }
 0x58c   :  { %1511 = vmatprep.mubr.f32.mxu0 %v5933_v0  ;;  %4206 = vmatprep.mubr.msk.f32.mxu1 %vm5935_vm1, %v5933_v0 }
 0x58e   :  { %4954 = vmatpush1.bf16.msra.mxu0 %v6070_v22  ;;  %4984 = vmatpush3.bf16.msra.mxu1 %v6103_v51 }
 0x58f   :  { %4956 = vmatprep.subr.bf16.mxu0 %v6073_v23  ;;  %4985 = vmatprep.subr.bf16.mxu1 %v5934_v48 }
 0x592   :  { %4958 = vmatpush1.bf16.msra.mxu0 %v6081_v31  ;;  %4987 = vmatpush3.bf16.msra.mxu1 %v6119_v61 }
 0x593   :  { %4960 = vmatprep.subr.bf16.mxu0 %v6084_v33  ;;  %4988 = vmatprep.subr.bf16.mxu1 %v5934_v48 }
 0x596   :  { %4962 = vmatpush1.bf16.msra.mxu0 %v6094_v42  ;;  %4990 = vmatpush3.bf16.msra.mxu1 %v6135_v8 }
 0x597   :  { %4964 = vmatprep.subr.bf16.mxu0 %v6097_v45  ;;  %4991 = vmatprep.subr.bf16.mxu1 %v5934_v48 }
 0x59a   :  { %4966 = vmatpush1.bf16.msra.mxu0 %v6110_v53  ;;  %4993 = vmatpush3.bf16.msra.mxu1 %v6151_v19 }
 0x59b   :  { %4968 = vmatprep.subr.bf16.mxu0 %v6113_v56  ;;  %4994 = vmatprep.subr.bf16.mxu1 %v5934_v48 }
 0x59e   :  { %4970 = vmatpush1.bf16.msra.mxu0 %v6126_v63  ;;  %4996 = vmatpush3.bf16.msra.mxu1 %v6165_v26 }
 0x59f   :  { %4972 = vmatprep.subr.bf16.mxu0 %v6129_v3  ;;  %4997 = vmatprep.subr.bf16.mxu1 %v5934_v48 }
 0x5a2   :  { %4974 = vmatpush1.bf16.msra.mxu0 %v6142_v10  ;;  %4999 = vmatpush3.bf16.msra.mxu1 %v6175_v29 }
 0x5a3   :  { %4976 = vmatprep.subr.bf16.mxu0 %v6145_v14  ;;  %5000 = vmatprep.subr.bf16.mxu1 %v5934_v48 }
 0x5a6   :  { %4978 = vmatpush1.bf16.msra.mxu0 %v6158_v21  ;;  %5002 = vmatpush3.bf16.msra.mxu1 %v6184_v34 }
 0x5a7   :  { %5004 = vmatprep.subr.bf16.mxu0 %v6057_v12  ;;  %5035 = vmatprep.subr.bf16.mxu1 %v5934_v48 }
 0x65c   :  { %v1345_v59 = vpop.f32.mrb[10].mxu0  ;;  %v1416_v28 = vpop.f32.mrb[18].mxu1 }
 0x65d   :  { %v5605_v30 = vadd.f32 %v1345_v59, %v6241_v58  ;;  %v1347_v47 = vpop.f32.mrb[11].mxu0  ;;  %v4173_v35 = vpop.f32.mrb[19].mxu1  ;;  %v1434_v12 = vadd.f32 %v6256_v27, %v1416_v28  ;;  %v1794_v59 = vld [vmem:[#allocation6 + $0x38] sm:$0xff]  ;;  %v1797_v28 = vld [vmem:[#allocation6 + $0x50] sm:$0xff] }
 0x65e   :  { %v5606_v50 = vadd.f32 %v1347_v47, %v6253_v11  ;;  %v1795_v47 = vld [vmem:[#allocation6 + $0x40] sm:$0xff]  ;;  %v1798_v35 = vld [vmem:[#allocation6 + $0x58] sm:$0xff] }
 0x65f   :  { %v3600_v41 = vmul.f32 -1.442695, %v5605_v30 }
 0x660   :  { %v3601_v38 = vmul.f32 -1.442695, %v5606_v50  ;;  %v5063_v50 = vpack.c.bf16 %v1797_v28, %v1794_v59  ;;  %v1825_v59 = vld [vmem:[#allocation6 + $0x130] sm:$0xff]  ;;  %v1828_v28 = vld [vmem:[#allocation6 + $0x148] sm:$0xff] }
 0x661   :  { %5720 = vpow2.f32 %v3600_v41  ;;  %v5061_v41 = vpack.c.bf16 %v1790_v20, %v1787_v18  ;;  %v1820_v18 = vld [vmem:[#allocation6 + $0x108] sm:$0xff] }
 0x662   :  { %5722 = vpow2.f32 %v3601_v38  ;;  %v1793_v38 = vld [vmem:[#allocation6 + $0x30] sm:$0xff]  ;;  %v1824_v20 = vld [vmem:[#allocation6 + $0x128] sm:$0xff] }
 0x66b   :  { %v5721_v49 = vpop.eup %5720 }
 0x66c   :  { %v1424_v43 = vadd.f32 1.0, %v5721_v49  ;;  %v5723_v57 = vpop.eup %5722  ;;  %v1800_v49 = vld [vmem:[#allocation6 + $0x68] sm:$0xff] }
 0x66d   :  { %v1431_v2 = vadd.f32 1.0, %v5723_v57  ;;  %v1803_v57 = vld [vmem:[#allocation6 + $0x80] sm:$0xff] }
 0x66e   :  { %5724 = vrcp.f32 %v1424_v43  ;;  %v5095_v43 = vpack.c.bf16 %v1798_v35, %v1795_v47  ;;  %v5115_v35 = vpack.c.bf16 %v1828_v28, %v1825_v59  ;;  %v2136_v59 = vld [vmem:[#allocation8 + $0x2c0] sm:$0xff] }
 0x66f   :  { %v2132_v28 = vld [vmem:[#allocation8 + $0x2a0] sm:$0xff] }
 0x678   :  { %v5725_v60 = vpop.eup %5724 }
 0x679   :  { %v1435_v39 = vmul.f32 %v5725_v60, %v1434_v12  ;;  %v1801_v12 = vld [vmem:[#allocation6 + $0x70] sm:$0xff]  ;;  %v1804_v60 = vld [vmem:[#allocation6 + $0x88] sm:$0xff] }
 0x67b   :  { %v1436_v44 = vadd.f32 %v1435_v39, %v6237_v55 }
 0x67d   :  { %5726 = vtanh.f32 %v1436_v44  ;;  %v5067_v44 = vpack.c.bf16 %v1803_v57, %v1800_v49  ;;  %v1831_v49 = vld [vmem:[#allocation6 + $0x160] sm:$0xff] }
 0x67e   :  { %5728 = vrcp.f32 %v1431_v2  ;;  %v5099_v2 = vpack.c.bf16 %v1804_v60, %v1801_v12 }
 0x687   :  { %v5727_v4 = vpop.eup %5726 }
 0x688   :  { %v1438_v6 = vsub.f32 %v6435_v25, %v5727_v4  ;;  %v5729_v9 = vpop.eup %5728 }
 0x68a   :  { %v1439_v13 = vmul.f32 %v5729_v9, %v1438_v6  ;;  %v1802_v6 = vld [vmem:[#allocation6 + $0x78] sm:$0xff] }
 0x68b   :  { %v1806_v9 = vld [vmem:[#allocation6 + $0x98] sm:$0xff] }
 0x68c   :  { %v6479_v17 = vadd.f32 %v5727_v4, %v1439_v13  ;;  %v1799_v4 = vld [vmem:[#allocation6 + $0x60] sm:$0xff]  ;;  %v1809_v13 = vld [vmem:[#allocation6 + $0xb0] sm:$0xff] }
 0x68e   :  { %1512 = vmatmul.mubr.f32.vlgmr.msra.gmra.mrb[12].mxu0 %v6479_v17  ;;  %4207 = vmatmul.mubr.f32.vlgmr.msra.gmra.mrb[20].mxu1 %v6479_v17 }
 0x68f   :  { %5006 = vmatpush1.bf16.msra.mxu0 %v6059_v15  ;;  %5037 = vmatpush3.bf16.msra.mxu1 %v6087_v40  ;;  %v1788_v15 = vld [vmem:[#allocation6 + $0x8] sm:$0xff] }
 0x690   :  { %5008 = vmatprep.subr.bf16.mxu0 %v6062_v16  ;;  %5038 = vmatprep.subr.bf16.mxu1 %v5934_v48  ;;  %v1791_v16 = vld [vmem:[#allocation6 + $0x20] sm:$0xff] }
 0x691   :  { %1679 = vmatprep.mubr.f32.mxu0 %v5933_v0  ;;  %4241 = vmatprep.mubr.msk.f32.mxu1 %vm5935_vm1, %v5933_v0 }
 0x693   :  { %5010 = vmatpush1.bf16.msra.mxu0 %v6070_v22  ;;  %5040 = vmatpush3.bf16.msra.mxu1 %v6103_v51  ;;  %v1789_v22 = vld [vmem:[#allocation6 + $0x10] sm:$0xff] }
 0x694   :  { %5012 = vmatprep.subr.bf16.mxu0 %v6073_v23  ;;  %5041 = vmatprep.subr.bf16.mxu1 %v5934_v48  ;;  %v5059_v23 = vpack.c.bf16 %v1791_v16, %v1788_v15  ;;  %v1807_v15 = vld [vmem:[#allocation6 + $0xa0] sm:$0xff]  ;;  %v1810_v16 = vld [vmem:[#allocation6 + $0xb8] sm:$0xff] }
 0x697   :  { %5014 = vmatpush1.bf16.msra.mxu0 %v6081_v31  ;;  %5043 = vmatpush3.bf16.msra.mxu1 %v6119_v61  ;;  %v1792_v31 = vld [vmem:[#allocation6 + $0x28] sm:$0xff] }
 0x698   :  { %5016 = vmatprep.subr.bf16.mxu0 %v6084_v33  ;;  %5044 = vmatprep.subr.bf16.mxu1 %v5934_v48  ;;  %v5091_v33 = vpack.c.bf16 %v1792_v31, %v1789_v22  ;;  %v5069_v22 = vpack.c.bf16 %v1802_v6, %v1799_v4  ;;  %v5103_v31 = vpack.c.bf16 %v1810_v16, %v1807_v15  ;;  %v2096_v4 = vld [vmem:[#allocation8 + $0x180] sm:$0xff]  ;;  %v2105_v15 = vld [vmem:[#allocation8 + $0x1c8] sm:$0xff] }
 0x69b   :  { %5018 = vmatpush1.bf16.msra.mxu0 %v6094_v42  ;;  %5046 = vmatpush3.bf16.msra.mxu1 %v6135_v8 }
 0x69c   :  { %5020 = vmatprep.subr.bf16.mxu0 %v6097_v45  ;;  %5047 = vmatprep.subr.bf16.mxu1 %v5934_v48 }
 0x69f   :  { %5022 = vmatpush1.bf16.msra.mxu0 %v6110_v53  ;;  %5049 = vmatpush3.bf16.msra.mxu1 %v6151_v19 }
 0x6a0   :  { %5024 = vmatprep.subr.bf16.mxu0 %v6113_v56  ;;  %5050 = vmatprep.subr.bf16.mxu1 %v5934_v48 }
 0x6a3   :  { %5026 = vmatpush1.bf16.msra.mxu0 %v6126_v63  ;;  %5052 = vmatpush3.bf16.msra.mxu1 %v6165_v26 }
 0x6a4   :  { %5028 = vmatprep.subr.bf16.mxu0 %v6129_v3  ;;  %5053 = vmatprep.subr.bf16.mxu1 %v5934_v48 }
 0x6a7   :  { %5030 = vmatpush1.bf16.msra.mxu0 %v6142_v10  ;;  %5055 = vmatpush3.bf16.msra.mxu1 %v6175_v29 }
 0x6a8   :  { %5032 = vmatprep.subr.bf16.mxu0 %v6145_v14  ;;  %5056 = vmatprep.subr.bf16.mxu1 %v5934_v48 }
 0x6ab   :  { %5034 = vmatpush1.bf16.msra.mxu0 %v6158_v21  ;;  %5058 = vmatpush3.bf16.msra.mxu1 %v6184_v34 }
 0x6ac   :  { %5060 = vmatprep.subr.bf16.mxu0 %v5059_v23  ;;  %5092 = vmatprep.subr.bf16.mxu1 %v5091_v33  ;;  %v5071_v23 = vpack.c.bf16 %v1809_v13, %v1806_v9  ;;  %v2102_v13 = vld [vmem:[#allocation8 + $0x1b0] sm:$0xff] }
 0x6ad   :  { %v6556_v16 = vpack.c.bf16 %v2105_v15, %v2102_v13  ;;  %v2122_v13 = vld [vmem:[#allocation8 + $0x250] sm:$0xff]  ;;  %v2125_v15 = vld [vmem:[#allocation8 + $0x268] sm:$0xff] }
 0x761   :  { %v1513_v40 = vpop.f32.mrb[12].mxu0  ;;  %v1584_v42 = vpop.f32.mrb[20].mxu1 }
 0x762   :  { %v5607_v45 = vadd.f32 %v1513_v40, %v6241_v58  ;;  %v1515_v51 = vpop.f32.mrb[13].mxu0  ;;  %v4208_v53 = vpop.f32.mrb[21].mxu1  ;;  %v1602_v14 = vadd.f32 %v6256_v27, %v1584_v42  ;;  %v1808_v40 = vld [vmem:[#allocation6 + $0xa8] sm:$0xff] }
 0x763   :  { %v5608_v61 = vadd.f32 %v1515_v51, %v6253_v11  ;;  %v1812_v42 = vld [vmem:[#allocation6 + $0xc8] sm:$0xff]  ;;  %v1813_v51 = vld [vmem:[#allocation6 + $0xd0] sm:$0xff] }
 0x764   :  { %v3602_v56 = vmul.f32 -1.442695, %v5607_v45  ;;  %v1815_v45 = vld [vmem:[#allocation6 + $0xe0] sm:$0xff]  ;;  %v1816_v53 = vld [vmem:[#allocation6 + $0xe8] sm:$0xff] }
 0x765   :  { %v3603_v63 = vmul.f32 -1.442695, %v5608_v61  ;;  %v5075_v61 = vpack.c.bf16 %v1815_v45, %v1812_v42  ;;  %v2115_v45 = vld [vmem:[#allocation8 + $0x218] sm:$0xff] }
 0x766   :  { %5730 = vpow2.f32 %v3602_v56 }
 0x767   :  { %5732 = vpow2.f32 %v3603_v63  ;;  %v5107_v63 = vpack.c.bf16 %v1816_v53, %v1813_v51  ;;  %v2118_v51 = vld [vmem:[#allocation8 + $0x230] sm:$0xff] }
 0x768   :  { %v6566_v53 = vpack.c.bf16 %v2118_v51, %v2115_v45  ;;  %v2134_v45 = vld [vmem:[#allocation8 + $0x2b0] sm:$0xff]  ;;  %v2137_v51 = vld [vmem:[#allocation8 + $0x2c8] sm:$0xff] }
 0x770   :  { %v5731_v3 = vpop.eup %5730 }
 0x771   :  { %v1592_v8 = vadd.f32 1.0, %v5731_v3  ;;  %v5733_v10 = vpop.eup %5732  ;;  %v1811_v3 = vld [vmem:[#allocation6 + $0xc0] sm:$0xff] }
 0x772   :  { %v1599_v29 = vadd.f32 1.0, %v5733_v10  ;;  %v1818_v10 = vld [vmem:[#allocation6 + $0xf8] sm:$0xff] }
 0x773   :  { %5734 = vrcp.f32 %v1592_v8  ;;  %v1814_v8 = vld [vmem:[#allocation6 + $0xd8] sm:$0xff] }
 0x77d   :  { %v5735_v19 = vpop.eup %5734 }
 0x77e   :  { %v1603_v21 = vmul.f32 %v5735_v19, %v1602_v14  ;;  %v1821_v14 = vld [vmem:[#allocation6 + $0x110] sm:$0xff]  ;;  %v1819_v19 = vld [vmem:[#allocation6 + $0x100] sm:$0xff] }
 0x780   :  { %v1604_v26 = vadd.f32 %v1603_v21, %v6249_v7  ;;  %v1796_v7 = vld [vmem:[#allocation6 + $0x48] sm:$0xff]  ;;  %v1822_v21 = vld [vmem:[#allocation6 + $0x118] sm:$0xff] }
 0x781   :  { %v5065_v39 = vpack.c.bf16 %v1796_v7, %v1793_v38  ;;  %v1830_v38 = vld [vmem:[#allocation6 + $0x158] sm:$0xff]  ;;  %v1833_v7 = vld [vmem:[#allocation6 + $0x170] sm:$0xff] }
 0x782   :  { %5736 = vtanh.f32 %v1604_v26  ;;  %v5077_v26 = vpack.c.bf16 %v1814_v8, %v1811_v3  ;;  %v5087_v12 = vpack.c.bf16 %v1833_v7, %v1830_v38  ;;  %v2121_v3 = vld [vmem:[#allocation8 + $0x248] sm:$0xff]  ;;  %v2124_v8 = vld [vmem:[#allocation8 + $0x260] sm:$0xff]  ;;  %v2139_v7 = vld [vmem:[#allocation8 + $0x2d8] sm:$0xff] }
 0x783   :  { %5738 = vrcp.f32 %v1599_v29  ;;  %v5079_v29 = vpack.c.bf16 %v1821_v14, %v1818_v10  ;;  %v6572_v10 = vpack.c.bf16 %v2124_v8, %v2121_v3  ;;  %v2120_v14 = vld [vmem:[#allocation8 + $0x240] sm:$0xff]  ;;  %v2143_v3 = vld [vmem:[#allocation8 + $0x2f8] sm:$0xff] }
 0x78c   :  { %v5737_v34 = vpop.eup %5736 }
 0x78d   :  { %v1606_v55 = vsub.f32 %v6479_v17, %v5737_v34  ;;  %v5739_v24 = vpop.eup %5738 }
 0x78f   :  { %v1607_v30 = vmul.f32 %v5739_v24, %v1606_v55  ;;  %v1817_v55 = vld [vmem:[#allocation6 + $0xf0] sm:$0xff]  ;;  %v1827_v24 = vld [vmem:[#allocation6 + $0x140] sm:$0xff] }
 0x790   :  { %v5083_v47 = vpack.c.bf16 %v1827_v24, %v1824_v20  ;;  %v2133_v24 = vld [vmem:[#allocation8 + $0x2a8] sm:$0xff] }
 0x791   :  { %v6521_v27 = vadd.f32 %v5737_v34, %v1607_v30  ;;  %v5111_v34 = vpack.c.bf16 %v1822_v21, %v1819_v19  ;;  %v5081_v30 = vpack.c.bf16 %v1820_v18, %v1817_v55  ;;  %v2123_v19 = vld [vmem:[#allocation8 + $0x258] sm:$0xff]  ;;  %v2126_v55 = vld [vmem:[#allocation8 + $0x270] sm:$0xff]  ;;  %v2129_v18 = vld [vmem:[#allocation8 + $0x288] sm:$0xff] }
 0x792   :  { %v6574_v21 = vpack.c.bf16 %v2123_v19, %v2120_v14  ;;  %v6580_v20 = vpack.c.bf16 %v2129_v18, %v2126_v55 }
 0x793   :  { %1680 = vmatmul.mubr.f32.vlgmr.msra.gmra.mrb[14].mxu0 %v6521_v27  ;;  %4242 = vmatmul.mubr.f32.vlgmr.msra.gmra.mrb[22].mxu1 %v6521_v27 }
 0x794   :  { %5062 = vmatpush1.bf16.msra.mxu0 %v5061_v41  ;;  %5094 = vmatpush3.bf16.msra.mxu1 %v5091_v33  ;;  %v1805_v33 = vld [vmem:[#allocation6 + $0x90] sm:$0xff]  ;;  %v1823_v41 = vld [vmem:[#allocation6 + $0x120] sm:$0xff] }
 0x795   :  { %4276 = vmatprep.mubr.f32.mxu1 %v6259_v62  ;;  %5064 = vmatprep.subr.bf16.mxu0 %v5063_v50  ;;  %v5073_v56 = vpack.c.bf16 %v1808_v40, %v1805_v33  ;;  %v1826_v50 = vld [vmem:[#allocation6 + $0x138] sm:$0xff]  ;;  %v2108_v33 = vld [vmem:[#allocation8 + $0x1e0] sm:$0xff] }
 0x796   :  { %5096 = vmatprep.subr.bf16.mxu1 %v5095_v43  ;;  %1917 = vmatprep.mubr.f32.mxu0 %v5933_v0  ;;  %v5085_v57 = vpack.c.bf16 %v1826_v50, %v1823_v41  ;;  %v2111_v40 = vld [vmem:[#allocation8 + $0x1f8] sm:$0xff]  ;;  %v2101_v41 = vld [vmem:[#allocation8 + $0x1a8] sm:$0xff] }
 0x797   :  { %v6562_v42 = vpack.c.bf16 %v2111_v40, %v2108_v33  ;;  %v2131_v33 = vld [vmem:[#allocation8 + $0x298] sm:$0xff] }
 0x798   :  { %5066 = vmatpush1.bf16.msra.mxu0 %v5065_v39  ;;  %5098 = vmatpush3.bf16.msra.mxu1 %v5095_v43  ;;  %v1834_v43 = vld [vmem:[#allocation6 + $0x178] sm:$0xff]  ;;  %v1829_v39 = vld [vmem:[#allocation6 + $0x150] sm:$0xff] }
 0x799   :  { %5068 = vmatprep.subr.bf16.mxu0 %v5067_v44  ;;  %5100 = vmatprep.subr.bf16.mxu1 %v5099_v2  ;;  %v5119_v60 = vpack.c.bf16 %v1834_v43, %v1831_v49  ;;  %v1832_v44 = vld [vmem:[#allocation6 + $0x168] sm:$0xff]  ;;  %v2142_v49 = vld [vmem:[#allocation8 + $0x2f0] sm:$0xff] }
 0x79a   :  { %v6594_v43 = vpack.c.bf16 %v2142_v49, %v2139_v7 }
 0x79c   :  { %5070 = vmatpush1.bf16.msra.mxu0 %v5069_v22  ;;  %5102 = vmatpush3.bf16.msra.mxu1 %v5099_v2  ;;  %v5089_v2 = vpack.c.bf16 %v1832_v44, %v1829_v39  ;;  %v2109_v22 = vld [vmem:[#allocation8 + $0x1e8] sm:$0xff]  ;;  %v2104_v39 = vld [vmem:[#allocation8 + $0x1c0] sm:$0xff]  ;;  %v2107_v44 = vld [vmem:[#allocation8 + $0x1d8] sm:$0xff] }
 0x79d   :  { %5072 = vmatprep.subr.bf16.mxu0 %v5071_v23  ;;  %5104 = vmatprep.subr.bf16.mxu1 %v5103_v31  ;;  %v2112_v23 = vld [vmem:[#allocation8 + $0x200] sm:$0xff] }
 0x7a0   :  { %5074 = vmatpush1.bf16.msra.mxu0 %v5073_v56  ;;  %5106 = vmatpush3.bf16.msra.mxu1 %v5103_v31  ;;  %v6560_v31 = vpack.c.bf16 %v2112_v23, %v2109_v22  ;;  %v2114_v56 = vld [vmem:[#allocation8 + $0x210] sm:$0xff]  ;;  %v6612_v22 = vpack.c.bf16 %v2125_v15, %v2122_v13  ;;  %v2128_v23 = vld [vmem:[#allocation8 + $0x280] sm:$0xff] }
 0x7a1   :  { %5076 = vmatprep.subr.bf16.mxu0 %v5075_v61  ;;  %5108 = vmatprep.subr.bf16.mxu1 %v5107_v63  ;;  %v2117_v61 = vld [vmem:[#allocation8 + $0x228] sm:$0xff]  ;;  %v6616_v40 = vpack.c.bf16 %v2131_v33, %v2128_v23 }
 0x7a4   :  { %5078 = vmatpush1.bf16.msra.mxu0 %v5077_v26  ;;  %5110 = vmatpush3.bf16.msra.mxu1 %v5107_v63  ;;  %v6568_v63 = vpack.c.bf16 %v2117_v61, %v2114_v56  ;;  %v2127_v26 = vld [vmem:[#allocation8 + $0x278] sm:$0xff]  ;;  %v6620_v56 = vpack.c.bf16 %v2137_v51, %v2134_v45  ;;  %v2140_v61 = vld [vmem:[#allocation8 + $0x2e0] sm:$0xff] }
 0x7a5   :  { %5080 = vmatprep.subr.bf16.mxu0 %v5079_v29  ;;  %5112 = vmatprep.subr.bf16.mxu1 %v5111_v34  ;;  %v2130_v29 = vld [vmem:[#allocation8 + $0x290] sm:$0xff]  ;;  %v6624_v8 = vpack.c.bf16 %v2143_v3, %v2140_v61 }
 0x7a8   :  { %5082 = vmatpush1.bf16.msra.mxu0 %v5081_v30  ;;  %5114 = vmatpush3.bf16.msra.mxu1 %v5111_v34  ;;  %v6578_v34 = vpack.c.bf16 %v2130_v29, %v2127_v26  ;;  %v6583_v30 = vpack.c.bf16 %v2136_v59, %v2133_v24 }
 0x7a9   :  { %5084 = vmatprep.subr.bf16.mxu0 %v5083_v47  ;;  %5116 = vmatprep.subr.bf16.mxu1 %v5115_v35  ;;  %v2135_v47 = vld [vmem:[#allocation8 + $0x2b8] sm:$0xff] }
 0x7aa   :  { %v6586_v50 = vpack.c.bf16 %v2135_v47, %v2132_v28 }
 0x7ac   :  { %5086 = vmatpush1.bf16.msra.mxu0 %v5085_v57  ;;  %5118 = vmatpush3.bf16.msra.mxu1 %v5115_v35  ;;  %v2098_v35 = vld [vmem:[#allocation8 + $0x190] sm:$0xff] }
 0x7ad   :  { %5088 = vmatprep.subr.bf16.mxu0 %v5087_v12  ;;  %5120 = vmatprep.subr.bf16.mxu1 %v5119_v60  ;;  %v6588_v38 = vpack.c.bf16 %v2101_v41, %v2098_v35  ;;  %v2138_v57 = vld [vmem:[#allocation8 + $0x2d0] sm:$0xff]  ;;  %v2141_v12 = vld [vmem:[#allocation8 + $0x2e8] sm:$0xff]  ;;  %v5830_v41 = vld [vmem:[#allocation9] ss:$0 sm:$0xff] }
 0x7b0   :  { %5090 = vmatpush1.bf16.msra.mxu0 %v5089_v2  ;;  %5122 = vmatpush3.bf16.msra.mxu1 %v5119_v60  ;;  %v6596_v60 = vpack.c.bf16 %v2141_v12, %v2138_v57  ;;  %v6599_v2 = vpack.c.bf16 %v2107_v44, %v2104_v39 }
 0x7b1   :  { %5155 = vmatprep.subr.bf16.mxu1 %v5934_v48 }
 0x7b3   :  { %1918 = vmatmul.mubr.f32.vlgmr.msra.gmra.mrb[16].mxu0 %v6259_v62  ;;  %4277 = vmatmul.mubr.f32.vlgmr.msra.gmra.mrb[24].mxu1 %v6303_v54  ;;  %v2097_v62 = vld [vmem:[#allocation8 + $0x188] sm:$0xff] }
 0x7b4   :  { %4279 = vmatprep.mubr.f32.mxu1 %v6347_v46  ;;  %1923 = vmatprep.mubr.f32.mxu0 %v5933_v0 }
 0x7b5   :  { %5157 = vmatpush3.bf16.msra.mxu1 %v6588_v38 }
 0x7b6   :  { %5158 = vmatprep.subr.bf16.mxu1 %v5934_v48 }
 0x7b7   :  { %1924 = vmatmul.mubr.f32.gmra.mrb[18].mxu0 %v6303_v54  ;;  %4280 = vmatmul.mubr.f32.gmra.mrb[26].mxu1 %v6391_v32  ;;  %v2100_v54 = vld [vmem:[#allocation8 + $0x1a0] sm:$0xff] }
 0x7b8   :  { %4282 = vmatprep.mubr.f32.mxu1 %v6435_v25  ;;  %1929 = vmatprep.mubr.f32.mxu0 %v5933_v0 }
 0x7b9   :  { %5160 = vmatpush3.bf16.msra.mxu1 %v6599_v2 }
 0x7ba   :  { %5161 = vmatprep.subr.bf16.mxu1 %v5934_v48 }
 0x7bb   :  { %1930 = vmatmul.mubr.f32.gmra.mrb[20].mxu0 %v6347_v46  ;;  %4283 = vmatmul.mubr.f32.gmra.mrb[28].mxu1 %v6479_v17  ;;  %v6548_v46 = vpack.c.bf16 %v2100_v54, %v2097_v62  ;;  %v2110_v62 = vld [vmem:[#allocation8 + $0x1f0] sm:$0xff]  ;;  %v2113_v54 = vld [vmem:[#allocation8 + $0x208] sm:$0xff] }
 0x7bc   :  { %4285 = vmatprep.mubr.f32.mxu1 %v6521_v27  ;;  %1935 = vmatprep.mubr.f32.mxu0 %v5933_v0 }
 0x7bd   :  { %5124 = vmatprep.subr.bf16.mxu0 %v6548_v46 }
 0x7bf   :  { %1936 = vmatmul.mubr.f32.gmra.mrb[22].mxu0 %v6391_v32  ;;  %v2099_v32 = vld [vmem:[#allocation8 + $0x198] sm:$0xff] }
 0x7c0   :  { %1941 = vmatprep.mubr.f32.mxu0 %v5933_v0  ;;  %v6550_v6 = vpack.c.bf16 %v2099_v32, %v2096_v4  ;;  %v2116_v4 = vld [vmem:[#allocation8 + $0x220] sm:$0xff]  ;;  %v6605_v32 = vpack.c.bf16 %v2113_v54, %v2110_v62 }
 0x7c2   :  { %5126 = vmatpush1.bf16.msra.mxu0 %v6550_v6  ;;  %5163 = vmatpush3.bf16.msra.mxu1 %v6605_v32 }
 0x7c3   :  { %1942 = vmatmul.mubr.f32.gmra.mrb[24].mxu0 %v6435_v25  ;;  %v2103_v25 = vld [vmem:[#allocation8 + $0x1b8] sm:$0xff]  ;;  %5164 = vmatprep.subr.bf16.mxu1 %v5934_v48 }
 0x7c4   :  { %1947 = vmatprep.mubr.f32.mxu0 %v5933_v0 }
 0x7c7   :  { %1948 = vmatmul.mubr.f32.gmra.mrb[26].mxu0 %v6479_v17  ;;  %v2106_v17 = vld [vmem:[#allocation8 + $0x1d0] sm:$0xff] }
 0x7c8   :  { %1953 = vmatprep.mubr.f32.mxu0 %v5933_v0  ;;  %v6554_v9 = vpack.c.bf16 %v2106_v17, %v2103_v25  ;;  %v2119_v25 = vld [vmem:[#allocation8 + $0x238] sm:$0xff] }
 0x7c9   :  { %v6608_v17 = vpack.c.bf16 %v2119_v25, %v2116_v4 }
 0x7ca   :  { %5128 = vmatprep.subr.bf16.mxu0 %v6554_v9 }
 0x7cb   :  { %1954 = vmatmul.mubr.f32.gmra.mrb[28].mxu0 %v6521_v27  ;;  %5166 = vmatpush3.bf16.msra.mxu1 %v6608_v17 }
 0x7cc   :  { %1959 = vmatprep.mubr.f32.mxu0 %v5933_v0  ;;  %5130 = vmatpush1.bf16.msra.mxu0 %v6556_v16 }
 0x7cd   :  { %5132 = vmatprep.subr.bf16.mxu0 %v6560_v31  ;;  %5167 = vmatprep.subr.bf16.mxu1 %v5934_v48 }
 0x7cf   :  { %5169 = vmatpush3.bf16.msra.mxu1 %v6612_v22 }
 0x7d0   :  { %5134 = vmatpush1.bf16.msra.mxu0 %v6562_v42  ;;  %5170 = vmatprep.subr.bf16.mxu1 %v5934_v48 }
 0x7d1   :  { %5136 = vmatprep.subr.bf16.mxu0 %v6566_v53 }
 0x7d3   :  { %5172 = vmatpush3.bf16.msra.mxu1 %v6616_v40 }
 0x7d4   :  { %5138 = vmatpush1.bf16.msra.mxu0 %v6568_v63  ;;  %5173 = vmatprep.subr.bf16.mxu1 %v5934_v48 }
 0x7d5   :  { %5140 = vmatprep.subr.bf16.mxu0 %v6572_v10 }
 0x7d7   :  { %5175 = vmatpush3.bf16.msra.mxu1 %v6620_v56 }
 0x7d8   :  { %5142 = vmatpush1.bf16.msra.mxu0 %v6574_v21  ;;  %5176 = vmatprep.subr.bf16.mxu1 %v5934_v48 }
 0x7d9   :  { %5144 = vmatprep.subr.bf16.mxu0 %v6578_v34 }
 0x7db   :  { %5178 = vmatpush3.bf16.msra.mxu1 %v6624_v8 }
 0x7dc   :  { %5146 = vmatpush1.bf16.msra.mxu0 %v6580_v20  ;;  %5211 = vmatprep.subr.bf16.mxu1 %v5934_v48 }
 0x7dd   :  { %5148 = vmatprep.subr.bf16.mxu0 %v6583_v30 }
 0x7e0   :  { %5150 = vmatpush1.bf16.msra.mxu0 %v6586_v50 }
 0x7e1   :  { %5152 = vmatprep.subr.bf16.mxu0 %v6594_v43 }
 0x7e4   :  { %5154 = vmatpush1.bf16.msra.mxu0 %v6596_v60 }
 0x7e5   :  { %5180 = vmatprep.subr.bf16.mxu0 %v6548_v46 }
 0x866   :  { %v1681_v14 = vpop.f32.mrb[14].mxu0  ;;  %v1752_v19 = vpop.f32.mrb[22].mxu1 }
 0x867   :  { %v5609_v26 = vadd.f32 %v1681_v14, %v6241_v58  ;;  %v1683_v29 = vpop.f32.mrb[15].mxu0  ;;  %v4243_v55 = vpop.f32.mrb[23].mxu1  ;;  %v1770_v7 = vadd.f32 %v5830_v41, %v1752_v19 }
 0x868   :  { %v5610_v24 = vadd.f32 %v1683_v29, %v6253_v11 }
 0x869   :  { %v3604_v18 = vmul.f32 -1.442695, %v5609_v26 }
 0x86a   :  { %v3605_v59 = vmul.f32 -1.442695, %v5610_v24 }
 0x86b   :  { %5740 = vpow2.f32 %v3604_v18 }
 0x86c   :  { %5742 = vpow2.f32 %v3605_v59 }
 0x875   :  { %v5741_v28 = vpop.eup %5740 }
 0x876   :  { %v1760_v47 = vadd.f32 1.0, %v5741_v28  ;;  %v5743_v35 = vpop.eup %5742 }
 0x877   :  { %v1767_v39 = vadd.f32 1.0, %v5743_v35 }
 0x878   :  { %5744 = vrcp.f32 %v1760_v47 }
 0x882   :  { %v5745_v49 = vpop.eup %5744 }
 0x883   :  { %v1771_v57 = vmul.f32 %v5745_v49, %v1770_v7 }
 0x885   :  { %v1772_v12 = vadd.f32 %v1771_v57, %v6245_v1 }
 0x886   :  { %v6632_v58 = vpop.f32.mrb[24].mxu1 }
 0x887   :  { %5746 = vtanh.f32 %v1772_v12  ;;  %v6634_v44 = vpop.f32.mrb[25].mxu1 }
 0x888   :  { %5748 = vrcp.f32 %v1767_v39 }
 0x88a   :  { %v6636_v11 = vpop.f32.mrb[26].mxu1 }
 0x88b   :  { %v6638_v62 = vpop.f32.mrb[27].mxu1 }
 0x88e   :  { %v6640_v54 = vpop.f32.mrb[28].mxu1 }
 0x88f   :  { %v6642_v4 = vpop.f32.mrb[29].mxu1 }
 0x891   :  { %v5747_v25 = vpop.eup %5746 }
 0x892   :  { %v1774_v13 = vsub.f32 %v6521_v27, %v5747_v25  ;;  %v5749_v15 = vpop.eup %5748  ;;  %v3606_v27 = vld [vmem:[%s7052_s4 + $0x3] sm:$0x7] }
 0x893   :  { %v6694_v51 = vrot.slane %v3606_v27, %v102_v52  ;;  %v6699_v55 = vrot.slane %v3606_v27, %v106_v5  ;;  %v6702_v52 = vld [vmem:[#allocation9 + $0x1] ss:$0 sm:$0xff]  ;;  %v6706_v47 = vrot.slane %v3606_v27, %v110_v37 }
 0x894   :  { %v1775_v1 = vmul.f32 %v5749_v15, %v1774_v13 }
 0x895   :  { %v2033_v5 = vadd.f32 %v6634_v44, %v6706_v47 }
 0x896   :  { %v1776_v23 = vadd.f32 %v5747_v25, %v1775_v1 }
 0x898   :  { %1960 = vmatmul.mubr.f32.gmra.mrb[30].mxu0 %v1776_v23  ;;  %4286 = vmatmul.mubr.f32.gmra.mrb[30].mxu1 %v1776_v23 }
 0x899   :  { %2219 = vmatprep.mubr.f32.mxu0 %v5933_v0  ;;  %4320 = vmatprep.mubr.msk.f32.mxu1 %vm5935_vm1, %v5933_v0 }
 0x89c   :  { %2220 = vmatmul.mubr.f32.vlgmr.msra.gmra.mrb[16].mxu0 %v5933_v0  ;;  %4321 = vmatmul.mubr.f32.vlgmr.msra.gmra.mrb[32].mxu1 %v5933_v0 }
 0x89d   :  { %5182 = vmatpush1.bf16.msra.mxu0 %v6550_v6  ;;  %5213 = vmatpush3.bf16.msra.mxu1 %v6588_v38 }
 0x89e   :  { %5184 = vmatprep.subr.bf16.mxu0 %v6554_v9  ;;  %5214 = vmatprep.subr.bf16.mxu1 %v5934_v48 }
 0x89f   :  { %2384 = vmatprep.mubr.f32.mxu0 %v5933_v0  ;;  %4355 = vmatprep.mubr.msk.f32.mxu1 %vm5935_vm1, %v5933_v0 }
 0x8a1   :  { %5186 = vmatpush1.bf16.msra.mxu0 %v6556_v16  ;;  %5216 = vmatpush3.bf16.msra.mxu1 %v6599_v2 }
 0x8a2   :  { %5188 = vmatprep.subr.bf16.mxu0 %v6560_v31  ;;  %5217 = vmatprep.subr.bf16.mxu1 %v5934_v48 }
 0x8a5   :  { %5190 = vmatpush1.bf16.msra.mxu0 %v6562_v42  ;;  %5219 = vmatpush3.bf16.msra.mxu1 %v6605_v32 }
 0x8a6   :  { %5192 = vmatprep.subr.bf16.mxu0 %v6566_v53  ;;  %5220 = vmatprep.subr.bf16.mxu1 %v5934_v48 }
 0x8a9   :  { %5194 = vmatpush1.bf16.msra.mxu0 %v6568_v63  ;;  %5222 = vmatpush3.bf16.msra.mxu1 %v6608_v17 }
 0x8aa   :  { %5196 = vmatprep.subr.bf16.mxu0 %v6572_v10  ;;  %5223 = vmatprep.subr.bf16.mxu1 %v5934_v48 }
 0x8ad   :  { %5198 = vmatpush1.bf16.msra.mxu0 %v6574_v21  ;;  %5225 = vmatpush3.bf16.msra.mxu1 %v6612_v22 }
 0x8ae   :  { %5200 = vmatprep.subr.bf16.mxu0 %v6578_v34  ;;  %5226 = vmatprep.subr.bf16.mxu1 %v5934_v48 }
 0x8b1   :  { %5202 = vmatpush1.bf16.msra.mxu0 %v6580_v20  ;;  %5228 = vmatpush3.bf16.msra.mxu1 %v6616_v40 }
 0x8b2   :  { %5204 = vmatprep.subr.bf16.mxu0 %v6583_v30  ;;  %5229 = vmatprep.subr.bf16.mxu1 %v5934_v48 }
 0x8b5   :  { %5206 = vmatpush1.bf16.msra.mxu0 %v6586_v50  ;;  %5231 = vmatpush3.bf16.msra.mxu1 %v6620_v56 }
 0x8b6   :  { %5208 = vmatprep.subr.bf16.mxu0 %v6594_v43  ;;  %5232 = vmatprep.subr.bf16.mxu1 %v5934_v48 }
 0x8b9   :  { %5210 = vmatpush1.bf16.msra.mxu0 %v6596_v60  ;;  %5234 = vmatpush3.bf16.msra.mxu1 %v6624_v8 }
 0x8ba   :  { %5236 = vmatprep.subr.bf16.mxu0 %v6548_v46  ;;  %5267 = vmatprep.subr.bf16.mxu1 %v5934_v48 }
 0x96b   :  { %v6688_v33 = vpop.f32.mrb[30].mxu1 }
 0x96c   :  { %v6690_v45 = vpop.f32.mrb[31].mxu1 }
 0x96f   :  { %v2221_v61 = vpop.f32.mrb[16].mxu0  ;;  %v2292_v3 = vpop.f32.mrb[32].mxu1 }
 0x970   :  { %v5611_v14 = vadd.f32 %v2221_v61, %v6694_v51  ;;  %v2223_v19 = vpop.f32.mrb[17].mxu0  ;;  %v4322_v26 = vpop.f32.mrb[33].mxu1  ;;  %v2310_v35 = vadd.f32 %v6702_v52, %v2292_v3 }
 0x971   :  { %v5612_v18 = vadd.f32 %v2223_v19, %v6699_v55 }
 0x972   :  { %v3608_v29 = vmul.f32 -1.442695, %v5611_v14 }
 0x973   :  { %v3609_v24 = vmul.f32 -1.442695, %v5612_v18 }
 0x974   :  { %5750 = vpow2.f32 %v3608_v29 }
 0x975   :  { %5752 = vpow2.f32 %v3609_v24 }
 0x97e   :  { %v5751_v59 = vpop.eup %5750 }
 0x97f   :  { %v2300_v28 = vadd.f32 1.0, %v5751_v59  ;;  %v5753_v41 = vpop.eup %5752  ;;  %v2038_v59 = vadd.f32 %v6632_v58, %v6706_v47 }
 0x980   :  { %v2307_v57 = vadd.f32 1.0, %v5753_v41 }
 0x981   :  { %5754 = vrcp.f32 %v2300_v28 }
 0x98b   :  { %v5755_v7 = vpop.eup %5754 }
 0x98c   :  { %v2311_v49 = vmul.f32 %v5755_v7, %v2310_v35 }
 0x98e   :  { %v2312_v12 = vadd.f32 %v2311_v49, %v2033_v5 }
 0x990   :  { %5756 = vtanh.f32 %v2312_v12 }
 0x991   :  { %5758 = vrcp.f32 %v2307_v57 }
 0x99a   :  { %v5757_v39 = vpop.eup %5756 }
 0x99b   :  { %v2314_v25 = vsub.f32 0.0, %v5757_v39  ;;  %v5759_v13 = vpop.eup %5758 }
 0x99d   :  { %v2315_v15 = vmul.f32 %v5759_v13, %v2314_v25 }
 0x99f   :  { %v6711_v1 = vadd.f32 %v5757_v39, %v2315_v15 }
 0x9a1   :  { %2385 = vmatmul.mubr.f32.vlgmr.msra.gmra.mrb[18].mxu0 %v6711_v1  ;;  %4356 = vmatmul.mubr.f32.vlgmr.msra.gmra.mrb[34].mxu1 %v6711_v1 }
 0x9a2   :  { %5238 = vmatpush1.bf16.msra.mxu0 %v6550_v6  ;;  %5269 = vmatpush3.bf16.msra.mxu1 %v6588_v38 }
 0x9a3   :  { %5240 = vmatprep.subr.bf16.mxu0 %v6554_v9  ;;  %5270 = vmatprep.subr.bf16.mxu1 %v5934_v48 }
 0x9a4   :  { %2549 = vmatprep.mubr.f32.mxu0 %v5933_v0  ;;  %4390 = vmatprep.mubr.msk.f32.mxu1 %vm5935_vm1, %v5933_v0 }
 0x9a6   :  { %5242 = vmatpush1.bf16.msra.mxu0 %v6556_v16  ;;  %5272 = vmatpush3.bf16.msra.mxu1 %v6599_v2 }
 0x9a7   :  { %5244 = vmatprep.subr.bf16.mxu0 %v6560_v31  ;;  %5273 = vmatprep.subr.bf16.mxu1 %v5934_v48 }
 0x9aa   :  { %5246 = vmatpush1.bf16.msra.mxu0 %v6562_v42  ;;  %5275 = vmatpush3.bf16.msra.mxu1 %v6605_v32 }
 0x9ab   :  { %5248 = vmatprep.subr.bf16.mxu0 %v6566_v53  ;;  %5276 = vmatprep.subr.bf16.mxu1 %v5934_v48 }
 0x9ae   :  { %5250 = vmatpush1.bf16.msra.mxu0 %v6568_v63  ;;  %5278 = vmatpush3.bf16.msra.mxu1 %v6608_v17 }
 0x9af   :  { %5252 = vmatprep.subr.bf16.mxu0 %v6572_v10  ;;  %5279 = vmatprep.subr.bf16.mxu1 %v5934_v48 }
 0x9b2   :  { %5254 = vmatpush1.bf16.msra.mxu0 %v6574_v21  ;;  %5281 = vmatpush3.bf16.msra.mxu1 %v6612_v22 }
 0x9b3   :  { %5256 = vmatprep.subr.bf16.mxu0 %v6578_v34  ;;  %5282 = vmatprep.subr.bf16.mxu1 %v5934_v48 }
 0x9b6   :  { %5258 = vmatpush1.bf16.msra.mxu0 %v6580_v20  ;;  %5284 = vmatpush3.bf16.msra.mxu1 %v6616_v40 }
 0x9b7   :  { %5260 = vmatprep.subr.bf16.mxu0 %v6583_v30  ;;  %5285 = vmatprep.subr.bf16.mxu1 %v5934_v48 }
 0x9ba   :  { %5262 = vmatpush1.bf16.msra.mxu0 %v6586_v50  ;;  %5287 = vmatpush3.bf16.msra.mxu1 %v6620_v56 }
 0x9bb   :  { %5264 = vmatprep.subr.bf16.mxu0 %v6594_v43  ;;  %5288 = vmatprep.subr.bf16.mxu1 %v5934_v48 }
 0x9be   :  { %5266 = vmatpush1.bf16.msra.mxu0 %v6596_v60  ;;  %5290 = vmatpush3.bf16.msra.mxu1 %v6624_v8 }
 0x9bf   :  { %5292 = vmatprep.subr.bf16.mxu0 %v6548_v46  ;;  %5323 = vmatprep.subr.bf16.mxu1 %v5934_v48 }
 0xa74   :  { %v2386_v36 = vpop.f32.mrb[18].mxu0  ;;  %v2457_v37 = vpop.f32.mrb[34].mxu1 }
 0xa75   :  { %v5613_v44 = vadd.f32 %v2386_v36, %v6694_v51  ;;  %v2388_v23 = vpop.f32.mrb[19].mxu0  ;;  %v4357_v27 = vpop.f32.mrb[35].mxu1  ;;  %v2475_v18 = vadd.f32 %v6702_v52, %v2457_v37 }
 0xa76   :  { %v5614_v3 = vadd.f32 %v2388_v23, %v6699_v55 }
 0xa77   :  { %v3610_v61 = vmul.f32 -1.442695, %v5613_v44 }
 0xa78   :  { %v3611_v14 = vmul.f32 -1.442695, %v5614_v3 }
 0xa79   :  { %5760 = vpow2.f32 %v3610_v61 }
 0xa7a   :  { %5762 = vpow2.f32 %v3611_v14  ;;  %v2043_v14 = vadd.f32 %v6638_v62, %v6706_v47 }
 0xa83   :  { %v5761_v19 = vpop.eup %5760 }
 0xa84   :  { %v2465_v26 = vadd.f32 1.0, %v5761_v19  ;;  %v5763_v29 = vpop.eup %5762 }
 0xa85   :  { %v2472_v41 = vadd.f32 1.0, %v5763_v29 }
 0xa86   :  { %5764 = vrcp.f32 %v2465_v26 }
 0xa90   :  { %v5765_v24 = vpop.eup %5764 }
 0xa91   :  { %v2476_v28 = vmul.f32 %v5765_v24, %v2475_v18 }
 0xa93   :  { %v2477_v35 = vadd.f32 %v2476_v28, %v2038_v59 }
 0xa95   :  { %5766 = vtanh.f32 %v2477_v35 }
 0xa96   :  { %5768 = vrcp.f32 %v2472_v41 }
 0xa9f   :  { %v5767_v7 = vpop.eup %5766 }
 0xaa0   :  { %v2479_v5 = vsub.f32 %v6711_v1, %v5767_v7  ;;  %v5769_v49 = vpop.eup %5768 }
 0xaa2   :  { %v2480_v57 = vmul.f32 %v5769_v49, %v2479_v5 }
 0xaa4   :  { %v6756_v12 = vadd.f32 %v5767_v7, %v2480_v57 }
 0xaa6   :  { %2550 = vmatmul.mubr.f32.vlgmr.msra.gmra.mrb[20].mxu0 %v6756_v12  ;;  %4391 = vmatmul.mubr.f32.vlgmr.msra.gmra.mrb[36].mxu1 %v6756_v12 }
 0xaa7   :  { %5294 = vmatpush1.bf16.msra.mxu0 %v6550_v6  ;;  %5325 = vmatpush3.bf16.msra.mxu1 %v6588_v38 }
 0xaa8   :  { %5296 = vmatprep.subr.bf16.mxu0 %v6554_v9  ;;  %5326 = vmatprep.subr.bf16.mxu1 %v5934_v48 }
 0xaa9   :  { %2714 = vmatprep.mubr.f32.mxu0 %v5933_v0  ;;  %4425 = vmatprep.mubr.msk.f32.mxu1 %vm5935_vm1, %v5933_v0 }
 0xaab   :  { %5298 = vmatpush1.bf16.msra.mxu0 %v6556_v16  ;;  %5328 = vmatpush3.bf16.msra.mxu1 %v6599_v2 }
 0xaac   :  { %5300 = vmatprep.subr.bf16.mxu0 %v6560_v31  ;;  %5329 = vmatprep.subr.bf16.mxu1 %v5934_v48 }
 0xaaf   :  { %5302 = vmatpush1.bf16.msra.mxu0 %v6562_v42  ;;  %5331 = vmatpush3.bf16.msra.mxu1 %v6605_v32 }
 0xab0   :  { %5304 = vmatprep.subr.bf16.mxu0 %v6566_v53  ;;  %5332 = vmatprep.subr.bf16.mxu1 %v5934_v48 }
 0xab3   :  { %5306 = vmatpush1.bf16.msra.mxu0 %v6568_v63  ;;  %5334 = vmatpush3.bf16.msra.mxu1 %v6608_v17 }
 0xab4   :  { %5308 = vmatprep.subr.bf16.mxu0 %v6572_v10  ;;  %5335 = vmatprep.subr.bf16.mxu1 %v5934_v48 }
 0xab7   :  { %5310 = vmatpush1.bf16.msra.mxu0 %v6574_v21  ;;  %5337 = vmatpush3.bf16.msra.mxu1 %v6612_v22 }
 0xab8   :  { %5312 = vmatprep.subr.bf16.mxu0 %v6578_v34  ;;  %5338 = vmatprep.subr.bf16.mxu1 %v5934_v48 }
 0xabb   :  { %5314 = vmatpush1.bf16.msra.mxu0 %v6580_v20  ;;  %5340 = vmatpush3.bf16.msra.mxu1 %v6616_v40 }
 0xabc   :  { %5316 = vmatprep.subr.bf16.mxu0 %v6583_v30  ;;  %5341 = vmatprep.subr.bf16.mxu1 %v5934_v48 }
 0xabf   :  { %5318 = vmatpush1.bf16.msra.mxu0 %v6586_v50  ;;  %5343 = vmatpush3.bf16.msra.mxu1 %v6620_v56 }
 0xac0   :  { %5320 = vmatprep.subr.bf16.mxu0 %v6594_v43  ;;  %5344 = vmatprep.subr.bf16.mxu1 %v5934_v48 }
 0xac3   :  { %5322 = vmatpush1.bf16.msra.mxu0 %v6596_v60  ;;  %5346 = vmatpush3.bf16.msra.mxu1 %v6624_v8 }
 0xac4   :  { %5348 = vmatprep.subr.bf16.mxu0 %v6548_v46  ;;  %5379 = vmatprep.subr.bf16.mxu1 %v5934_v48 }
 0xb79   :  { %v2551_v58 = vpop.f32.mrb[20].mxu0  ;;  %v2622_v39 = vpop.f32.mrb[36].mxu1 }
 0xb7a   :  { %v5615_v25 = vadd.f32 %v2551_v58, %v6694_v51  ;;  %v2553_v13 = vpop.f32.mrb[21].mxu0  ;;  %v4392_v15 = vpop.f32.mrb[37].mxu1  ;;  %v2640_v61 = vadd.f32 %v6702_v52, %v2622_v39 }
 0xb7b   :  { %v5616_v36 = vadd.f32 %v2553_v13, %v6699_v55 }
 0xb7c   :  { %v3612_v1 = vmul.f32 -1.442695, %v5615_v25 }
 0xb7d   :  { %v3613_v37 = vmul.f32 -1.442695, %v5616_v36  ;;  %v2048_v36 = vadd.f32 %v6636_v11, %v6706_v47 }
 0xb7e   :  { %5770 = vpow2.f32 %v3612_v1 }
 0xb7f   :  { %5772 = vpow2.f32 %v3613_v37 }
 0xb88   :  { %v5771_v44 = vpop.eup %5770 }
 0xb89   :  { %v2630_v23 = vadd.f32 1.0, %v5771_v44  ;;  %v5773_v27 = vpop.eup %5772 }
 0xb8a   :  { %v2637_v29 = vadd.f32 1.0, %v5773_v27 }
 0xb8b   :  { %5774 = vrcp.f32 %v2630_v23 }
 0xb95   :  { %v5775_v3 = vpop.eup %5774 }
 0xb96   :  { %v2641_v19 = vmul.f32 %v5775_v3, %v2640_v61 }
 0xb98   :  { %v2642_v26 = vadd.f32 %v2641_v19, %v2043_v14 }
 0xb9a   :  { %5776 = vtanh.f32 %v2642_v26 }
 0xb9b   :  { %5778 = vrcp.f32 %v2637_v29 }
 0xba4   :  { %v5777_v18 = vpop.eup %5776 }
 0xba5   :  { %v2644_v24 = vsub.f32 %v6756_v12, %v5777_v18  ;;  %v5779_v59 = vpop.eup %5778 }
 0xba7   :  { %v2645_v28 = vmul.f32 %v5779_v59, %v2644_v24 }
 0xba9   :  { %v6801_v35 = vadd.f32 %v5777_v18, %v2645_v28 }
 0xbab   :  { %2715 = vmatmul.mubr.f32.vlgmr.msra.gmra.mrb[22].mxu0 %v6801_v35  ;;  %4426 = vmatmul.mubr.f32.vlgmr.msra.gmra.mrb[38].mxu1 %v6801_v35 }
 0xbac   :  { %5350 = vmatpush1.bf16.msra.mxu0 %v6550_v6  ;;  %5381 = vmatpush3.bf16.msra.mxu1 %v6588_v38 }
 0xbad   :  { %5352 = vmatprep.subr.bf16.mxu0 %v6554_v9  ;;  %5382 = vmatprep.subr.bf16.mxu1 %v5934_v48 }
 0xbae   :  { %2879 = vmatprep.mubr.f32.mxu0 %v5933_v0  ;;  %4460 = vmatprep.mubr.msk.f32.mxu1 %vm5935_vm1, %v5933_v0 }
 0xbb0   :  { %5354 = vmatpush1.bf16.msra.mxu0 %v6556_v16  ;;  %5384 = vmatpush3.bf16.msra.mxu1 %v6599_v2 }
 0xbb1   :  { %5356 = vmatprep.subr.bf16.mxu0 %v6560_v31  ;;  %5385 = vmatprep.subr.bf16.mxu1 %v5934_v48 }
 0xbb4   :  { %5358 = vmatpush1.bf16.msra.mxu0 %v6562_v42  ;;  %5387 = vmatpush3.bf16.msra.mxu1 %v6605_v32 }
 0xbb5   :  { %5360 = vmatprep.subr.bf16.mxu0 %v6566_v53  ;;  %5388 = vmatprep.subr.bf16.mxu1 %v5934_v48 }
 0xbb8   :  { %5362 = vmatpush1.bf16.msra.mxu0 %v6568_v63  ;;  %5390 = vmatpush3.bf16.msra.mxu1 %v6608_v17 }
 0xbb9   :  { %5364 = vmatprep.subr.bf16.mxu0 %v6572_v10  ;;  %5391 = vmatprep.subr.bf16.mxu1 %v5934_v48 }
 0xbbc   :  { %5366 = vmatpush1.bf16.msra.mxu0 %v6574_v21  ;;  %5393 = vmatpush3.bf16.msra.mxu1 %v6612_v22 }
 0xbbd   :  { %5368 = vmatprep.subr.bf16.mxu0 %v6578_v34  ;;  %5394 = vmatprep.subr.bf16.mxu1 %v5934_v48 }
 0xbc0   :  { %5370 = vmatpush1.bf16.msra.mxu0 %v6580_v20  ;;  %5396 = vmatpush3.bf16.msra.mxu1 %v6616_v40 }
 0xbc1   :  { %5372 = vmatprep.subr.bf16.mxu0 %v6583_v30  ;;  %5397 = vmatprep.subr.bf16.mxu1 %v5934_v48 }
 0xbc4   :  { %5374 = vmatpush1.bf16.msra.mxu0 %v6586_v50  ;;  %5399 = vmatpush3.bf16.msra.mxu1 %v6620_v56 }
 0xbc5   :  { %5376 = vmatprep.subr.bf16.mxu0 %v6594_v43  ;;  %5400 = vmatprep.subr.bf16.mxu1 %v5934_v48 }
 0xbc8   :  { %5378 = vmatpush1.bf16.msra.mxu0 %v6596_v60  ;;  %5402 = vmatpush3.bf16.msra.mxu1 %v6624_v8 }
 0xbc9   :  { %5404 = vmatprep.subr.bf16.mxu0 %v6548_v46  ;;  %5435 = vmatprep.subr.bf16.mxu1 %v5934_v48 }
 0xc7e   :  { %v2716_v62 = vpop.f32.mrb[22].mxu0  ;;  %v2787_v41 = vpop.f32.mrb[38].mxu1 }
 0xc7f   :  { %v5617_v7 = vadd.f32 %v2716_v62, %v6694_v51  ;;  %v2718_v5 = vpop.f32.mrb[23].mxu0  ;;  %v4427_v49 = vpop.f32.mrb[39].mxu1  ;;  %v2805_v15 = vadd.f32 %v6702_v52, %v2787_v41 }
 0xc80   :  { %v5618_v12 = vadd.f32 %v2718_v5, %v6699_v55 }
 0xc81   :  { %v3614_v57 = vmul.f32 -1.442695, %v5617_v7 }
 0xc82   :  { %v3615_v58 = vmul.f32 -1.442695, %v5618_v12 }
 0xc83   :  { %5780 = vpow2.f32 %v3614_v57  ;;  %v2053_v57 = vadd.f32 %v6642_v4, %v6706_v47 }
 0xc84   :  { %5782 = vpow2.f32 %v3615_v58 }
 0xc8d   :  { %v5781_v39 = vpop.eup %5780 }
 0xc8e   :  { %v2795_v25 = vadd.f32 1.0, %v5781_v39  ;;  %v5783_v13 = vpop.eup %5782 }
 0xc8f   :  { %v2802_v23 = vadd.f32 1.0, %v5783_v13 }
 0xc90   :  { %5784 = vrcp.f32 %v2795_v25 }
 0xc9a   :  { %v5785_v1 = vpop.eup %5784 }
 0xc9b   :  { %v2806_v37 = vmul.f32 %v5785_v1, %v2805_v15 }
 0xc9d   :  { %v2807_v44 = vadd.f32 %v2806_v37, %v2048_v36 }
 0xc9f   :  { %5786 = vtanh.f32 %v2807_v44 }
 0xca0   :  { %5788 = vrcp.f32 %v2802_v23 }
 0xca9   :  { %v5787_v27 = vpop.eup %5786 }
 0xcaa   :  { %v2809_v61 = vsub.f32 %v6801_v35, %v5787_v27  ;;  %v5789_v3 = vpop.eup %5788 }
 0xcac   :  { %v2810_v14 = vmul.f32 %v5789_v3, %v2809_v61 }
 0xcae   :  { %v6846_v19 = vadd.f32 %v5787_v27, %v2810_v14 }
 0xcb0   :  { %2880 = vmatmul.mubr.f32.vlgmr.msra.gmra.mrb[24].mxu0 %v6846_v19  ;;  %4461 = vmatmul.mubr.f32.vlgmr.msra.gmra.mrb[40].mxu1 %v6846_v19 }
 0xcb1   :  { %5406 = vmatpush1.bf16.msra.mxu0 %v6550_v6  ;;  %5437 = vmatpush3.bf16.msra.mxu1 %v6588_v38 }
 0xcb2   :  { %5408 = vmatprep.subr.bf16.mxu0 %v6554_v9  ;;  %5438 = vmatprep.subr.bf16.mxu1 %v5934_v48 }
 0xcb3   :  { %3044 = vmatprep.mubr.f32.mxu0 %v5933_v0  ;;  %4495 = vmatprep.mubr.msk.f32.mxu1 %vm5935_vm1, %v5933_v0 }
 0xcb5   :  { %5410 = vmatpush1.bf16.msra.mxu0 %v6556_v16  ;;  %5440 = vmatpush3.bf16.msra.mxu1 %v6599_v2 }
 0xcb6   :  { %5412 = vmatprep.subr.bf16.mxu0 %v6560_v31  ;;  %5441 = vmatprep.subr.bf16.mxu1 %v5934_v48 }
 0xcb9   :  { %5414 = vmatpush1.bf16.msra.mxu0 %v6562_v42  ;;  %5443 = vmatpush3.bf16.msra.mxu1 %v6605_v32 }
 0xcba   :  { %5416 = vmatprep.subr.bf16.mxu0 %v6566_v53  ;;  %5444 = vmatprep.subr.bf16.mxu1 %v5934_v48 }
 0xcbd   :  { %5418 = vmatpush1.bf16.msra.mxu0 %v6568_v63  ;;  %5446 = vmatpush3.bf16.msra.mxu1 %v6608_v17 }
 0xcbe   :  { %5420 = vmatprep.subr.bf16.mxu0 %v6572_v10  ;;  %5447 = vmatprep.subr.bf16.mxu1 %v5934_v48 }
 0xcc1   :  { %5422 = vmatpush1.bf16.msra.mxu0 %v6574_v21  ;;  %5449 = vmatpush3.bf16.msra.mxu1 %v6612_v22 }
 0xcc2   :  { %5424 = vmatprep.subr.bf16.mxu0 %v6578_v34  ;;  %5450 = vmatprep.subr.bf16.mxu1 %v5934_v48 }
 0xcc5   :  { %5426 = vmatpush1.bf16.msra.mxu0 %v6580_v20  ;;  %5452 = vmatpush3.bf16.msra.mxu1 %v6616_v40 }
 0xcc6   :  { %5428 = vmatprep.subr.bf16.mxu0 %v6583_v30  ;;  %5453 = vmatprep.subr.bf16.mxu1 %v5934_v48 }
 0xcc9   :  { %5430 = vmatpush1.bf16.msra.mxu0 %v6586_v50  ;;  %5455 = vmatpush3.bf16.msra.mxu1 %v6620_v56 }
 0xcca   :  { %5432 = vmatprep.subr.bf16.mxu0 %v6594_v43  ;;  %5456 = vmatprep.subr.bf16.mxu1 %v5934_v48 }
 0xccd   :  { %5434 = vmatpush1.bf16.msra.mxu0 %v6596_v60  ;;  %5458 = vmatpush3.bf16.msra.mxu1 %v6624_v8 }
 0xcce   :  { %5460 = vmatprep.subr.bf16.mxu0 %v6548_v46  ;;  %5491 = vmatprep.subr.bf16.mxu1 %v5934_v48 }
 0xd83   :  { %v2881_v11 = vpop.f32.mrb[24].mxu0  ;;  %v2952_v26 = vpop.f32.mrb[40].mxu1 }
 0xd84   :  { %v5619_v29 = vadd.f32 %v2881_v11, %v6694_v51  ;;  %v2883_v18 = vpop.f32.mrb[25].mxu0  ;;  %v4462_v24 = vpop.f32.mrb[41].mxu1  ;;  %v2970_v5 = vadd.f32 %v6702_v52, %v2952_v26 }
 0xd85   :  { %v5620_v28 = vadd.f32 %v2883_v18, %v6699_v55  ;;  %v2058_v18 = vadd.f32 %v6640_v54, %v6706_v47  ;;  %v3473_v54 = vld [vmem:[%s7054_s6 + $0x8] sm:$0xff] }
 0xd86   :  { %v3616_v59 = vmul.f32 -1.442695, %v5619_v29 }
 0xd87   :  { %v3617_v35 = vmul.f32 -1.442695, %v5620_v28 }
 0xd88   :  { %5790 = vpow2.f32 %v3616_v59 }
 0xd89   :  { %5792 = vpow2.f32 %v3617_v35 }
 0xd92   :  { %v5791_v62 = vpop.eup %5790 }
 0xd93   :  { %v2960_v41 = vadd.f32 1.0, %v5791_v62  ;;  %v5793_v7 = vpop.eup %5792 }
 0xd94   :  { %v2967_v39 = vadd.f32 1.0, %v5793_v7 }
 0xd95   :  { %5794 = vrcp.f32 %v2960_v41 }
 0xd9f   :  { %v5795_v49 = vpop.eup %5794 }
 0xda0   :  { %v2971_v12 = vmul.f32 %v5795_v49, %v2970_v5  ;;  %v3474_v49 = vld [vmem:[%s7054_s6 + $0x10] sm:$0xff] }
 0xda2   :  { %v2972_v58 = vadd.f32 %v2971_v12, %v2053_v57  ;;  %v3476_v12 = vld [vmem:[%s7054_s6 + $0x20] sm:$0xff] }
 0xda4   :  { %5796 = vtanh.f32 %v2972_v58  ;;  %v3477_v58 = vld [vmem:[%s7054_s6 + $0x28] sm:$0xff] }
 0xda5   :  { %5798 = vrcp.f32 %v2967_v39  ;;  %v5578_v39 = vpack.c.bf16 %v3477_v58, %v3476_v12 }
 0xdae   :  { %v5797_v25 = vpop.eup %5796 }
 0xdaf   :  { %v2974_v13 = vsub.f32 %v6846_v19, %v5797_v25  ;;  %v5799_v15 = vpop.eup %5798 }
 0xdb1   :  { %v2975_v1 = vmul.f32 %v5799_v15, %v2974_v13  ;;  %v3479_v13 = vld [vmem:[%s7054_s6 + $0x38] sm:$0xff] }
 0xdb3   :  { %v6891_v36 = vadd.f32 %v5797_v25, %v2975_v1  ;;  %v3478_v25 = vld [vmem:[%s7054_s6 + $0x30] sm:$0xff]  ;;  %v3480_v1 = vld [vmem:[%s7054_s6 + $0x40] sm:$0xff] }
 0xdb4   :  { %v5581_v15 = vpack.c.bf16 %v3479_v13, %v3478_v25 }
 0xdb5   :  { %3045 = vmatmul.mubr.f32.vlgmr.msra.gmra.mrb[26].mxu0 %v6891_v36  ;;  %4496 = vmatmul.mubr.f32.vlgmr.msra.gmra.mrb[42].mxu1 %v6891_v36 }
 0xdb6   :  { %5462 = vmatpush1.bf16.msra.mxu0 %v6550_v6  ;;  %5493 = vmatpush3.bf16.msra.mxu1 %v6588_v38 }
 0xdb7   :  { %5464 = vmatprep.subr.bf16.mxu0 %v6554_v9  ;;  %5494 = vmatprep.subr.bf16.mxu1 %v5934_v48 }
 0xdb8   :  { %3209 = vmatprep.mubr.f32.mxu0 %v5933_v0  ;;  %4530 = vmatprep.mubr.msk.f32.mxu1 %vm5935_vm1, %v5933_v0 }
 0xdba   :  { %5466 = vmatpush1.bf16.msra.mxu0 %v6556_v16  ;;  %5496 = vmatpush3.bf16.msra.mxu1 %v6599_v2 }
 0xdbb   :  { %5468 = vmatprep.subr.bf16.mxu0 %v6560_v31  ;;  %5497 = vmatprep.subr.bf16.mxu1 %v5934_v48 }
 0xdbe   :  { %5470 = vmatpush1.bf16.msra.mxu0 %v6562_v42  ;;  %5499 = vmatpush3.bf16.msra.mxu1 %v6605_v32 }
 0xdbf   :  { %5472 = vmatprep.subr.bf16.mxu0 %v6566_v53  ;;  %5500 = vmatprep.subr.bf16.mxu1 %v5934_v48 }
 0xdc2   :  { %5474 = vmatpush1.bf16.msra.mxu0 %v6568_v63  ;;  %5502 = vmatpush3.bf16.msra.mxu1 %v6608_v17 }
 0xdc3   :  { %5476 = vmatprep.subr.bf16.mxu0 %v6572_v10  ;;  %5503 = vmatprep.subr.bf16.mxu1 %v5934_v48 }
 0xdc6   :  { %5478 = vmatpush1.bf16.msra.mxu0 %v6574_v21  ;;  %5505 = vmatpush3.bf16.msra.mxu1 %v6612_v22 }
 0xdc7   :  { %5480 = vmatprep.subr.bf16.mxu0 %v6578_v34  ;;  %5506 = vmatprep.subr.bf16.mxu1 %v5934_v48 }
 0xdca   :  { %5482 = vmatpush1.bf16.msra.mxu0 %v6580_v20  ;;  %5508 = vmatpush3.bf16.msra.mxu1 %v6616_v40 }
 0xdcb   :  { %5484 = vmatprep.subr.bf16.mxu0 %v6583_v30  ;;  %5509 = vmatprep.subr.bf16.mxu1 %v5934_v48 }
 0xdce   :  { %5486 = vmatpush1.bf16.msra.mxu0 %v6586_v50  ;;  %5511 = vmatpush3.bf16.msra.mxu1 %v6620_v56 }
 0xdcf   :  { %5488 = vmatprep.subr.bf16.mxu0 %v6594_v43  ;;  %5512 = vmatprep.subr.bf16.mxu1 %v5934_v48 }
 0xdd2   :  { %5490 = vmatpush1.bf16.msra.mxu0 %v6596_v60  ;;  %5514 = vmatpush3.bf16.msra.mxu1 %v6624_v8 }
 0xdd3   :  { %5516 = vmatprep.subr.bf16.mxu0 %v6548_v46  ;;  %5547 = vmatprep.subr.bf16.mxu1 %v5934_v48 }
 0xe88   :  { %v3046_v4 = vpop.f32.mrb[26].mxu0  ;;  %v3117_v37 = vpop.f32.mrb[42].mxu1 }
 0xe89   :  { %v5621_v44 = vadd.f32 %v3046_v4, %v6694_v51  ;;  %v3048_v23 = vpop.f32.mrb[27].mxu0  ;;  %v4497_v27 = vpop.f32.mrb[43].mxu1  ;;  %v3135_v46 = vadd.f32 %v6702_v52, %v3117_v37  ;;  %v3482_v4 = vld [vmem:[%s7054_s6 + $0x50] sm:$0xff] }
 0xe8a   :  { %v5622_v3 = vadd.f32 %v3048_v23, %v6699_v55  ;;  %v3484_v27 = vld [vmem:[%s7054_s6 + $0x60] sm:$0xff] }
 0xe8b   :  { %v3618_v61 = vmul.f32 -1.442695, %v5621_v44  ;;  %v3483_v44 = vld [vmem:[%s7054_s6 + $0x58] sm:$0xff] }
 0xe8c   :  { %v3619_v14 = vmul.f32 -1.442695, %v5622_v3  ;;  %v5587_v23 = vpack.c.bf16 %v3483_v44, %v3482_v4 }
 0xe8d   :  { %5800 = vpow2.f32 %v3618_v61  ;;  %v3485_v61 = vld [vmem:[%s7054_s6 + $0x68] sm:$0xff] }
 0xe8e   :  { %5802 = vpow2.f32 %v3619_v14  ;;  %v5590_v3 = vpack.c.bf16 %v3485_v61, %v3484_v27  ;;  %v3486_v14 = vld [vmem:[%s7054_s6 + $0x70] sm:$0xff] }
 0xe97   :  { %v5801_v19 = vpop.eup %5800 }
 0xe98   :  { %v3125_v11 = vadd.f32 1.0, %v5801_v19  ;;  %v5803_v26 = vpop.eup %5802  ;;  %v3487_v19 = vld [vmem:[%s7054_s6 + $0x78] sm:$0xff] }
 0xe99   :  { %v3132_v28 = vadd.f32 1.0, %v5803_v26 }
 0xe9a   :  { %5804 = vrcp.f32 %v3125_v11  ;;  %v5593_v11 = vpack.c.bf16 %v3487_v19, %v3486_v14 }
 0xea4   :  { %v5805_v29 = vpop.eup %5804 }
 0xea5   :  { %v3136_v24 = vmul.f32 %v5805_v29, %v3135_v46 }
 0xea7   :  { %v3137_v59 = vadd.f32 %v3136_v24, %v2058_v18 }
 0xea9   :  { %5806 = vtanh.f32 %v3137_v59 }
 0xeaa   :  { %5808 = vrcp.f32 %v3132_v28 }
 0xeb3   :  { %v5807_v35 = vpop.eup %5806 }
 0xeb4   :  { %v3139_v62 = vsub.f32 %v6891_v36, %v5807_v35  ;;  %v5809_v41 = vpop.eup %5808  ;;  %v3481_v36 = vld [vmem:[%s7054_s6 + $0x48] sm:$0xff] }
 0xeb5   :  { %v5584_v37 = vpack.c.bf16 %v3481_v36, %v3480_v1 }
 0xeb6   :  { %v3140_v7 = vmul.f32 %v5809_v41, %v3139_v62 }
 0xeb8   :  { %v3141_v5 = vadd.f32 %v5807_v35, %v3140_v7 }
 0xeba   :  { %3210 = vmatmul.mubr.f32.vlgmr.msra.gmra.mrb[28].mxu0 %v3141_v5  ;;  %4531 = vmatmul.mubr.f32.vlgmr.msra.gmra.mrb[44].mxu1 %v3141_v5 }
 0xebb   :  { %5518 = vmatpush1.bf16.msra.mxu0 %v6550_v6  ;;  %5549 = vmatpush3.bf16.msra.mxu1 %v6588_v38  ;;  %v2063_v38 = vadd.f32 %v6690_v45, %v6706_v47 }
 0xebc   :  { %5520 = vmatprep.subr.bf16.mxu0 %v6554_v9  ;;  %5550 = vmatprep.subr.bf16.mxu1 %v5934_v48 }
 0xebd   :  { %3374 = vmatprep.mubr.f32.mxu0 %v5933_v0  ;;  %4565 = vmatprep.mubr.msk.f32.mxu1 %vm5935_vm1, %v5933_v0 }
 0xebf   :  { %5522 = vmatpush1.bf16.msra.mxu0 %v6556_v16  ;;  %5552 = vmatpush3.bf16.msra.mxu1 %v6599_v2 }
 0xec0   :  { %5524 = vmatprep.subr.bf16.mxu0 %v6560_v31  ;;  %5553 = vmatprep.subr.bf16.mxu1 %v5934_v48 }
 0xec3   :  { %5526 = vmatpush1.bf16.msra.mxu0 %v6562_v42  ;;  %5555 = vmatpush3.bf16.msra.mxu1 %v6605_v32 }
 0xec4   :  { %5528 = vmatprep.subr.bf16.mxu0 %v6566_v53  ;;  %5556 = vmatprep.subr.bf16.mxu1 %v5934_v48 }
 0xec7   :  { %5530 = vmatpush1.bf16.msra.mxu0 %v6568_v63  ;;  %5558 = vmatpush3.bf16.msra.mxu1 %v6608_v17 }
 0xec8   :  { %5532 = vmatprep.subr.bf16.mxu0 %v6572_v10  ;;  %5559 = vmatprep.subr.bf16.mxu1 %v5934_v48 }
 0xecb   :  { %5534 = vmatpush1.bf16.msra.mxu0 %v6574_v21  ;;  %5561 = vmatpush3.bf16.msra.mxu1 %v6612_v22 }
 0xecc   :  { %5536 = vmatprep.subr.bf16.mxu0 %v6578_v34  ;;  %5562 = vmatprep.subr.bf16.mxu1 %v5934_v48 }
 0xecf   :  { %5538 = vmatpush1.bf16.msra.mxu0 %v6580_v20  ;;  %5564 = vmatpush3.bf16.msra.mxu1 %v6616_v40 }
 0xed0   :  { %5540 = vmatprep.subr.bf16.mxu0 %v6583_v30  ;;  %5565 = vmatprep.subr.bf16.mxu1 %v5934_v48 }
 0xed3   :  { %5542 = vmatpush1.bf16.msra.mxu0 %v6586_v50  ;;  %5567 = vmatpush3.bf16.msra.mxu1 %v6620_v56 }
 0xed4   :  { %5544 = vmatprep.subr.bf16.mxu0 %v6594_v43  ;;  %5568 = vmatprep.subr.bf16.mxu1 %v5934_v48 }
 0xed7   :  { %5546 = vmatpush1.bf16.msra.mxu0 %v6596_v60  ;;  %5570 = vmatpush3.bf16.msra.mxu1 %v6624_v8  ;;  %v3472_v8 = vld [vmem:[%s7054_s6] sm:$0xff] }
 0xed8   :  { %5571 = vmatprep.subr.bf16.mxu0 %v5934_v48  ;;  %v5572_v45 = vpack.c.bf16 %v3473_v54, %v3472_v8 }
 0xf8d   :  { %v3211_v6 = vpop.f32.mrb[28].mxu0  ;;  %v3282_v9 = vpop.f32.mrb[44].mxu1 }
 0xf8e   :  { %v5623_v16 = vadd.f32 %v3211_v6, %v6694_v51  ;;  %v3213_v31 = vpop.f32.mrb[29].mxu0  ;;  %v4532_v42 = vpop.f32.mrb[45].mxu1  ;;  %v3300_v30 = vadd.f32 %v6702_v52, %v3282_v9  ;;  %v2068_v6 = vadd.f32 %v6688_v33, %v6706_v47 }
 0xf8f   :  { %v5624_v63 = vadd.f32 %v3213_v31, %v6699_v55 }
 0xf90   :  { %v3620_v53 = vmul.f32 -1.442695, %v5623_v16 }
 0xf91   :  { %v3621_v10 = vmul.f32 -1.442695, %v5624_v63 }
 0xf92   :  { %5810 = vpow2.f32 %v3620_v53 }
 0xf93   :  { %5812 = vpow2.f32 %v3621_v10 }
 0xf9c   :  { %v5811_v21 = vpop.eup %5810 }
 0xf9d   :  { %v3290_v34 = vadd.f32 1.0, %v5811_v21  ;;  %v5813_v20 = vpop.eup %5812 }
 0xf9e   :  { %v3297_v2 = vadd.f32 1.0, %v5813_v20 }
 0xf9f   :  { %5814 = vrcp.f32 %v3290_v34 }
 0xfa9   :  { %v5815_v50 = vpop.eup %5814 }
 0xfaa   :  { %v3301_v43 = vmul.f32 %v5815_v50, %v3300_v30 }
 0xfac   :  { %v3302_v60 = vadd.f32 %v3301_v43, %v2063_v38 }
 0xfae   :  { %5816 = vtanh.f32 %v3302_v60 }
 0xfaf   :  { %5818 = vrcp.f32 %v3297_v2 }
 0xfb8   :  { %v5817_v32 = vpop.eup %5816 }
 0xfb9   :  { %v3304_v17 = vsub.f32 %v3141_v5, %v5817_v32  ;;  %v5819_v22 = vpop.eup %5818 }
 0xfbb   :  { %v3305_v40 = vmul.f32 %v5819_v22, %v3304_v17 }
 0xfbd   :  { %v6975_v56 = vadd.f32 %v5817_v32, %v3305_v40 }
 0xfbf   :  { %3375 = vmatmul.mubr.f32.vlgmr.msra.gmra.mrb[30].mxu0 %v6975_v56  ;;  %4566 = vmatmul.mubr.f32.vlgmr.msra.gmra.mrb[46].mxu1 %v6975_v56 }
 0xfc0   :  { %4600 = vmatprep.mubr.msk.f32.mxu0 %vm5935_vm1, %v5933_v0  ;;  %5573 = vmatpush3.bf16.msra.mxu0 %v5572_v45  ;;  %v3475_v0 = vld [vmem:[%s7054_s6 + $0x18] sm:$0xff] }
 0xfc1   :  { %5574 = vmatprep.subr.bf16.mxu0 %v5934_v48  ;;  %v5575_v57 = vpack.c.bf16 %v3475_v0, %v3474_v49 }
 0xfc4   :  { %5576 = vmatpush3.bf16.msra.mxu0 %v5575_v57 }
 0xfc5   :  { %5577 = vmatprep.subr.bf16.mxu0 %v5934_v48 }
 0xfc8   :  { %5579 = vmatpush3.bf16.msra.mxu0 %v5578_v39 }
 0xfc9   :  { %5580 = vmatprep.subr.bf16.mxu0 %v5934_v48 }
 0xfcc   :  { %5582 = vmatpush3.bf16.msra.mxu0 %v5581_v15 }
 0xfcd   :  { %5583 = vmatprep.subr.bf16.mxu0 %v5934_v48 }
 0xfd0   :  { %5585 = vmatpush3.bf16.msra.mxu0 %v5584_v37 }
 0xfd1   :  { %5586 = vmatprep.subr.bf16.mxu0 %v5934_v48 }
 0xfd4   :  { %5588 = vmatpush3.bf16.msra.mxu0 %v5587_v23 }
 0xfd5   :  { %5589 = vmatprep.subr.bf16.mxu0 %v5934_v48 }
 0xfd8   :  { %5591 = vmatpush3.bf16.msra.mxu0 %v5590_v3 }
 0xfd9   :  { %5592 = vmatprep.subr.bf16.mxu0 %v5934_v48 }
 0xfdc   :  { %5594 = vmatpush3.bf16.msra.mxu0 %v5593_v11 }
0x1092   :  { %v3376_v26 = vpop.f32.mrb[30].mxu0  ;;  %v3447_v46 = vpop.f32.mrb[46].mxu1 }
0x1093   :  { %v5625_v29 = vadd.f32 %v3376_v26, %v6694_v51  ;;  %v3378_v18 = vpop.f32.mrb[31].mxu0  ;;  %v4567_v24 = vpop.f32.mrb[47].mxu1  ;;  %v3465_v5 = vadd.f32 %v6702_v52, %v3447_v46  ;;  %v3624_v52 = vld [vmem:[%s7055_s7] ss:$0 sm:$0xff] }
0x1094   :  { %v5626_v28 = vadd.f32 %v3378_v18, %v6699_v55 }
0x1095   :  { %v3622_v59 = vmul.f32 -1.442695, %v5625_v29 }
0x1096   :  { %v3623_v35 = vmul.f32 -1.442695, %v5626_v28 }
0x1097   :  { %5820 = vpow2.f32 %v3622_v59 }
0x1098   :  { %5822 = vpow2.f32 %v3623_v35 }
0x10a1   :  { %v5821_v62 = vpop.eup %5820 }
0x10a2   :  { %v3455_v41 = vadd.f32 1.0, %v5821_v62  ;;  %v5823_v7 = vpop.eup %5822 }
0x10a3   :  { %v3462_v16 = vadd.f32 1.0, %v5823_v7 }
0x10a4   :  { %5824 = vrcp.f32 %v3455_v41 }
0x10ae   :  { %v5825_v48 = vpop.eup %5824 }
0x10af   :  { %v3466_v9 = vmul.f32 %v5825_v48, %v3465_v5 }
0x10b1   :  { %v3467_v51 = vadd.f32 %v3466_v9, %v2068_v6 }
0x10b3   :  { %5826 = vtanh.f32 %v3467_v51 }
0x10b4   :  { %5828 = vrcp.f32 %v3462_v16 }
0x10bd   :  { %v5827_v31 = vpop.eup %5826 }
0x10be   :  { %v3469_v55 = vsub.f32 %v6975_v56, %v5827_v31  ;;  %v5829_v42 = vpop.eup %5828 }
0x10c0   :  { %v3470_v53 = vmul.f32 %v5829_v42, %v3469_v55 }
0x10c2   :  { %v3471_v63 = vadd.f32 %v5827_v31, %v3470_v53 }
0x10c4   :  { %4601 = vmatmul.mubr.f32.vlgmr.msra.gmra.mrb[32].mxu0 %v3471_v63 }
0x1197   :  { %v3561_v10 = vpop.f32.mrb[32].mxu0 }
0x1198   :  { %v3562_v21 = vadd.f32 %v3624_v52, %v3561_v10  ;;  %v4602_v34 = vpop.f32.mrb[33].mxu0 }
0x119a   :  { %3565 = vst [vmem:[%s7056_s8] sm:$0xff] %v3562_v21 }
0x119b   :  { %3570 = vsyncpa [#allocation5], 1 }
0x119c   :  { %3571 = vsyncpa [#allocation7], 1 }
0x119d   :  { %3572 = vsyncpa [#allocation10], 1 }

</bundles_post_ra>
